<compile_context>
chip_gen: v7x
topology: tpu7x:2x2x1
jax: 0.10.0
libtpu: 0.0.40
codegen_flags: <defaults>
</compile_context>

<pallas_src>
import jax
import jax.numpy as jnp
from jax import lax
from jax.experimental import pallas as pl
from jax.experimental.pallas import tpu as pltpu


# ----------------------------- fused Pallas kernel -----------------------------

def _fused_block_kernel(
    x_ref, x1_ref, xph_ref, x1ph_ref,
    p_gp_w_ref, p_gp_b_ref, p_th_w_ref, p_th_b_ref, p_W_w_ref, p_W_b_ref,
    q_gt_w_ref, q_gt_b_ref, q_ph_w_ref, q_ph_b_ref, q_W_w_ref, q_W_b_ref,
    o_ref):
    """One batch element: full NonSingleModalBlock + outer DisTransBlockv3.

    Layout is channels-first: activations are (C, S) / (ic, S) with S on lanes.
    """
    ic = p_th_w_ref.shape[0]

    def pw(w, b, v):
        # 1x1 conv: (Cout, Cin) @ (Cin, S) + (Cout, 1)  -- lane-dense output.
        return jnp.dot(w, v, preferred_element_type=jnp.float32) + b

    def conv_pool(ph_ref, w, b):
        # Fused conv + 2x2 maxpool: conv each pool phase, elementwise max.
        # ph_ref block: (1, 4, Cin, Sp).
        acc = jnp.dot(w, ph_ref[0, 0], preferred_element_type=jnp.float32)
        for k in range(1, 4):
            acc = jnp.maximum(
                acc, jnp.dot(w, ph_ref[0, k], preferred_element_type=jnp.float32))
        return acc + b

    def attn(theta, phi, g):
        # theta: (ic, Sq), phi: (ic, Sk), g: (ic, Sk) -> (ic, Sq)
        s = lax.dot_general(theta, phi, (((0,), (0,)), ((), ())),
                            preferred_element_type=jnp.float32)       # (Sq, Sk)
        m = jnp.max(s, axis=-1, keepdims=True)
        e = jnp.exp(s - m)
        den = jnp.sum(e, axis=-1, keepdims=True)
        probs = e * pl.reciprocal(den, approx=True)                    # EUP slot
        return lax.dot_general(g, probs, (((1,), (1,)), ((), ())),
                               preferred_element_type=jnp.float32)     # (ic, Sq)

    x = x_ref[0].astype(jnp.float32)      # (C, S)
    x1 = x1_ref[0].astype(jnp.float32)

    # ---------------- inner NonSingleModalBlock (sub_sample=True) ----------------
    p_gp_w = p_gp_w_ref[...]              # (2ic, C) = [g ; phi]
    p_gp_b = p_gp_b_ref[...]              # (2ic, 1)
    gp_x = conv_pool(xph_ref, p_gp_w, p_gp_b)      # (2ic, Sp)
    gp_x1 = conv_pool(x1ph_ref, p_gp_w, p_gp_b)
    g_x, phi_x = gp_x[:ic], gp_x[ic:]
    g_x1, phi_x1 = gp_x1[:ic], gp_x1[ic:]

    p_th_w = p_th_w_ref[...]
    p_th_b = p_th_b_ref[...]
    th_x = pw(p_th_w, p_th_b, x)                   # (ic, S)
    th_x1 = pw(p_th_w, p_th_b, x1)

    y1 = attn(th_x, phi_x1, g_x1)                  # (ic, S)
    y = attn(th_x1, phi_x, g_x)

    pW_w = p_W_w_ref[...]                          # (C, ic), BN folded
    pW_b = p_W_b_ref[...]                          # (C, 1)
    z = pw(pW_w, pW_b, y) + x                      # (C, S)
    z1 = pw(pW_w, pW_b, y1) + x1

    # ---------------- outer DisTransBlockv3 (sub_sample=False) ----------------
    gt = pw(q_gt_w_ref[...], q_gt_b_ref[...], z)   # (2ic, S) = [g ; theta]
    g2, th2 = gt[:ic], gt[ic:]
    ph2 = pw(q_ph_w_ref[...], q_ph_b_ref[...], z1)
    y2 = attn(th2, ph2, g2)                        # (ic, S)
    out = pw(q_W_w_ref[...], q_W_b_ref[...], y2) + z1 + z
    o_ref[0] = out.astype(o_ref.dtype)


# ----------------------------- wrapper -----------------------------

def dis_trans_block_v3(x_nchw, x1_nchw, params):
    B, C, H, W = x_nchw.shape
    assert H % 2 == 0 and W % 2 == 0, "2x2 maxpool requires even H, W"
    ic = params["ic"]
    S = H * W
    Sp = (H // 2) * (W // 2)

    # NCHW -> (B, C, S): contiguous reshape, no transpose.
    x = x_nchw.reshape(B, C, S)
    x1 = x1_nchw.reshape(B, C, S)

    def phases(t_nchw):
        # Four 2x2-pool phases, channels-first: (B, 4, C, Sp). Done once per input.
        return jnp.stack(
            [t_nchw[:, :, r::2, c::2].reshape(B, C, Sp)
             for r in (0, 1) for c in (0, 1)], axis=1)

    xph = phases(x_nchw)
    x1ph = phases(x1_nchw)

    p = params["nolocal"]
    q = params["main"]
    # Concatenated projection weights (fewer, fatter matmuls).
    p_gp_w = jnp.concatenate([p["g_w"], p["phi_w"]], axis=0)            # (2ic, C)
    p_gp_b = jnp.concatenate([p["g_b"], p["phi_b"]], axis=0)[:, None]   # (2ic, 1)
    p_th_w = p["theta_w"]
    p_th_b = p["theta_b"][:, None]
    p_W_w = p["W_w_eff"]
    p_W_b = p["W_b_eff"][:, None]
    q_gt_w = jnp.concatenate([q["g_w"], q["theta_w"]], axis=0)
    q_gt_b = jnp.concatenate([q["g_b"], q["theta_b"]], axis=0)[:, None]
    q_ph_w = q["phi_w"]
    q_ph_b = q["phi_b"][:, None]
    q_W_w = q["W_w_eff"]
    q_W_b = q["W_b_eff"][:, None]

    def full_spec(shape):
        nd = len(shape)
        return pl.BlockSpec(shape, lambda b, _nd=nd: (0,) * _nd)

    out = pl.pallas_call(
        _fused_block_kernel,
        out_shape=jax.ShapeDtypeStruct((B, C, S), x.dtype),
        grid=(B,),
        in_specs=[
            pl.BlockSpec((1, C, S), lambda b: (b, 0, 0)),
            pl.BlockSpec((1, C, S), lambda b: (b, 0, 0)),
            pl.BlockSpec((1, 4, C, Sp), lambda b: (b, 0, 0, 0)),
            pl.BlockSpec((1, 4, C, Sp), lambda b: (b, 0, 0, 0)),
            full_spec((2 * ic, C)), full_spec((2 * ic, 1)),
            full_spec((ic, C)), full_spec((ic, 1)),
            full_spec((C, ic)), full_spec((C, 1)),
            full_spec((2 * ic, C)), full_spec((2 * ic, 1)),
            full_spec((ic, C)), full_spec((ic, 1)),
            full_spec((C, ic)), full_spec((C, 1)),
        ],
        out_specs=pl.BlockSpec((1, C, S), lambda b: (b, 0, 0)),
        compiler_params=pltpu.CompilerParams(
            dimension_semantics=("parallel",),
            vmem_limit_bytes=32 * 1024 * 1024),
    )(x, x1, xph, x1ph,
      p_gp_w, p_gp_b, p_th_w, p_th_b, p_W_w, p_W_b,
      q_gt_w, q_gt_b, q_ph_w, q_ph_b, q_W_w, q_W_b)

    return out.reshape(B, C, H, W)


# ----------------------------- parameter setup -----------------------------

def _fold_bn(conv_w, conv_b, gamma, beta, mean, var, eps=1e-5):
    """Fold eval-mode BatchNorm into a 1x1 conv."""
    scale = gamma / jnp.sqrt(var + eps)
    w_eff = conv_w * scale[:, None]
    b_eff = (conv_b - mean) * scale + beta
    return w_eff, b_eff


def make_block_params(key, in_channels, inter_channels):
    C, ic = in_channels, inter_channels
    ks = jax.random.split(key, 12)
    p = {}
    p["g_w"] = 0.1 * jax.random.normal(ks[0], (ic, C), jnp.float32)
    p["g_b"] = 0.1 * jax.random.normal(ks[1], (ic,), jnp.float32)
    p["theta_w"] = 0.1 * jax.random.normal(ks[2], (ic, C), jnp.float32)
    p["theta_b"] = 0.1 * jax.random.normal(ks[3], (ic,), jnp.float32)
    p["phi_w"] = 0.1 * jax.random.normal(ks[4], (ic, C), jnp.float32)
    p["phi_b"] = 0.1 * jax.random.normal(ks[5], (ic,), jnp.float32)
    W_w = 0.1 * jax.random.normal(ks[6], (C, ic), jnp.float32)
    W_b = 0.1 * jax.random.normal(ks[7], (C,), jnp.float32)
    gamma = 1.0 + 0.1 * jax.random.normal(ks[8], (C,), jnp.float32)
    beta = 0.1 * jax.random.normal(ks[9], (C,), jnp.float32)
    mean = 0.1 * jax.random.normal(ks[10], (C,), jnp.float32)
    var = 0.5 + jnp.abs(jax.random.normal(ks[11], (C,), jnp.float32))
    p["W_w_eff"], p["W_b_eff"] = _fold_bn(W_w, W_b, gamma, beta, mean, var)
    return p


def make_params(key, in_channels, inter_channels=None):
    if inter_channels is None:
        inter_channels = max(in_channels // 2, 1)
    k1, k2 = jax.random.split(key)
    return {
        "ic": inter_channels,
        "nolocal": make_block_params(k1, in_channels, inter_channels),
        "main": make_block_params(k2, in_channels, inter_channels),
    }


# ----------------------------- pure-JAX reference -----------------------------

def _ref_forward(x_nchw, x1_nchw, params):
    B, C, H, W = x_nchw.shape
    ic = params["ic"]

    def to_bsc(t):
        return jnp.transpose(t, (0, 2, 3, 1)).reshape(B, H * W, C)

    def pw(x, w, b):
        return jnp.einsum("bsc,oc->bso", x, w) + b

    def pool(y):
        y4 = y.reshape(B, H, W, ic).reshape(B, H // 2, 2, W // 2, 2, ic)
        return jnp.max(y4, axis=(2, 4)).reshape(B, -1, ic)

    def attn(t, p, g):
        s = jnp.einsum("bqc,bkc->bqk", t, p)
        return jnp.einsum("bqk,bkc->bqc", jax.nn.softmax(s, axis=-1), g)

    x, x1 = to_bsc(x_nchw), to_bsc(x1_nchw)
    p = params["nolocal"]
    g_x, g_x1 = pool(pw(x, p["g_w"], p["g_b"])), pool(pw(x1, p["g_w"], p["g_b"]))
    th_x, th_x1 = pw(x, p["theta_w"], p["theta_b"]), pw(x1, p["theta_w"], p["theta_b"])
    ph_x, ph_x1 = pool(pw(x, p["phi_w"], p["phi_b"])), pool(pw(x1, p["phi_w"], p["phi_b"]))
    y1 = attn(th_x, ph_x1, g_x1)
    y = attn(th_x1, ph_x, g_x)
    z = pw(y, p["W_w_eff"], p["W_b_eff"]) + x
    z1 = pw(y1, p["W_w_eff"], p["W_b_eff"]) + x1

    q = params["main"]
    x, x1 = z, z1
    y = attn(pw(x, q["theta_w"], q["theta_b"]),
             pw(x1, q["phi_w"], q["phi_b"]),
             pw(x, q["g_w"], q["g_b"]))
    z_out = pw(y, q["W_w_eff"], q["W_b_eff"]) + x1 + x
    return jnp.transpose(z_out.reshape(B, H, W, C), (0, 3, 1, 2))


# ----------------------------- main -----------------------------

if __name__ == "__main__":
    B, C, H, W = 2, 4, 16, 16
    key = jax.random.PRNGKey(0)
    kx, kx1, kp = jax.random.split(key, 3)
    x = jax.random.normal(kx, (B, C, H, W), jnp.float32)
    x1 = jax.random.normal(kx1, (B, C, H, W), jnp.float32)
    params = make_params(kp, C)

    out = jax.block_until_ready(dis_trans_block_v3(x, x1, params))
    ref = jax.block_until_ready(_ref_forward(x, x1, params))

    assert out.shape == (B, C, H, W)
    # Tolerance slightly above 1e-3 to absorb the approx (EUP) softmax reciprocal
    # and the fused pool/matmul reassociation; everything else accumulates in f32.
    assert jnp.allclose(out, ref, atol=2e-3, rtol=2e-3), "mismatch vs reference"

    print("KERNEL_OK")
</pallas_src>

<mosaic_0001>
module attributes {stable_mosaic.version = 11 : i64} {
  func.func @_fused_block_kernel(%arg0: i32, %arg1: memref<1x4x256xf32, #tpu.memory_space<vmem>>, %arg2: memref<1x4x256xf32, #tpu.memory_space<vmem>>, %arg3: memref<1x4x4x64xf32, #tpu.memory_space<vmem>>, %arg4: memref<1x4x4x64xf32, #tpu.memory_space<vmem>>, %arg5: memref<4x4xf32, #tpu.memory_space<vmem>>, %arg6: memref<4x1xf32, #tpu.memory_space<vmem>>, %arg7: memref<2x4xf32, #tpu.memory_space<vmem>>, %arg8: memref<2x1xf32, #tpu.memory_space<vmem>>, %arg9: memref<4x2xf32, #tpu.memory_space<vmem>>, %arg10: memref<4x1xf32, #tpu.memory_space<vmem>>, %arg11: memref<4x4xf32, #tpu.memory_space<vmem>>, %arg12: memref<4x1xf32, #tpu.memory_space<vmem>>, %arg13: memref<2x4xf32, #tpu.memory_space<vmem>>, %arg14: memref<2x1xf32, #tpu.memory_space<vmem>>, %arg15: memref<4x2xf32, #tpu.memory_space<vmem>>, %arg16: memref<4x1xf32, #tpu.memory_space<vmem>>, %arg17: memref<1x4x256xf32, #tpu.memory_space<vmem>>) attributes {dimension_semantics = [#tpu.dimension_semantics<parallel>], iteration_bounds = array<i64: 2>, scalar_prefetch = 0 : i64, scratch_operands = 0 : i64, tpu.core_type = #tpu.core_type<tc>, window_params = [{transform_indices = @transform_0, window_bounds = array<i64: 1, 4, 256>}, {transform_indices = @transform_1, window_bounds = array<i64: 1, 4, 256>}, {transform_indices = @transform_2, window_bounds = array<i64: 1, 4, 4, 64>}, {transform_indices = @transform_3, window_bounds = array<i64: 1, 4, 4, 64>}, {pipeline_mode = #tpu.pipeline_mode<synchronous>, transform_indices = @transform_4, window_bounds = array<i64: 4, 4>}, {pipeline_mode = #tpu.pipeline_mode<synchronous>, transform_indices = @transform_5, window_bounds = array<i64: 4, 1>}, {pipeline_mode = #tpu.pipeline_mode<synchronous>, transform_indices = @transform_6, window_bounds = array<i64: 2, 4>}, {pipeline_mode = #tpu.pipeline_mode<synchronous>, transform_indices = @transform_7, window_bounds = array<i64: 2, 1>}, {pipeline_mode = #tpu.pipeline_mode<synchronous>, transform_indices = @transform_8, window_bounds = array<i64: 4, 2>}, {pipeline_mode = #tpu.pipeline_mode<synchronous>, transform_indices = @transform_9, window_bounds = array<i64: 4, 1>}, {pipeline_mode = #tpu.pipeline_mode<synchronous>, transform_indices = @transform_10, window_bounds = array<i64: 4, 4>}, {pipeline_mode = #tpu.pipeline_mode<synchronous>, transform_indices = @transform_11, window_bounds = array<i64: 4, 1>}, {pipeline_mode = #tpu.pipeline_mode<synchronous>, transform_indices = @transform_12, window_bounds = array<i64: 2, 4>}, {pipeline_mode = #tpu.pipeline_mode<synchronous>, transform_indices = @transform_13, window_bounds = array<i64: 2, 1>}, {pipeline_mode = #tpu.pipeline_mode<synchronous>, transform_indices = @transform_14, window_bounds = array<i64: 4, 2>}, {pipeline_mode = #tpu.pipeline_mode<synchronous>, transform_indices = @transform_15, window_bounds = array<i64: 4, 1>}, {transform_indices = @transform_16, window_bounds = array<i64: 1, 4, 256>}]} {
    %c0 = arith.constant 0 : index
    %c0_0 = arith.constant 0 : index
    %c0_1 = arith.constant 0 : index
    %0 = vector.load %arg1[%c0, %c0_0, %c0_1] : memref<1x4x256xf32, #tpu.memory_space<vmem>>, vector<1x4x256xf32>
    %1 = vector.shape_cast %0 : vector<1x4x256xf32> to vector<4x256xf32>
    %c0_2 = arith.constant 0 : index
    %c0_3 = arith.constant 0 : index
    %c0_4 = arith.constant 0 : index
    %2 = vector.load %arg2[%c0_2, %c0_3, %c0_4] : memref<1x4x256xf32, #tpu.memory_space<vmem>>, vector<1x4x256xf32>
    %3 = vector.shape_cast %2 : vector<1x4x256xf32> to vector<4x256xf32>
    %c0_5 = arith.constant 0 : index
    %c0_6 = arith.constant 0 : index
    %4 = vector.load %arg5[%c0_5, %c0_6] : memref<4x4xf32, #tpu.memory_space<vmem>>, vector<4x4xf32>
    %c0_7 = arith.constant 0 : index
    %c0_8 = arith.constant 0 : index
    %5 = vector.load %arg6[%c0_7, %c0_8] : memref<4x1xf32, #tpu.memory_space<vmem>>, vector<4x1xf32>
    %c0_9 = arith.constant 0 : index
    %c0_10 = arith.constant 0 : index
    %c0_11 = arith.constant 0 : index
    %c0_12 = arith.constant 0 : index
    %6 = vector.load %arg3[%c0_9, %c0_10, %c0_11, %c0_12] : memref<1x4x4x64xf32, #tpu.memory_space<vmem>>, vector<1x1x4x64xf32>
    %7 = vector.shape_cast %6 : vector<1x1x4x64xf32> to vector<4x64xf32>
    %cst = arith.constant dense<0.000000e+00> : vector<4x64xf32>
    %8 = tpu.matmul %4, %7, %cst {dimension_numbers = #tpu.dot_dimension_numbers<[1], [0], [0], [1], [0, 0, 1, 1], [], []>} : vector<4x4xf32>, vector<4x64xf32>, vector<4x64xf32> -> vector<4x64xf32>
    %c0_13 = arith.constant 0 : index
    %c1 = arith.constant 1 : index
    %c0_14 = arith.constant 0 : index
    %c0_15 = arith.constant 0 : index
    %9 = vector.load %arg3[%c0_13, %c1, %c0_14, %c0_15] : memref<1x4x4x64xf32, #tpu.memory_space<vmem>>, vector<1x1x4x64xf32>
    %10 = vector.shape_cast %9 : vector<1x1x4x64xf32> to vector<4x64xf32>
    %cst_16 = arith.constant dense<0.000000e+00> : vector<4x64xf32>
    %11 = tpu.matmul %4, %10, %cst_16 {dimension_numbers = #tpu.dot_dimension_numbers<[1], [0], [0], [1], [0, 0, 1, 1], [], []>} : vector<4x4xf32>, vector<4x64xf32>, vector<4x64xf32> -> vector<4x64xf32>
    %12 = arith.maximumf %8, %11 : vector<4x64xf32>
    %c0_17 = arith.constant 0 : index
    %c2 = arith.constant 2 : index
    %c0_18 = arith.constant 0 : index
    %c0_19 = arith.constant 0 : index
    %13 = vector.load %arg3[%c0_17, %c2, %c0_18, %c0_19] : memref<1x4x4x64xf32, #tpu.memory_space<vmem>>, vector<1x1x4x64xf32>
    %14 = vector.shape_cast %13 : vector<1x1x4x64xf32> to vector<4x64xf32>
    %cst_20 = arith.constant dense<0.000000e+00> : vector<4x64xf32>
    %15 = tpu.matmul %4, %14, %cst_20 {dimension_numbers = #tpu.dot_dimension_numbers<[1], [0], [0], [1], [0, 0, 1, 1], [], []>} : vector<4x4xf32>, vector<4x64xf32>, vector<4x64xf32> -> vector<4x64xf32>
    %16 = arith.maximumf %12, %15 : vector<4x64xf32>
    %c0_21 = arith.constant 0 : index
    %c3 = arith.constant 3 : index
    %c0_22 = arith.constant 0 : index
    %c0_23 = arith.constant 0 : index
    %17 = vector.load %arg3[%c0_21, %c3, %c0_22, %c0_23] : memref<1x4x4x64xf32, #tpu.memory_space<vmem>>, vector<1x1x4x64xf32>
    %18 = vector.shape_cast %17 : vector<1x1x4x64xf32> to vector<4x64xf32>
    %cst_24 = arith.constant dense<0.000000e+00> : vector<4x64xf32>
    %19 = tpu.matmul %4, %18, %cst_24 {dimension_numbers = #tpu.dot_dimension_numbers<[1], [0], [0], [1], [0, 0, 1, 1], [], []>} : vector<4x4xf32>, vector<4x64xf32>, vector<4x64xf32> -> vector<4x64xf32>
    %20 = arith.maximumf %16, %19 : vector<4x64xf32>
    %21 = vector.broadcast %5 : vector<4x1xf32> to vector<4x64xf32>
    %22 = arith.addf %20, %21 : vector<4x64xf32>
    %c0_25 = arith.constant 0 : index
    %c0_26 = arith.constant 0 : index
    %c0_27 = arith.constant 0 : index
    %c0_28 = arith.constant 0 : index
    %23 = vector.load %arg4[%c0_25, %c0_26, %c0_27, %c0_28] : memref<1x4x4x64xf32, #tpu.memory_space<vmem>>, vector<1x1x4x64xf32>
    %24 = vector.shape_cast %23 : vector<1x1x4x64xf32> to vector<4x64xf32>
    %cst_29 = arith.constant dense<0.000000e+00> : vector<4x64xf32>
    %25 = tpu.matmul %4, %24, %cst_29 {dimension_numbers = #tpu.dot_dimension_numbers<[1], [0], [0], [1], [0, 0, 1, 1], [], []>} : vector<4x4xf32>, vector<4x64xf32>, vector<4x64xf32> -> vector<4x64xf32>
    %c0_30 = arith.constant 0 : index
    %c1_31 = arith.constant 1 : index
    %c0_32 = arith.constant 0 : index
    %c0_33 = arith.constant 0 : index
    %26 = vector.load %arg4[%c0_30, %c1_31, %c0_32, %c0_33] : memref<1x4x4x64xf32, #tpu.memory_space<vmem>>, vector<1x1x4x64xf32>
    %27 = vector.shape_cast %26 : vector<1x1x4x64xf32> to vector<4x64xf32>
    %cst_34 = arith.constant dense<0.000000e+00> : vector<4x64xf32>
    %28 = tpu.matmul %4, %27, %cst_34 {dimension_numbers = #tpu.dot_dimension_numbers<[1], [0], [0], [1], [0, 0, 1, 1], [], []>} : vector<4x4xf32>, vector<4x64xf32>, vector<4x64xf32> -> vector<4x64xf32>
    %29 = arith.maximumf %25, %28 : vector<4x64xf32>
    %c0_35 = arith.constant 0 : index
    %c2_36 = arith.constant 2 : index
    %c0_37 = arith.constant 0 : index
    %c0_38 = arith.constant 0 : index
    %30 = vector.load %arg4[%c0_35, %c2_36, %c0_37, %c0_38] : memref<1x4x4x64xf32, #tpu.memory_space<vmem>>, vector<1x1x4x64xf32>
    %31 = vector.shape_cast %30 : vector<1x1x4x64xf32> to vector<4x64xf32>
    %cst_39 = arith.constant dense<0.000000e+00> : vector<4x64xf32>
    %32 = tpu.matmul %4, %31, %cst_39 {dimension_numbers = #tpu.dot_dimension_numbers<[1], [0], [0], [1], [0, 0, 1, 1], [], []>} : vector<4x4xf32>, vector<4x64xf32>, vector<4x64xf32> -> vector<4x64xf32>
    %33 = arith.maximumf %29, %32 : vector<4x64xf32>
    %c0_40 = arith.constant 0 : index
    %c3_41 = arith.constant 3 : index
    %c0_42 = arith.constant 0 : index
    %c0_43 = arith.constant 0 : index
    %34 = vector.load %arg4[%c0_40, %c3_41, %c0_42, %c0_43] : memref<1x4x4x64xf32, #tpu.memory_space<vmem>>, vector<1x1x4x64xf32>
    %35 = vector.shape_cast %34 : vector<1x1x4x64xf32> to vector<4x64xf32>
    %cst_44 = arith.constant dense<0.000000e+00> : vector<4x64xf32>
    %36 = tpu.matmul %4, %35, %cst_44 {dimension_numbers = #tpu.dot_dimension_numbers<[1], [0], [0], [1], [0, 0, 1, 1], [], []>} : vector<4x4xf32>, vector<4x64xf32>, vector<4x64xf32> -> vector<4x64xf32>
    %37 = arith.maximumf %33, %36 : vector<4x64xf32>
    %38 = vector.broadcast %5 : vector<4x1xf32> to vector<4x64xf32>
    %39 = arith.addf %37, %38 : vector<4x64xf32>
    %40 = vector.extract_strided_slice %22 {offsets = [0, 0], sizes = [2, 64], strides = [1, 1]} : vector<4x64xf32> to vector<2x64xf32>
    %41 = vector.extract_strided_slice %22 {offsets = [2, 0], sizes = [2, 64], strides = [1, 1]} : vector<4x64xf32> to vector<2x64xf32>
    %42 = vector.extract_strided_slice %39 {offsets = [0, 0], sizes = [2, 64], strides = [1, 1]} : vector<4x64xf32> to vector<2x64xf32>
    %43 = vector.extract_strided_slice %39 {offsets = [2, 0], sizes = [2, 64], strides = [1, 1]} : vector<4x64xf32> to vector<2x64xf32>
    %c0_45 = arith.constant 0 : index
    %c0_46 = arith.constant 0 : index
    %44 = vector.load %arg7[%c0_45, %c0_46] : memref<2x4xf32, #tpu.memory_space<vmem>>, vector<2x4xf32>
    %c0_47 = arith.constant 0 : index
    %c0_48 = arith.constant 0 : index
    %45 = vector.load %arg8[%c0_47, %c0_48] : memref<2x1xf32, #tpu.memory_space<vmem>>, vector<2x1xf32>
    %cst_49 = arith.constant dense<0.000000e+00> : vector<2x256xf32>
    %46 = tpu.matmul %44, %1, %cst_49 {dimension_numbers = #tpu.dot_dimension_numbers<[1], [0], [0], [1], [0, 0, 1, 1], [], []>} : vector<2x4xf32>, vector<4x256xf32>, vector<2x256xf32> -> vector<2x256xf32>
    %47 = vector.broadcast %45 : vector<2x1xf32> to vector<2x256xf32>
    %48 = arith.addf %46, %47 : vector<2x256xf32>
    %cst_50 = arith.constant dense<0.000000e+00> : vector<2x256xf32>
    %49 = tpu.matmul %44, %3, %cst_50 {dimension_numbers = #tpu.dot_dimension_numbers<[1], [0], [0], [1], [0, 0, 1, 1], [], []>} : vector<2x4xf32>, vector<4x256xf32>, vector<2x256xf32> -> vector<2x256xf32>
    %50 = vector.broadcast %45 : vector<2x1xf32> to vector<2x256xf32>
    %51 = arith.addf %49, %50 : vector<2x256xf32>
    %cst_51 = arith.constant dense<0.000000e+00> : vector<256x64xf32>
    %52 = tpu.matmul %48, %43, %cst_51 {dimension_numbers = #tpu.dot_dimension_numbers<[0], [0], [1], [1], [0, 1, 1, 1], [], []>} : vector<2x256xf32>, vector<2x64xf32>, vector<256x64xf32> -> vector<256x64xf32>
    %cst_52 = arith.constant dense<0xFF800000> : vector<256xf32>
    %53 = vector.multi_reduction <maximumf>, %52, %cst_52 [1] : vector<256x64xf32> to vector<256xf32>
    %54 = vector.shape_cast %53 : vector<256xf32> to vector<256x1xf32>
    %55 = vector.broadcast %54 : vector<256x1xf32> to vector<256x64xf32>
    %56 = arith.subf %52, %55 : vector<256x64xf32>
    %57 = math.exp %56 : vector<256x64xf32>
    %cst_53 = arith.constant dense<0.000000e+00> : vector<256xf32>
    %58 = vector.multi_reduction <add>, %57, %cst_53 [1] : vector<256x64xf32> to vector<256xf32>
    %59 = vector.shape_cast %58 : vector<256xf32> to vector<256x1xf32>
    %60 = tpu.reciprocal %59 {approx = true} : vector<256x1xf32> -> vector<256x1xf32>
    %61 = vector.broadcast %60 : vector<256x1xf32> to vector<256x64xf32>
    %62 = arith.mulf %57, %61 : vector<256x64xf32>
    %cst_54 = arith.constant dense<0.000000e+00> : vector<2x256xf32>
    %63 = tpu.matmul %42, %62, %cst_54 {dimension_numbers = #tpu.dot_dimension_numbers<[1], [1], [0], [0], [0, 0, 1, 0], [], []>} : vector<2x64xf32>, vector<256x64xf32>, vector<2x256xf32> -> vector<2x256xf32>
    %cst_55 = arith.constant dense<0.000000e+00> : vector<256x64xf32>
    %64 = tpu.matmul %51, %41, %cst_55 {dimension_numbers = #tpu.dot_dimension_numbers<[0], [0], [1], [1], [0, 1, 1, 1], [], []>} : vector<2x256xf32>, vector<2x64xf32>, vector<256x64xf32> -> vector<256x64xf32>
    %cst_56 = arith.constant dense<0xFF800000> : vector<256xf32>
    %65 = vector.multi_reduction <maximumf>, %64, %cst_56 [1] : vector<256x64xf32> to vector<256xf32>
    %66 = vector.shape_cast %65 : vector<256xf32> to vector<256x1xf32>
    %67 = vector.broadcast %66 : vector<256x1xf32> to vector<256x64xf32>
    %68 = arith.subf %64, %67 : vector<256x64xf32>
    %69 = math.exp %68 : vector<256x64xf32>
    %cst_57 = arith.constant dense<0.000000e+00> : vector<256xf32>
    %70 = vector.multi_reduction <add>, %69, %cst_57 [1] : vector<256x64xf32> to vector<256xf32>
    %71 = vector.shape_cast %70 : vector<256xf32> to vector<256x1xf32>
    %72 = tpu.reciprocal %71 {approx = true} : vector<256x1xf32> -> vector<256x1xf32>
    %73 = vector.broadcast %72 : vector<256x1xf32> to vector<256x64xf32>
    %74 = arith.mulf %69, %73 : vector<256x64xf32>
    %cst_58 = arith.constant dense<0.000000e+00> : vector<2x256xf32>
    %75 = tpu.matmul %40, %74, %cst_58 {dimension_numbers = #tpu.dot_dimension_numbers<[1], [1], [0], [0], [0, 0, 1, 0], [], []>} : vector<2x64xf32>, vector<256x64xf32>, vector<2x256xf32> -> vector<2x256xf32>
    %c0_59 = arith.constant 0 : index
    %c0_60 = arith.constant 0 : index
    %76 = vector.load %arg9[%c0_59, %c0_60] : memref<4x2xf32, #tpu.memory_space<vmem>>, vector<4x2xf32>
    %c0_61 = arith.constant 0 : index
    %c0_62 = arith.constant 0 : index
    %77 = vector.load %arg10[%c0_61, %c0_62] : memref<4x1xf32, #tpu.memory_space<vmem>>, vector<4x1xf32>
    %cst_63 = arith.constant dense<0.000000e+00> : vector<4x256xf32>
    %78 = tpu.matmul %76, %75, %cst_63 {dimension_numbers = #tpu.dot_dimension_numbers<[1], [0], [0], [1], [0, 0, 1, 1], [], []>} : vector<4x2xf32>, vector<2x256xf32>, vector<4x256xf32> -> vector<4x256xf32>
    %79 = vector.broadcast %77 : vector<4x1xf32> to vector<4x256xf32>
    %80 = arith.addf %78, %79 : vector<4x256xf32>
    %81 = arith.addf %80, %1 : vector<4x256xf32>
    %cst_64 = arith.constant dense<0.000000e+00> : vector<4x256xf32>
    %82 = tpu.matmul %76, %63, %cst_64 {dimension_numbers = #tpu.dot_dimension_numbers<[1], [0], [0], [1], [0, 0, 1, 1], [], []>} : vector<4x2xf32>, vector<2x256xf32>, vector<4x256xf32> -> vector<4x256xf32>
    %83 = vector.broadcast %77 : vector<4x1xf32> to vector<4x256xf32>
    %84 = arith.addf %82, %83 : vector<4x256xf32>
    %85 = arith.addf %84, %3 : vector<4x256xf32>
    %c0_65 = arith.constant 0 : index
    %c0_66 = arith.constant 0 : index
    %86 = vector.load %arg11[%c0_65, %c0_66] : memref<4x4xf32, #tpu.memory_space<vmem>>, vector<4x4xf32>
    %c0_67 = arith.constant 0 : index
    %c0_68 = arith.constant 0 : index
    %87 = vector.load %arg12[%c0_67, %c0_68] : memref<4x1xf32, #tpu.memory_space<vmem>>, vector<4x1xf32>
    %cst_69 = arith.constant dense<0.000000e+00> : vector<4x256xf32>
    %88 = tpu.matmul %86, %81, %cst_69 {dimension_numbers = #tpu.dot_dimension_numbers<[1], [0], [0], [1], [0, 0, 1, 1], [], []>} : vector<4x4xf32>, vector<4x256xf32>, vector<4x256xf32> -> vector<4x256xf32>
    %89 = vector.broadcast %87 : vector<4x1xf32> to vector<4x256xf32>
    %90 = arith.addf %88, %89 : vector<4x256xf32>
    %91 = vector.extract_strided_slice %90 {offsets = [0, 0], sizes = [2, 256], strides = [1, 1]} : vector<4x256xf32> to vector<2x256xf32>
    %92 = vector.extract_strided_slice %90 {offsets = [2, 0], sizes = [2, 256], strides = [1, 1]} : vector<4x256xf32> to vector<2x256xf32>
    %c0_70 = arith.constant 0 : index
    %c0_71 = arith.constant 0 : index
    %93 = vector.load %arg13[%c0_70, %c0_71] : memref<2x4xf32, #tpu.memory_space<vmem>>, vector<2x4xf32>
    %c0_72 = arith.constant 0 : index
    %c0_73 = arith.constant 0 : index
    %94 = vector.load %arg14[%c0_72, %c0_73] : memref<2x1xf32, #tpu.memory_space<vmem>>, vector<2x1xf32>
    %cst_74 = arith.constant dense<0.000000e+00> : vector<2x256xf32>
    %95 = tpu.matmul %93, %85, %cst_74 {dimension_numbers = #tpu.dot_dimension_numbers<[1], [0], [0], [1], [0, 0, 1, 1], [], []>} : vector<2x4xf32>, vector<4x256xf32>, vector<2x256xf32> -> vector<2x256xf32>
    %96 = vector.broadcast %94 : vector<2x1xf32> to vector<2x256xf32>
    %97 = arith.addf %95, %96 : vector<2x256xf32>
    %cst_75 = arith.constant dense<0.000000e+00> : vector<256x256xf32>
    %98 = tpu.matmul %92, %97, %cst_75 {dimension_numbers = #tpu.dot_dimension_numbers<[0], [0], [1], [1], [0, 1, 1, 1], [], []>} : vector<2x256xf32>, vector<2x256xf32>, vector<256x256xf32> -> vector<256x256xf32>
    %cst_76 = arith.constant dense<0xFF800000> : vector<256xf32>
    %99 = vector.multi_reduction <maximumf>, %98, %cst_76 [1] : vector<256x256xf32> to vector<256xf32>
    %100 = vector.shape_cast %99 : vector<256xf32> to vector<256x1xf32>
    %101 = vector.broadcast %100 : vector<256x1xf32> to vector<256x256xf32>
    %102 = arith.subf %98, %101 : vector<256x256xf32>
    %103 = math.exp %102 : vector<256x256xf32>
    %cst_77 = arith.constant dense<0.000000e+00> : vector<256xf32>
    %104 = vector.multi_reduction <add>, %103, %cst_77 [1] : vector<256x256xf32> to vector<256xf32>
    %105 = vector.shape_cast %104 : vector<256xf32> to vector<256x1xf32>
    %106 = tpu.reciprocal %105 {approx = true} : vector<256x1xf32> -> vector<256x1xf32>
    %107 = vector.broadcast %106 : vector<256x1xf32> to vector<256x256xf32>
    %108 = arith.mulf %103, %107 : vector<256x256xf32>
    %cst_78 = arith.constant dense<0.000000e+00> : vector<2x256xf32>
    %109 = tpu.matmul %91, %108, %cst_78 {dimension_numbers = #tpu.dot_dimension_numbers<[1], [1], [0], [0], [0, 0, 1, 0], [], []>} : vector<2x256xf32>, vector<256x256xf32>, vector<2x256xf32> -> vector<2x256xf32>
    %c0_79 = arith.constant 0 : index
    %c0_80 = arith.constant 0 : index
    %110 = vector.load %arg15[%c0_79, %c0_80] : memref<4x2xf32, #tpu.memory_space<vmem>>, vector<4x2xf32>
    %c0_81 = arith.constant 0 : index
    %c0_82 = arith.constant 0 : index
    %111 = vector.load %arg16[%c0_81, %c0_82] : memref<4x1xf32, #tpu.memory_space<vmem>>, vector<4x1xf32>
    %cst_83 = arith.constant dense<0.000000e+00> : vector<4x256xf32>
    %112 = tpu.matmul %110, %109, %cst_83 {dimension_numbers = #tpu.dot_dimension_numbers<[1], [0], [0], [1], [0, 0, 1, 1], [], []>} : vector<4x2xf32>, vector<2x256xf32>, vector<4x256xf32> -> vector<4x256xf32>
    %113 = vector.broadcast %111 : vector<4x1xf32> to vector<4x256xf32>
    %114 = arith.addf %112, %113 : vector<4x256xf32>
    %115 = arith.addf %114, %85 : vector<4x256xf32>
    %116 = arith.addf %115, %81 : vector<4x256xf32>
    %c0_84 = arith.constant 0 : index
    %c0_85 = arith.constant 0 : index
    %c0_86 = arith.constant 0 : index
    %117 = vector.load %arg17[%c0_84, %c0_85, %c0_86] : memref<1x4x256xf32, #tpu.memory_space<vmem>>, vector<1x4x256xf32>
    %118 = vector.shape_cast %117 : vector<1x4x256xf32> to vector<4x256xf32>
    %119 = vector.shape_cast %116 : vector<4x256xf32> to vector<1x4x256xf32>
    tpu.vector_store %arg17[%c0_84, %c0_85, %c0_86], %119 {strides = array<i32>} : memref<1x4x256xf32, #tpu.memory_space<vmem>>, vector<1x4x256xf32>,
    return
  }
  func.func @transform_0(%arg0: i32) -> (i32, i32, i32) {
    %c0_i32 = arith.constant 0 : i32
    %c0_i32_0 = arith.constant 0 : i32
    %c0_i32_1 = arith.constant 0 : i32
    return %arg0, %c0_i32, %c0_i32_0 : i32, i32, i32
  }
  func.func @transform_1(%arg0: i32) -> (i32, i32, i32) {
    %c0_i32 = arith.constant 0 : i32
    %c0_i32_0 = arith.constant 0 : i32
    %c0_i32_1 = arith.constant 0 : i32
    return %arg0, %c0_i32, %c0_i32_0 : i32, i32, i32
  }
  func.func @transform_2(%arg0: i32) -> (i32, i32, i32, i32) {
    %c0_i32 = arith.constant 0 : i32
    %c0_i32_0 = arith.constant 0 : i32
    %c0_i32_1 = arith.constant 0 : i32
    %c0_i32_2 = arith.constant 0 : i32
    return %arg0, %c0_i32, %c0_i32_0, %c0_i32_1 : i32, i32, i32, i32
  }
  func.func @transform_3(%arg0: i32) -> (i32, i32, i32, i32) {
    %c0_i32 = arith.constant 0 : i32
    %c0_i32_0 = arith.constant 0 : i32
    %c0_i32_1 = arith.constant 0 : i32
    %c0_i32_2 = arith.constant 0 : i32
    return %arg0, %c0_i32, %c0_i32_0, %c0_i32_1 : i32, i32, i32, i32
  }
  func.func @transform_4(%arg0: i32) -> (i32, i32) {
    %c0_i32 = arith.constant 0 : i32
    %c0_i32_0 = arith.constant 0 : i32
    %c0_i32_1 = arith.constant 0 : i32
    return %c0_i32, %c0_i32_0 : i32, i32
  }
  func.func @transform_5(%arg0: i32) -> (i32, i32) {
    %c0_i32 = arith.constant 0 : i32
    %c0_i32_0 = arith.constant 0 : i32
    %c0_i32_1 = arith.constant 0 : i32
    return %c0_i32, %c0_i32_0 : i32, i32
  }
  func.func @transform_6(%arg0: i32) -> (i32, i32) {
    %c0_i32 = arith.constant 0 : i32
    %c0_i32_0 = arith.constant 0 : i32
    %c0_i32_1 = arith.constant 0 : i32
    return %c0_i32, %c0_i32_0 : i32, i32
  }
  func.func @transform_7(%arg0: i32) -> (i32, i32) {
    %c0_i32 = arith.constant 0 : i32
    %c0_i32_0 = arith.constant 0 : i32
    %c0_i32_1 = arith.constant 0 : i32
    return %c0_i32, %c0_i32_0 : i32, i32
  }
  func.func @transform_8(%arg0: i32) -> (i32, i32) {
    %c0_i32 = arith.constant 0 : i32
    %c0_i32_0 = arith.constant 0 : i32
    %c0_i32_1 = arith.constant 0 : i32
    return %c0_i32, %c0_i32_0 : i32, i32
  }
  func.func @transform_9(%arg0: i32) -> (i32, i32) {
    %c0_i32 = arith.constant 0 : i32
    %c0_i32_0 = arith.constant 0 : i32
    %c0_i32_1 = arith.constant 0 : i32
    return %c0_i32, %c0_i32_0 : i32, i32
  }
  func.func @transform_10(%arg0: i32) -> (i32, i32) {
    %c0_i32 = arith.constant 0 : i32
    %c0_i32_0 = arith.constant 0 : i32
    %c0_i32_1 = arith.constant 0 : i32
    return %c0_i32, %c0_i32_0 : i32, i32
  }
  func.func @transform_11(%arg0: i32) -> (i32, i32) {
    %c0_i32 = arith.constant 0 : i32
    %c0_i32_0 = arith.constant 0 : i32
    %c0_i32_1 = arith.constant 0 : i32
    return %c0_i32, %c0_i32_0 : i32, i32
  }
  func.func @transform_12(%arg0: i32) -> (i32, i32) {
    %c0_i32 = arith.constant 0 : i32
    %c0_i32_0 = arith.constant 0 : i32
    %c0_i32_1 = arith.constant 0 : i32
    return %c0_i32, %c0_i32_0 : i32, i32
  }
  func.func @transform_13(%arg0: i32) -> (i32, i32) {
    %c0_i32 = arith.constant 0 : i32
    %c0_i32_0 = arith.constant 0 : i32
    %c0_i32_1 = arith.constant 0 : i32
    return %c0_i32, %c0_i32_0 : i32, i32
  }
  func.func @transform_14(%arg0: i32) -> (i32, i32) {
    %c0_i32 = arith.constant 0 : i32
    %c0_i32_0 = arith.constant 0 : i32
    %c0_i32_1 = arith.constant 0 : i32
    return %c0_i32, %c0_i32_0 : i32, i32
  }
  func.func @transform_15(%arg0: i32) -> (i32, i32) {
    %c0_i32 = arith.constant 0 : i32
    %c0_i32_0 = arith.constant 0 : i32
    %c0_i32_1 = arith.constant 0 : i32
    return %c0_i32, %c0_i32_0 : i32, i32
  }
  func.func @transform_16(%arg0: i32) -> (i32, i32, i32) {
    %c0_i32 = arith.constant 0 : i32
    %c0_i32_0 = arith.constant 0 : i32
    %c0_i32_1 = arith.constant 0 : i32
    return %arg0, %c0_i32, %c0_i32_0 : i32, i32, i32
  }
}

</mosaic_0001>

<bundles_post_ra>
// kernel: tpu_custom_call.1
= control target key start
LH: loop header
LB: loop body
LE: loop exit
PB: predicated region body
PF: predicated region fallthrough
CT: control target
= control target key end

     0   :  { %s8118_s0 = inlined_call_operand.hbm [shape: f32[2,4,256], index: 0, kind: input, shape index: {}]   ;;  %s8119_s1 = inlined_call_operand.hbm [shape: f32[2,4,256], index: 1, kind: input, shape index: {}]   ;;  %s8120_s2 = inlined_call_operand.vmem [shape: f32[2,4,4,64], index: 2, kind: input, shape index: {}]   ;;  %s8121_s3 = inlined_call_operand.hbm [shape: f32[2,4,4,64], index: 3, kind: input, shape index: {}]   ;;  %s8122_s4 = inlined_call_operand.vmem [shape: f32[4,4], index: 4, kind: input, shape index: {}]   ;;  %s8123_s5 = inlined_call_operand.vmem [shape: f32[4,1], index: 5, kind: input, shape index: {}]   ;;  %s8124_s6 = inlined_call_operand.vmem [shape: f32[2,4], index: 6, kind: input, shape index: {}]   ;;  %s8125_s7 = inlined_call_operand.vmem [shape: f32[2,1], index: 7, kind: input, shape index: {}]   ;;  %s8126_s8 = inlined_call_operand.vmem [shape: f32[4,2], index: 8, kind: input, shape index: {}]   ;;  %s8127_s9 = inlined_call_operand.vmem [shape: f32[4,1], index: 9, kind: input, shape index: {}]   ;;  %s8128_s10 = inlined_call_operand.vmem [shape: f32[4,4], index: 10, kind: input, shape index: {}]   ;;  %s8129_s11 = inlined_call_operand.vmem [shape: f32[4,1], index: 11, kind: input, shape index: {}]   ;;  %s8130_s12 = inlined_call_operand.vmem [shape: f32[2,4], index: 12, kind: input, shape index: {}]   ;;  %s8131_s13 = inlined_call_operand.vmem [shape: f32[2,1], index: 13, kind: input, shape index: {}]   ;;  %s8132_s14 = inlined_call_operand.vmem [shape: f32[4,2], index: 14, kind: input, shape index: {}]   ;;  %s8133_s15 = inlined_call_operand.vmem [shape: f32[4,1], index: 15, kind: input, shape index: {}]   ;;  %s8134_s16 = inlined_call_operand.hbm [shape: f32[2,4,256], index: 16, kind: output, shape index: {}]  }
   0x1   :  { %8223 = sst [smem:[#allocation47_spill]] %s8118_s0 }
   0x2   :  { %8224 = sst [smem:[#allocation48_spill]] %s8119_s1 }
   0x3   :  { %8225 = sst [smem:[#allocation49_spill]] %s8128_s10 }
   0x4   :  { %8226 = sst [smem:[#allocation50_spill]] %s8129_s11 }
   0x5   :  { %8227 = sst [smem:[#allocation51_spill]] %s8130_s12 }
   0x6   :  { %8228 = sst [smem:[#allocation52_spill]] %s8131_s13 }
   0x7   :  { %8229 = sst [smem:[#allocation53_spill]] %s8132_s14 }
   0x8   :  { %8230 = sst [smem:[#allocation54_spill]] %s8133_s15 }
   0x9   :  { %8231 = sst [smem:[#allocation55_spill]] %s8134_s16 }
   0xa   :  { %21 = vsyncpa [#allocation3], 0 }
   0xb   :  { %23 = vsyncpa [#allocation3 + $0x1], 0 }
   0xc   :  { %24 = vsyncpa [#allocation6], 0 }
   0xd   :  { %26 = vsyncpa [#allocation6 + $0x1], 0 }
   0xe   :  { %27 = vsyncpa [#allocation4], 0 }
   0xf   :  { %29 = vsyncpa [#allocation4 + $0x1], 0  ;;  %s6259_s21 = smov 0   ;;  %s6261_s22 = smov 0  }
  0x10   :  { %s6263_s23 = smov 0   ;;  %s6265_s24 = smov 0  }
  0x11 LB: > { %8232 = sst [smem:[#allocation12_spill]] %s6151_s21  ;;  %s6280_s25 = sadd.s32 4294967295, %s6163_s24   ;;  %s6163_s24 = sphi %s6265_s24, %s8418_s24   ;;  %s6159_s23 = sphi %s6263_s23, %s8420_s23   ;;  %s6155_s22 = sphi %s6261_s22, %s8422_s22   ;;  %s6151_s21 = sphi %s6259_s21, %s8421_s21  }
  0x12   : > { %8233 = sst [smem:[#allocation13_spill]] %s6159_s23  ;;  %s4800_s26 = sadd.s32 4294967294, %s6163_s24  }
  0x13   : > { %s6284_s27 = sadd.s32 1, %s6163_s24   ;;  %s42_s28 = sadd.s32 1, %s6159_s23 }
  0x14   : > { %8234 = sst [smem:[#allocation14_spill]] %s6284_s27  ;;  %s39_s29 = ssub.s32 %s6163_s24, %s6284_s27 }
  0x15   : > { %p49_p0 = scmp.ne.s32.totalorder %s6159_s23, %s6155_s22  ;;  %p40_p1 = scmp.eq.s32.totalorder %s39_s29, 0 }
  0x16   : > { %p50_p2 = scmp.eq.s32.totalorder %s6163_s24, 0  ;;  %p55_p3 = scmp.ne.s32.totalorder %s6155_s22, %s6151_s21 }
  0x17   : > { %p56_p4 = scmp.eq.s32.totalorder %s6280_s25, 0  ;;  %p409_p7 = scmp.eq.s32.totalorder %s6280_s25, 1 }
  0x18   : > { %s6296_s30 = scalar_select %p40_p1, %s6159_s23, %s42_s28  }
  0x19   : > { %p51_p5 = por %p50_p2, %p49_p0  ;;  %p6298_p6 = por %p56_p4, %p55_p3 }
  0x1a   : > { %8235 = sst [smem:[#allocation15_spill]] %s6296_s30  ;;  %p415_p8 = scmp.eq.s32.totalorder %s4800_s26, 1 }
  0x1b   : > { %s8236_s0 = scalar_select %p6298_p6, 1, 0 }
  0x1c   : > { %p5510_p10 = scmp.lt.s32.totalorder %s6163_s24, 2  ;;  %p6305_p11 = por %p409_p7, %p49_p0 }
  0x1d   : > { %p6309_p12 = por %p415_p8, %p55_p3  ;;  %s6314_s19 = sand.u32 1, %s6159_s23  }
  0x1e   : > { %s8237_s17 = scalar_select %p6305_p11, 1, 0 }
  0x1f   : > { %s8239_s18 = scalar_select %p6309_p12, 1, 0 }
  0x20   : > { %8238 = sst [smem:[#allocation16_spill]] %s8237_s17  ;;  %s8145_s20 = sshll.u32 %s6163_s24, 7 }
  0x21   : > { %8240 = sst [smem:[#allocation17_spill]] %s8239_s18  ;;  %s8144_s28 = sshll.u32 %s6314_s19, 3 }
  0x22   : > { %p6318_p13 = pnand %p5510_p10, %p51_p5  ;;  %s490_s26 = sand.u32 1, %s6163_s24  }
  0x23   : > { %s8242_s1 = sld [smem:[#allocation48_spill]]  ;;  %s494_s23 = scalar_lea.vmem [#allocation5], %s8144_s28 }
  0x24   : > { %s502_s18 = sshll.u32 %s494_s23, 4  ;;  %s4809_s16 = sshll.u32 %s6314_s19, 4  ;;  %s6332_s18 = int_to_ptr.vmem [resolvable:$true] %s502_s18 }
  0x25   : > { %s6335_s17 = scalar_lea.sflag [#allocation6], %s490_s26  ;;  %p6341_p1 = pneg %p6318_p13 }
  0x29   : > { %s6328_s21 = scalar_lea.hbm %s8242_s1, %s8145_s20  ;;  %s6008_s23 = scalar_lea.hbm %s8242_s1, 256 }
  0x2a   : > { %s6003_s14 = scalar_lea.hbm %s6328_s21, 128  ;;  %p6009_p4 = scmp.lt.u32.totalorder %s6328_s21, %s8242_s1 }
  0x2b   : > { %p6004_p0 = scmp.ne.s32.totalorder %s6328_s21, %s6003_s14  ;;  %p6010_p5 = scmp.lt.u32.totalorder %s6008_s23, %s6003_s14 }
  0x2c   : > { %p6012_p8 = scmp.lt.u32.totalorder %s6003_s14, %s6328_s21 }
  0x2d   : > { %p6006_p2 = pnand %p6341_p1, %p6004_p0  ;;  %p6011_p7 = por %p6010_p5, %p6009_p4 }
  0x2f   : > { %p6007_p3 = pneg %p6006_p2  ;;  %p6013_p10 = por %p6012_p8, %p6011_p7 }
  0x31   : > { %p6014_p9 = pnand %p6013_p10, %p6007_p3 }
  0x33   : > { %6017 = shalt.err (!%p6014_p9)
}
  0x34   : > { %s6018_s26 = scalar_lea.vmem %s6332_s18, 128  ;;  %s6165_s27 = smov [#allocation5]  }
  0x35   : > { %p6019_p0 = scmp.ne.s32.totalorder %s6332_s18, %s6018_s26  ;;  %s6023_s30 = sshll.u32 %s6165_s27, 4  ;;  %s6024_s30 = int_to_ptr.vmem [resolvable:$false] %s6023_s30 }
  0x36   : > { %s6025_s20 = scalar_lea.vmem %s6024_s30, 256  ;;  %p6026_p11 = scmp.lt.s32.totalorder %s6332_s18, %s6024_s30 }
  0x37   : > { %p6021_p2 = pnand %p6019_p0, %p6341_p1  ;;  %p6027_p6 = scmp.lt.s32.totalorder %s6025_s20, %s6018_s26 }
  0x39   : > { %p6022_p12 = pneg %p6021_p2  ;;  %p6028_p4 = por %p6027_p6, %p6026_p11 }
  0x3b   : > { %p6029_p5 = pnand %p6028_p4, %p6022_p12 }
  0x3d   : > { %6032 = shalt.err (!%p6029_p5)
}
  0x3e   : > { %5502 = dma.hbm_to_vmem [thread:$0]  (!%p6318_p13), %s6328_s21, 128, %s6332_s18, %s6335_s17  }
  0x3f   : > { %p4812_p9 = scmp.ge.s32.totalorder %s6163_s24, 1  ;;  %s521_s14 = scalar_lea.vmem [#allocation7], %s4809_s16 }
  0x40   : > { %s528_s28 = sshll.u32 %s521_s14, 4  ;;  %p536_p6 = scmp.lt.s32.totalorder %s6163_s24, 3  ;;  %s6369_s28 = int_to_ptr.vmem [resolvable:$true] %s528_s28 }
  0x41   : > { %s8245_s26 = sshll.u32 %s6163_s24, 7  ;;  %s8246_s20 = sld [smem:[#allocation47_spill]] }
  0x42   : > { %p6371_p11 = pnand %p4812_p9, %p536_p6  ;;  %s8247_s10 = sshll.u32 %s6314_s19, 3 }
  0x43   : > { %s475_s16 = scalar_lea.vmem [#allocation2], %s8247_s10  ;;  %s5035_s18 = sshll.u32 %s6163_s24, 8 }
  0x44   : > { %s8244_s23 = scalar_select %p6371_p11, 1, 0 }
  0x45   : > { %s483_s21 = sshll.u32 %s475_s16, 4  ;;  %s472_s14 = scalar_lea.sflag [#allocation3], %s6314_s19  ;;  %s6384_s21 = int_to_ptr.vmem [resolvable:$true] %s483_s21 }
  0x47   : > { %s6380_s1 = scalar_lea.hbm %s8246_s20, %s8245_s26  ;;  %s6038_s26 = scalar_lea.hbm %s8246_s20, 256 }
  0x48   : > { %s6033_s13 = scalar_lea.hbm %s6380_s1, 128  ;;  %p6039_p8 = scmp.lt.u32.totalorder %s6380_s1, %s8246_s20 }
  0x49   : > { %p6034_p12 = scmp.ne.s32.totalorder %s6380_s1, %s6033_s13  ;;  %p6040_p10 = scmp.lt.u32.totalorder %s6038_s26, %s6033_s13 }
  0x4a   : > { %p6042_p2 = scmp.lt.u32.totalorder %s6033_s13, %s6380_s1 }
  0x4b   : > { %p6036_p3 = pnand %p6034_p12, %p6341_p1  ;;  %p6041_p0 = por %p6040_p10, %p6039_p8 }
  0x4d   : > { %p6037_p7 = pneg %p6036_p3  ;;  %p6043_p4 = por %p6042_p2, %p6041_p0 }
  0x4f   : > { %p6044_p5 = pnand %p6043_p4, %p6037_p7 }
  0x51   : > { %6047 = shalt.err (!%p6044_p5)
}
  0x52   : > { %s6048_s10 = scalar_lea.vmem %s6384_s21, 128  ;;  %s6166_s11 = smov [#allocation2]  }
  0x53   : > { %p6049_p9 = scmp.ne.s32.totalorder %s6384_s21, %s6048_s10  ;;  %s6053_s19 = sshll.u32 %s6166_s11, 4  ;;  %s6054_s19 = int_to_ptr.vmem [resolvable:$false] %s6053_s19 }
  0x54   : > { %s6055_s12 = scalar_lea.vmem %s6054_s19, 256  ;;  %p6056_p3 = scmp.lt.s32.totalorder %s6384_s21, %s6054_s19 }
  0x55   : > { %p6051_p6 = pnand %p6049_p9, %p6341_p1  ;;  %p6057_p11 = scmp.lt.s32.totalorder %s6055_s12, %s6048_s10 }
  0x57   : > { %p6052_p12 = pneg %p6051_p6  ;;  %p6058_p8 = por %p6057_p11, %p6056_p3 }
  0x59   : > { %p6059_p10 = pnand %p6058_p8, %p6052_p12 }
  0x5b   : > { %6062 = shalt.err (!%p6059_p10)
}
  0x5c   : > { %5499 = dma.hbm_to_vmem [thread:$0]  (!%p6318_p13), %s6380_s1, 128, %s6384_s21, %s472_s14  }
  0x5d   : > { %s6414_s27 = scalar_lea.hbm %s8121_s3, %s5035_s18  ;;  %s6068_s11 = scalar_lea.hbm %s8121_s3, 512 }
  0x5e   : > { %s6063_s26 = scalar_lea.hbm %s6414_s27, 256  ;;  %p6069_p2 = scmp.lt.u32.totalorder %s6414_s27, %s8121_s3 }
  0x5f   : > { %p6064_p11 = scmp.ne.s32.totalorder %s6414_s27, %s6063_s26  ;;  %p6070_p4 = scmp.lt.u32.totalorder %s6068_s11, %s6063_s26 }
  0x60   : > { %p6072_p9 = scmp.lt.u32.totalorder %s6063_s26, %s6414_s27 }
  0x61   : > { %p6066_p7 = pnand %p6064_p11, %p6341_p1  ;;  %p6071_p5 = por %p6070_p4, %p6069_p2 }
  0x63   : > { %p6067_p0 = pneg %p6066_p7  ;;  %p6073_p6 = por %p6072_p9, %p6071_p5 }
  0x65   : > { %p6074_p12 = pnand %p6073_p6, %p6067_p0 }
  0x67   : > { %6077 = shalt.err (!%p6074_p12)
}
  0x68   : > { %s6078_s18 = scalar_lea.vmem %s6369_s28, 256  ;;  %s6167_s14 = smov [#allocation7]  }
  0x69   : > { %p6079_p3 = scmp.ne.s32.totalorder %s6369_s28, %s6078_s18  ;;  %s6083_s19 = sshll.u32 %s6167_s14, 4  ;;  %s6084_s19 = int_to_ptr.vmem [resolvable:$false] %s6083_s19 }
  0x6a   : > { %s6085_s12 = scalar_lea.vmem %s6084_s19, 512  ;;  %p6086_p11 = scmp.lt.s32.totalorder %s6369_s28, %s6084_s19 }
  0x6b   : > { %p6081_p8 = pnand %p6079_p3, %p6341_p1  ;;  %p6087_p7 = scmp.lt.s32.totalorder %s6085_s12, %s6078_s18 }
  0x6d   : > { %p6082_p10 = pneg %p6081_p8  ;;  %p6088_p2 = por %p6087_p7, %p6086_p11 }
  0x6f   : > { %p6089_p4 = pnand %p6088_p2, %p6082_p10 }
  0x71   : > { %6092 = shalt.err (!%p6089_p4)
}
  0x72   : > { %s6168_s13 = smov 64   ;;  %s6169_s16 = smov 4  }
  0x73   : > { %5505 = dma.hbm_to_vmem [thread:$0]  (!%p6318_p13), %s6414_s27, 256, %s6369_s28, %s6335_s17, %s6168_s13, %s6168_s13, %s6169_s16  }
  0x74   : > { %p8248_p1 = scmp.ne.s32.totalorder %s8244_s23, 0 }
  0x76   : > { %540 = sbr.rel (%p8248_p1) target bundleno = 3262 (0xcbe), region = 84 }
  0x7d   : > { %s6441_s15 = sand.u32 1, %s6155_s22   ;;  %p8249_p0 = scmp.ne.s32.totalorder %s8236_s0, 0 }
  0x7e   : > { %s6444_s26 = sshll.u32 %s6441_s15, 3  ;;  %s543_s30 = scalar_lea.sflag [#allocation3], %s6441_s15 }
  0x7f   : > { %s546_s10 = scalar_lea.vmem [#allocation2], %s6444_s26 }
  0x80   : > { %6138 = dma.done.wait (%p8249_p0), %s543_s30, 128  }
  0x81   : > { %6140 = vsyncadd (%p8249_p0), %s543_s30, 4294967168  ;;  %s551_s17 = sand.u32 1, %s6280_s25   ;;  %s555_s28 = scalar_lea.vmem [#allocation5], %s6444_s26 }
  0x82   : > { %s552_s29 = scalar_lea.sflag [#allocation6], %s551_s17 }
  0x83   : > { %6142 = dma.done.wait (%p8249_p0), %s552_s29, 384  }
  0x84   : > { %6144 = vsyncadd (%p8249_p0), %s552_s29, 4294966912  ;;  %p628_p13 = scmp.lt.s32.totalorder %s6280_s25, 1  ;;  %v8148_v0 = vmov 0.0   ;;  %vm6171_vm0 = vmmov 0   ;;  %v6172_v1 = vmov 0   ;;  %vm642_vm1 = vcmask 1043456  }
  0x85   : > { %5188 = vmatprep.subr.mxu0 %v8148_v0  ;;  %5193 = vmatprep.subr.mxu1 %v8148_v0  ;;  %vm638_vm2 = vcmask 31744   ;;  %s4815_s21 = sshll.u32 %s6441_s15, 4  ;;  %v635_v4 = vld [vmem:[%s8122_s4] sm:$0xf]  ;;  %v634_v10 = vld [vmem:[%s555_s28] sm:$0xff]  ;;  %vm1808_vm3 = vcmask 523264  }
  0x86   : > { %s629_s23 = scalar_select %p628_p13, %s6280_s25, 1  ;;  %5190 = vmatprep.mubr.msk.f32.mxu0 %vm6171_vm0, %v8148_v0  ;;  %5195 = vmatprep.mubr.msk.f32.mxu1 %vm6171_vm0, %v8148_v0  ;;  %v633_v9 = vld [vmem:[%s546_s10] sm:$0xff]  ;;  %v6506_v14 = vcombine.high %v634_v10, %v634_v10  ;;  %vm1580_vm4 = vcmask 1041408   ;;  %vm1483_vm5 = vcmask 15360   ;;  %vm7235_vm6 = vmpackc.low %vm1808_vm3, %vm1808_vm3 }
  0x87   : > { %5549 = vset.pattern.permute.xlu0 %v6172_v1  ;;  %s564_s19 = scalar_lea.vmem [#allocation7], %s4815_s21  ;;  %v6504_v13 = vcombine.high %v633_v9, %v633_v9  ;;  %v1253_v15 = vld [vmem:[%s8124_s6] sm:$0x3]  ;;  %s8334_s18 = sld [smem:[#allocation51_spill]] }
  0x88   : > { %s5036_s0 = sshll.u32 %s629_s23, 4  ;;  %v950_v7 = vld [vmem:[%s564_s19] sm:$0xf]  ;;  %v4832_v8 = vld [vmem:[%s564_s19 + $0x4] sm:$0xf]  ;;  %8251 = vst [vmem:[#allocation19_spill] sm:$0xff] %v6506_v14 }
  0x89   : > { %s632_s1 = scalar_lea.vmem %s8120_s2, %s5036_s0  ;;  %v4835_v11 = vld [vmem:[%s564_s19 + $0x8] sm:$0xf]  ;;  %v4838_v12 = vld [vmem:[%s564_s19 + $0xc] sm:$0xf]  ;;  %8250 = vst [vmem:[#allocation18_spill] sm:$0xff] %v6504_v13  ;;  %s8335_s12 = sld [smem:[#allocation50_spill]] }
  0x8a   : > { %v637_v2 = vld [vmem:[%s632_s1] sm:$0xf]  ;;  %v4821_v3 = vld [vmem:[%s632_s1 + $0x4] sm:$0xf]  ;;  %v4824_v5 = vld [vmem:[%s632_s1 + $0x8] sm:$0xf] }
  0x8b   : > { %5189 = vmatpush3.msk.msra.mxu0 %vm642_vm1, %v637_v2  ;;  %5194 = vmatpush3.msk.msra.mxu1 %vm642_vm1, %v4821_v3  ;;  %v4827_v6 = vld [vmem:[%s632_s1 + $0xc] sm:$0xf]  ;;  %v1254_v16 = vld [vmem:[%s8125_s7] sm:$0x3]  ;;  %s8336_s16 = sld [smem:[#allocation52_spill]]  ;;  %s8340_s29 = sld [smem:[#allocation49_spill]] }
  0x8c   : > { %5191 = vmatmul.mubr.msk.f32.vlgmr.msra.gmra.mrb[0].mxu0 %vm638_vm2, %v635_v4  ;;  %5196 = vmatmul.mubr.msk.f32.vlgmr.msra.gmra.mrb[0].mxu1 %vm638_vm2, %v635_v4  ;;  %v636_v17 = vld [vmem:[%s8123_s5] sm:$0xf]  ;;  %s8390_s0 = sld [smem:[#allocation54_spill]]  ;;  %s8406_s1 = sld [smem:[#allocation53_spill]] }
  0x8d   : > { %5198 = vmatprep.subr.mxu0 %v8148_v0  ;;  %5203 = vmatprep.subr.mxu1 %v8148_v0  ;;  %s8407_s21 = sld [smem:[#allocation16_spill]]  ;;  %s627_s14 = scalar_lea.vmem [#allocation8], %s6444_s26 }
  0x8e   : > { %5199 = vmatpush3.msk.msra.mxu0 %vm642_vm1, %v4824_v5  ;;  %5200 = vmatprep.mubr.msk.f32.mxu0 %vm6171_vm0, %v8148_v0  ;;  %s4675_s19 = sshll.u32 %s627_s14, 4  ;;  %s8412_s13 = sld [smem:[#allocation55_spill]]  ;;  %s8076_s19 = int_to_ptr.vmem [resolvable:$true] %s4675_s19 }
  0x8f   : > { %5204 = vmatpush3.msk.msra.mxu1 %vm642_vm1, %v4827_v6  ;;  %5205 = vmatprep.mubr.msk.f32.mxu1 %vm6171_vm0, %v8148_v0  ;;  %s4661_s30 = scalar_lea.sflag [#allocation4], %s6441_s15  ;;  %s6093_s17 = scalar_lea.vmem %s8076_s19, 128 }
  0x90   : > { %5201 = vmatmul.mubr.msk.f32.vlgmr.msra.gmra.mrb[2].mxu0 %vm638_vm2, %v635_v4  ;;  %5206 = vmatmul.mubr.msk.f32.vlgmr.msra.gmra.mrb[2].mxu1 %vm638_vm2, %v635_v4  ;;  %p6094_p5 = scmp.ne.s32.totalorder %s8076_s19, %s6093_s17 }
  0x91   : > { %5208 = vmatprep.subr.mxu0 %v8148_v0  ;;  %5213 = vmatprep.subr.mxu1 %v8148_v0 }
  0x92   : > { %5209 = vmatpush3.msk.msra.mxu0 %vm642_vm1, %v950_v7  ;;  %5210 = vmatprep.mubr.msk.f32.mxu0 %vm6171_vm0, %v8148_v0 }
  0x93   : > { %5214 = vmatpush3.msk.msra.mxu1 %vm642_vm1, %v4832_v8  ;;  %5215 = vmatprep.mubr.msk.f32.mxu1 %vm6171_vm0, %v8148_v0  ;;  %p8413_p9 = scmp.ne.s32.totalorder %s8407_s21, 0 }
  0x94   : > { %5211 = vmatmul.mubr.msk.f32.vlgmr.msra.gmra.mrb[4].mxu0 %vm638_vm2, %v635_v4  ;;  %5216 = vmatmul.mubr.msk.f32.vlgmr.msra.gmra.mrb[4].mxu1 %vm638_vm2, %v635_v4 }
  0x95   : > { %5218 = vmatprep.subr.mxu0 %v8148_v0  ;;  %5223 = vmatprep.subr.mxu1 %v8148_v0  ;;  %p6095_p6 = pnand %p6094_p5, %p8413_p9 }
  0x96   : > { %5219 = vmatpush3.msk.msra.mxu0 %vm642_vm1, %v4835_v11  ;;  %5220 = vmatprep.mubr.msk.f32.mxu0 %vm6171_vm0, %v8148_v0 }
  0x97   : > { %5224 = vmatpush3.msk.msra.mxu1 %vm642_vm1, %v4838_v12  ;;  %5225 = vmatprep.mubr.msk.f32.mxu1 %vm6171_vm0, %v8148_v0  ;;  %p6096_p12 = pneg %p6095_p6 }
  0x98   : > { %5221 = vmatmul.mubr.msk.f32.vlgmr.msra.gmra.mrb[6].mxu0 %vm638_vm2, %v635_v4  ;;  %5226 = vmatmul.mubr.msk.f32.vlgmr.msra.gmra.mrb[6].mxu1 %vm638_vm2, %v635_v4 }
  0x99   : > { %4841 = vmatprep.subr.msk.mxu0 %vm642_vm1, %v6504_v13  ;;  %4844 = vmatprep.subr.msk.mxu1 %vm642_vm1, %v6506_v14 }
  0x9a   : > { %4842 = vmatpush1.msk.msra.mxu0 %vm642_vm1, %v633_v9  ;;  %1333 = vmatprep.mubr.f32.mxu0 %v8148_v0 }
  0x9b   : > { %4845 = vmatpush1.msk.msra.mxu1 %vm642_vm1, %v634_v10  ;;  %1410 = vmatprep.mubr.f32.mxu1 %v8148_v0 }
  0x9c   : > { %4843 = vmatmul.mubr.msk.f32.vlgmr.msra.gmra.mrb[8].mxu0 %vm638_vm2, %v1253_v15  ;;  %4846 = vmatmul.mubr.msk.f32.vlgmr.msra.gmra.mrb[8].mxu1 %vm638_vm2, %v1253_v15 }
  0x9d   : > { %1257 = vperm.xlu0 %5549, %v1254_v16  }
  0xa1   : > { %946 = vperm.xlu0 %5549, %v636_v17  }
 0x11c   : > { %v1258_v28 = vpop.permute.xlu0 %1257 }
 0x120   : > { %v947_v40 = vpop.permute.xlu0 %946 }
 0x15f   : > { %v712_v18 = vpop.f32.mrb[0].mxu0  ;;  %v787_v19 = vpop.f32.mrb[0].mxu1 }
 0x160   : > { %v791_v20 = vmax.f32 %v712_v18, %v787_v19  ;;  %v5192_v21 = vpop.f32.mrb[1].mxu0  ;;  %v5197_v22 = vpop.f32.mrb[1].mxu1 }
 0x163   : > { %v863_v23 = vpop.f32.mrb[2].mxu0  ;;  %v939_v24 = vpop.f32.mrb[2].mxu1 }
 0x164   : > { %v867_v25 = vmax.f32 %v791_v20, %v863_v23  ;;  %v5202_v26 = vpop.f32.mrb[3].mxu0  ;;  %v5207_v27 = vpop.f32.mrb[3].mxu1 }
 0x166   : > { %v943_v29 = vmax.f32 %v867_v25, %v939_v24 }
 0x167   : > { %v1020_v30 = vpop.f32.mrb[4].mxu0  ;;  %v1095_v31 = vpop.f32.mrb[4].mxu1 }
 0x168   : > { %v1099_v32 = vmax.f32 %v1020_v30, %v1095_v31  ;;  %v5212_v33 = vpop.f32.mrb[5].mxu0  ;;  %v5217_v34 = vpop.f32.mrb[5].mxu1  ;;  %v6535_v44 = vadd.f32 %v947_v40, %v943_v29 }
 0x16a   : > { %8252 = vst [vmem:[#allocation20_spill] sm:$0xff] %v6535_v44  ;;  %v2395_v51 = vrot.slane %v6535_v44, 2 }
 0x16b   : > { %v1171_v35 = vpop.f32.mrb[6].mxu0  ;;  %v1247_v36 = vpop.f32.mrb[6].mxu1 }
 0x16c   : > { %v1175_v37 = vmax.f32 %v1099_v32, %v1171_v35  ;;  %v5222_v38 = vpop.f32.mrb[7].mxu0  ;;  %v5227_v39 = vpop.f32.mrb[7].mxu1 }
 0x16e   : > { %v1251_v41 = vmax.f32 %v1175_v37, %v1247_v36 }
 0x16f   : > { %v1335_v42 = vpop.f32.mrb[8].mxu0  ;;  %v1412_v43 = vpop.f32.mrb[8].mxu1 }
 0x170   : > { %v6537_v45 = vadd.f32 %v1251_v41, %v947_v40  ;;  %v1413_v46 = vadd.f32 %v1412_v43, %v1258_v28  ;;  %v1337_v47 = vpop.f32.mrb[9].mxu0  ;;  %v1414_v48 = vpop.f32.mrb[9].mxu1  ;;  %v1336_v49 = vadd.f32 %v1335_v42, %v1258_v28 }
 0x171   : > { %v1415_v52 = vadd.f32 %v1414_v48, %v1258_v28  ;;  %v1338_v53 = vadd.f32 %v1337_v47, %v1258_v28 }
 0x172   : > { %8253 = vst [vmem:[#allocation21_spill] sm:$0xff] %v6537_v45  ;;  %v1482_v50 = vrot.slane %v6537_v45, 2  ;;  %5119 = vmatprep.mubr.msk.f32.mxu1 %vm1808_vm3, %v6537_v45  ;;  %2330 = vxpose.xlu0.b32.start.end [1/1] (short) %v1413_v46, 128 }
 0x173   : > { %1417 = vxpose.xlu1.b32.start.end [1/1] (short) %v1336_v49, 128 }
 0x174   : > { %5228 = vmatprep.subr.msk.mxu0 %vm1580_vm4, %v1482_v50 }
 0x175   : > { %5229 = vmatpush3.msk.msra.mxu0 %vm1580_vm4, %v1482_v50 }
 0x176   : > { %5278 = vmatprep.subr.msk.mxu0 %vm1580_vm4, %v2395_v51 }
 0x1af   : > { %2362 = vxpose.xlu0.b32.start.end [1/1] (short) %v1415_v52, 128 }
 0x1b0   : > { %1449 = vxpose.xlu1.b32.start.end [1/1] (short) %v1338_v53, 128 }
 0x1ce   : > { %5550 = vset.pattern.permute.xlu1 %v6172_v1 }
 0x1f2   : > { %v6548_v55 = vpop.trf.xlu0 }
 0x1f3   : > { %v1433_v54 = vpop.trf.xlu1 }
 0x1f4   : > { %5230 = vmatprep.mubr.msk.f32.mxu0 %vm1483_vm5, %v1433_v54 }
 0x1f6   : > { %v6552_v58 = vpop.trf.xlu0 }
 0x1f7   : > { %v1434_v56 = vpop.trf.xlu1 }
 0x1f8   : > { %5231 = vmatmul.mubr.msk.f32.vlgmr.msra.gmra.mrb[10].mxu0 %vm1483_vm5, %v1434_v56 }
 0x1f9   : > { %5279 = vmatpush3.msk.msra.mxu0 %vm1580_vm4, %v2395_v51 }
 0x1fa   : > { %v6556_v60 = vpop.trf.xlu0 }
 0x1fb   : > { %v1435_v57 = vpop.trf.xlu1 }
 0x1fc   : > { %5233 = vmatprep.mubr.msk.f32.mxu0 %vm1483_vm5, %v1435_v57 }
 0x1fe   : > { %v6559_v63 = vpop.trf.xlu0 }
 0x1ff   : > { %v1436_v59 = vpop.trf.xlu1 }
 0x200   : > { %5234 = vmatmul.mubr.msk.f32.gmra.mrb[12].mxu0 %vm1483_vm5, %v1436_v59 }
 0x202   : > { %v6563_v2 = vpop.trf.xlu0 }
 0x203   : > { %v1437_v61 = vpop.trf.xlu1 }
 0x204   : > { %5236 = vmatprep.mubr.msk.f32.mxu0 %vm1483_vm5, %v1437_v61 }
 0x206   : > { %v6566_v5 = vpop.trf.xlu0 }
 0x207   : > { %v1438_v62 = vpop.trf.xlu1 }
 0x208   : > { %5237 = vmatmul.mubr.msk.f32.gmra.mrb[14].mxu0 %vm1483_vm5, %v1438_v62 }
 0x20a   : > { %v6570_v7 = vpop.trf.xlu0 }
 0x20b   : > { %v1439_v1 = vpop.trf.xlu1 }
 0x20c   : > { %5239 = vmatprep.mubr.msk.f32.mxu0 %vm1483_vm5, %v1439_v1 }
 0x20e   : > { %v6573_v10 = vpop.trf.xlu0 }
 0x20f   : > { %v1440_v3 = vpop.trf.xlu1 }
 0x210   : > { %5240 = vmatmul.mubr.msk.f32.gmra.mrb[16].mxu0 %vm1483_vm5, %v1440_v3 }
 0x212   : > { %v2354_v12 = vpop.trf.xlu0 }
 0x213   : > { %v1441_v4 = vpop.trf.xlu1 }
 0x214   : > { %5242 = vmatprep.mubr.msk.f32.mxu0 %vm1483_vm5, %v1441_v4 }
 0x216   : > { %v2355_v17 = vpop.trf.xlu0 }
 0x217   : > { %v1442_v6 = vpop.trf.xlu1 }
 0x218   : > { %5243 = vmatmul.mubr.msk.f32.gmra.mrb[18].mxu0 %vm1483_vm5, %v1442_v6 }
 0x21a   : > { %v2356_v19 = vpop.trf.xlu0 }
 0x21b   : > { %v1443_v8 = vpop.trf.xlu1 }
 0x21c   : > { %5245 = vmatprep.mubr.msk.f32.mxu0 %vm1483_vm5, %v1443_v8 }
 0x21e   : > { %v2357_v22 = vpop.trf.xlu0 }
 0x21f   : > { %v1444_v9 = vpop.trf.xlu1 }
 0x220   : > { %5246 = vmatmul.mubr.msk.f32.gmra.mrb[20].mxu0 %vm1483_vm5, %v1444_v9 }
 0x222   : > { %v2358_v24 = vpop.trf.xlu0 }
 0x223   : > { %v1445_v11 = vpop.trf.xlu1 }
 0x224   : > { %5248 = vmatprep.mubr.msk.f32.mxu0 %vm1483_vm5, %v1445_v11 }
 0x226   : > { %v2359_v27 = vpop.trf.xlu0 }
 0x227   : > { %v1446_v15 = vpop.trf.xlu1 }
 0x228   : > { %5249 = vmatmul.mubr.msk.f32.gmra.mrb[22].mxu0 %vm1483_vm5, %v1446_v15 }
 0x22a   : > { %v2360_v29 = vpop.trf.xlu0 }
 0x22b   : > { %v1447_v16 = vpop.trf.xlu1 }
 0x22c   : > { %5251 = vmatprep.mubr.msk.f32.mxu0 %vm1483_vm5, %v1447_v16 }
 0x22e   : > { %v2361_v32 = vpop.trf.xlu0 }
 0x22f   : > { %v1448_v18 = vpop.trf.xlu1 }
 0x230   : > { %5252 = vmatmul.mubr.msk.f32.gmra.mrb[24].mxu0 %vm1483_vm5, %v1448_v18 }
 0x232   : > { %v2378_v34 = vpop.trf.xlu0 }
 0x233   : > { %v1465_v20 = vpop.trf.xlu1 }
 0x234   : > { %5254 = vmatprep.mubr.msk.f32.mxu0 %vm1483_vm5, %v1465_v20 }
 0x236   : > { %v2379_v37 = vpop.trf.xlu0 }
 0x237   : > { %v1466_v21 = vpop.trf.xlu1 }
 0x238   : > { %5255 = vmatmul.mubr.msk.f32.gmra.mrb[26].mxu0 %vm1483_vm5, %v1466_v21 }
 0x23a   : > { %v2380_v39 = vpop.trf.xlu0 }
 0x23b   : > { %v1467_v23 = vpop.trf.xlu1 }
 0x23c   : > { %5257 = vmatprep.mubr.msk.f32.mxu0 %vm1483_vm5, %v1467_v23 }
 0x23e   : > { %v2381_v42 = vpop.trf.xlu0 }
 0x23f   : > { %v1468_v25 = vpop.trf.xlu1 }
 0x240   : > { %5258 = vmatmul.mubr.msk.f32.gmra.mrb[28].mxu0 %vm1483_vm5, %v1468_v25 }
 0x242   : > { %v2382_v46 = vpop.trf.xlu0 }
 0x243   : > { %v1469_v26 = vpop.trf.xlu1 }
 0x244   : > { %5260 = vmatprep.mubr.msk.f32.mxu0 %vm1483_vm5, %v1469_v26 }
 0x246   : > { %v2383_v48 = vpop.trf.xlu0 }
 0x247   : > { %v1470_v28 = vpop.trf.xlu1 }
 0x248   : > { %5261 = vmatmul.mubr.msk.f32.gmra.mrb[30].mxu0 %vm1483_vm5, %v1470_v28 }
 0x24a   : > { %v2384_v49 = vpop.trf.xlu0 }
 0x24b   : > { %v1471_v30 = vpop.trf.xlu1 }
 0x24c   : > { %5263 = vmatprep.mubr.msk.f32.mxu0 %vm1483_vm5, %v1471_v30 }
 0x24e   : > { %v2385_v50 = vpop.trf.xlu0 }
 0x24f   : > { %v1472_v31 = vpop.trf.xlu1 }
 0x250   : > { %5264 = vmatmul.mubr.msk.f32.gmra.mrb[32].mxu0 %vm1483_vm5, %v1472_v31 }
 0x252   : > { %v2386_v51 = vpop.trf.xlu0 }
 0x253   : > { %v1473_v33 = vpop.trf.xlu1 }
 0x254   : > { %5266 = vmatprep.mubr.msk.f32.mxu0 %vm1483_vm5, %v1473_v33 }
 0x256   : > { %v2387_v52 = vpop.trf.xlu0 }
 0x257   : > { %v1474_v35 = vpop.trf.xlu1 }
 0x258   : > { %5267 = vmatmul.mubr.msk.f32.gmra.mrb[34].mxu0 %vm1483_vm5, %v1474_v35 }
 0x25a   : > { %v2388_v53 = vpop.trf.xlu0 }
 0x25b   : > { %v1475_v36 = vpop.trf.xlu1 }
 0x25c   : > { %5269 = vmatprep.mubr.msk.f32.mxu0 %vm1483_vm5, %v1475_v36 }
 0x25e   : > { %v2389_v54 = vpop.trf.xlu0 }
 0x25f   : > { %v1476_v38 = vpop.trf.xlu1 }
 0x260   : > { %5270 = vmatmul.mubr.msk.f32.gmra.mrb[36].mxu0 %vm1483_vm5, %v1476_v38 }
 0x263   : > { %v1477_v40 = vpop.trf.xlu1 }
 0x264   : > { %5272 = vmatprep.mubr.msk.f32.mxu0 %vm1483_vm5, %v1477_v40 }
 0x267   : > { %v1478_v41 = vpop.trf.xlu1 }
 0x268   : > { %5273 = vmatmul.mubr.msk.f32.gmra.mrb[38].mxu0 %vm1483_vm5, %v1478_v41 }
 0x26b   : > { %v1479_v43 = vpop.trf.xlu1 }
 0x26c   : > { %5275 = vmatprep.mubr.msk.f32.mxu0 %vm1483_vm5, %v1479_v43 }
 0x26f   : > { %v1480_v47 = vpop.trf.xlu1 }
 0x270   : > { %5276 = vmatmul.mubr.msk.f32.gmra.mrb[40].mxu0 %vm1483_vm5, %v1480_v47 }
 0x271   : > { %5280 = vmatprep.mubr.msk.f32.mxu0 %vm1483_vm5, %v6548_v55  ;;  %v2390_v55 = vpop.trf.xlu0 }
 0x274   : > { %5281 = vmatmul.mubr.msk.f32.vlgmr.msra.gmra.mrb[42].mxu0 %vm1483_vm5, %v6552_v58 }
 0x275   : > { %5283 = vmatprep.mubr.msk.f32.mxu0 %vm1483_vm5, %v6556_v60  ;;  %v2391_v56 = vpop.trf.xlu0 }
 0x278   : > { %5284 = vmatmul.mubr.msk.f32.gmra.mrb[44].mxu0 %vm1483_vm5, %v6559_v63 }
 0x279   : > { %5286 = vmatprep.mubr.msk.f32.mxu0 %vm1483_vm5, %v6563_v2  ;;  %v2392_v57 = vpop.trf.xlu0 }
 0x27c   : > { %5287 = vmatmul.mubr.msk.f32.gmra.mrb[46].mxu0 %vm1483_vm5, %v6566_v5 }
 0x27d   : > { %5289 = vmatprep.mubr.msk.f32.mxu0 %vm1483_vm5, %v6570_v7  ;;  %v2393_v58 = vpop.trf.xlu0 }
 0x280   : > { %5290 = vmatmul.mubr.msk.f32.gmra.mrb[48].mxu0 %vm1483_vm5, %v6573_v10 }
 0x281   : > { %5292 = vmatprep.mubr.msk.f32.mxu0 %vm1483_vm5, %v2354_v12 }
 0x284   : > { %5293 = vmatmul.mubr.msk.f32.gmra.mrb[50].mxu0 %vm1483_vm5, %v2355_v17 }
 0x285   : > { %5295 = vmatprep.mubr.msk.f32.mxu0 %vm1483_vm5, %v2356_v19 }
 0x288   : > { %5296 = vmatmul.mubr.msk.f32.gmra.mrb[52].mxu0 %vm1483_vm5, %v2357_v22 }
 0x289   : > { %5298 = vmatprep.mubr.msk.f32.mxu0 %vm1483_vm5, %v2358_v24 }
 0x28c   : > { %5299 = vmatmul.mubr.msk.f32.gmra.mrb[54].mxu0 %vm1483_vm5, %v2359_v27 }
 0x28d   : > { %5301 = vmatprep.mubr.msk.f32.mxu0 %vm1483_vm5, %v2360_v29 }
 0x290   : > { %5302 = vmatmul.mubr.msk.f32.gmra.mrb[56].mxu0 %vm1483_vm5, %v2361_v32 }
 0x291   : > { %5304 = vmatprep.mubr.msk.f32.mxu0 %vm1483_vm5, %v2378_v34 }
 0x294   : > { %5305 = vmatmul.mubr.msk.f32.gmra.mrb[58].mxu0 %vm1483_vm5, %v2379_v37 }
 0x295   : > { %5307 = vmatprep.mubr.msk.f32.mxu0 %vm1483_vm5, %v2380_v39 }
 0x298   : > { %5308 = vmatmul.mubr.msk.f32.gmra.mrb[60].mxu0 %vm1483_vm5, %v2381_v42 }
 0x299   : > { %5310 = vmatprep.mubr.msk.f32.mxu0 %vm1483_vm5, %v2382_v46 }
 0x29c   : > { %5311 = vmatmul.mubr.msk.f32.gmra.mrb[62].mxu0 %vm1483_vm5, %v2383_v48 }
 0x29d   : > { %5313 = vmatprep.mubr.msk.f32.mxu0 %vm1483_vm5, %v2384_v49 }
 0x2a0   : > { %5314 = vmatmul.mubr.msk.f32.gmra.mrb[64].mxu0 %vm1483_vm5, %v2385_v50 }
 0x2a1   : > { %5316 = vmatprep.mubr.msk.f32.mxu0 %vm1483_vm5, %v2386_v51 }
 0x2a4   : > { %5317 = vmatmul.mubr.msk.f32.gmra.mrb[66].mxu0 %vm1483_vm5, %v2387_v52 }
 0x2a5   : > { %5319 = vmatprep.mubr.msk.f32.mxu0 %vm1483_vm5, %v2388_v53 }
 0x2a8   : > { %5320 = vmatmul.mubr.msk.f32.gmra.mrb[68].mxu0 %vm1483_vm5, %v2389_v54 }
 0x2a9   : > { %5322 = vmatprep.mubr.msk.f32.mxu0 %vm1483_vm5, %v2390_v55 }
 0x2ac   : > { %5323 = vmatmul.mubr.msk.f32.gmra.mrb[70].mxu0 %vm1483_vm5, %v2391_v56 }
 0x2ad   : > { %5325 = vmatprep.mubr.msk.f32.mxu0 %vm1483_vm5, %v2392_v57 }
 0x2b0   : > { %5326 = vmatmul.mubr.msk.f32.gmra.mrb[72].mxu0 %vm1483_vm5, %v2393_v58 }
 0x2b1   : > { %3320 = vmatprep.mubr.f32.mxu0 %v8148_v0 }
 0x2cb   : > { %v6637_v59 = vpop.f32.mrb[10].mxu0 }
 0x2cc   : > { %v6639_v60 = vpop.f32.mrb[11].mxu0  ;;  %v1812_v61 = vsel %vm1808_vm3, %v6637_v59, -inf }
 0x2cd   : > { %1813 = vmax.xlane.f32.xlu1 %v1812_v61  ;;  %v1809_v62 = vsel %vm1808_vm3, %v6639_v60, -inf }
 0x2d1   : > { %1810 = vmax.xlane.f32.xlu1 %v1809_v62 }
 0x2d3   : > { %v6645_v63 = vpop.f32.mrb[12].mxu0 }
 0x2d4   : > { %v6647_v1 = vpop.f32.mrb[13].mxu0  ;;  %v1818_v2 = vsel %vm1808_vm3, %v6645_v63, -inf }
 0x2d5   : > { %1819 = vmax.xlane.f32.xlu1 %v1818_v2  ;;  %v1815_v3 = vsel %vm1808_vm3, %v6647_v1, -inf }
 0x2d9   : > { %1816 = vmax.xlane.f32.xlu1 %v1815_v3 }
 0x2db   : > { %v6653_v4 = vpop.f32.mrb[14].mxu0 }
 0x2dc   : > { %v6655_v5 = vpop.f32.mrb[15].mxu0  ;;  %v1824_v6 = vsel %vm1808_vm3, %v6653_v4, -inf }
 0x2dd   : > { %1825 = vmax.xlane.f32.xlu1 %v1824_v6  ;;  %v1821_v7 = vsel %vm1808_vm3, %v6655_v5, -inf }
 0x2e1   : > { %1822 = vmax.xlane.f32.xlu1 %v1821_v7 }
 0x2e3   : > { %v6661_v8 = vpop.f32.mrb[16].mxu0 }
 0x2e4   : > { %v6663_v9 = vpop.f32.mrb[17].mxu0  ;;  %v1830_v10 = vsel %vm1808_vm3, %v6661_v8, -inf }
 0x2e5   : > { %1831 = vmax.xlane.f32.xlu1 %v1830_v10  ;;  %v1827_v11 = vsel %vm1808_vm3, %v6663_v9, -inf }
 0x2e6   : > { %1828 = vmax.xlane.f32.xlu0 %v1827_v11 }
 0x2eb   : > { %v6669_v12 = vpop.f32.mrb[18].mxu0 }
 0x2ec   : > { %v6671_v15 = vpop.f32.mrb[19].mxu0  ;;  %v1836_v16 = vsel %vm1808_vm3, %v6669_v12, -inf }
 0x2ed   : > { %1837 = vmax.xlane.f32.xlu1 %v1836_v16  ;;  %v1833_v17 = vsel %vm1808_vm3, %v6671_v15, -inf }
 0x2ee   : > { %1834 = vmax.xlane.f32.xlu0 %v1833_v17 }
 0x2f3   : > { %v6677_v18 = vpop.f32.mrb[20].mxu0 }
 0x2f4   : > { %v6679_v19 = vpop.f32.mrb[21].mxu0  ;;  %v1842_v20 = vsel %vm1808_vm3, %v6677_v18, -inf }
 0x2f5   : > { %1843 = vmax.xlane.f32.xlu1 %v1842_v20  ;;  %v1839_v21 = vsel %vm1808_vm3, %v6679_v19, -inf }
 0x2f6   : > { %1840 = vmax.xlane.f32.xlu0 %v1839_v21 }
 0x2fb   : > { %v6685_v22 = vpop.f32.mrb[22].mxu0 }
 0x2fc   : > { %v6687_v23 = vpop.f32.mrb[23].mxu0  ;;  %v1848_v24 = vsel %vm1808_vm3, %v6685_v22, -inf }
 0x2fd   : > { %1849 = vmax.xlane.f32.xlu1 %v1848_v24  ;;  %v1845_v25 = vsel %vm1808_vm3, %v6687_v23, -inf }
 0x2fe   : > { %1846 = vmax.xlane.f32.xlu0 %v1845_v25 }
 0x303   : > { %v6693_v26 = vpop.f32.mrb[24].mxu0 }
 0x304   : > { %v6695_v27 = vpop.f32.mrb[25].mxu0  ;;  %v1854_v28 = vsel %vm1808_vm3, %v6693_v26, -inf }
 0x305   : > { %1855 = vmax.xlane.f32.xlu1 %v1854_v28  ;;  %v1851_v29 = vsel %vm1808_vm3, %v6695_v27, -inf }
 0x306   : > { %1852 = vmax.xlane.f32.xlu0 %v1851_v29 }
 0x30b   : > { %v6701_v30 = vpop.f32.mrb[26].mxu0 }
 0x30c   : > { %v6703_v31 = vpop.f32.mrb[27].mxu0  ;;  %v1860_v32 = vsel %vm1808_vm3, %v6701_v30, -inf }
 0x30d   : > { %1861 = vmax.xlane.f32.xlu0 %v1860_v32  ;;  %v1857_v33 = vsel %vm1808_vm3, %v6703_v31, -inf }
 0x30e   : > { %1858 = vmax.xlane.f32.xlu1 %v1857_v33 }
 0x313   : > { %v6709_v34 = vpop.f32.mrb[28].mxu0 }
 0x314   : > { %v6711_v35 = vpop.f32.mrb[29].mxu0  ;;  %v1866_v36 = vsel %vm1808_vm3, %v6709_v34, -inf }
 0x315   : > { %1867 = vmax.xlane.f32.xlu1 %v1866_v36  ;;  %v1863_v37 = vsel %vm1808_vm3, %v6711_v35, -inf }
 0x319   : > { %1864 = vmax.xlane.f32.xlu1 %v1863_v37 }
 0x31b   : > { %v6717_v38 = vpop.f32.mrb[30].mxu0 }
 0x31c   : > { %v6719_v39 = vpop.f32.mrb[31].mxu0  ;;  %v1872_v40 = vsel %vm1808_vm3, %v6717_v38, -inf }
 0x31d   : > { %1873 = vmax.xlane.f32.xlu1 %v1872_v40  ;;  %v1869_v41 = vsel %vm1808_vm3, %v6719_v39, -inf }
 0x321   : > { %1870 = vmax.xlane.f32.xlu1 %v1869_v41 }
 0x323   : > { %v6725_v42 = vpop.f32.mrb[32].mxu0 }
 0x324   : > { %v6727_v43 = vpop.f32.mrb[33].mxu0  ;;  %v1878_v46 = vsel %vm1808_vm3, %v6725_v42, -inf }
 0x325   : > { %1879 = vmax.xlane.f32.xlu1 %v1878_v46  ;;  %v1875_v47 = vsel %vm1808_vm3, %v6727_v43, -inf }
 0x326   : > { %1876 = vmax.xlane.f32.xlu0 %v1875_v47 }
 0x32b   : > { %v6733_v48 = vpop.f32.mrb[34].mxu0 }
 0x32c   : > { %v6735_v49 = vpop.f32.mrb[35].mxu0  ;;  %v1884_v50 = vsel %vm1808_vm3, %v6733_v48, -inf }
 0x32d   : > { %1885 = vmax.xlane.f32.xlu1 %v1884_v50  ;;  %v1881_v51 = vsel %vm1808_vm3, %v6735_v49, -inf }
 0x32e   : > { %1882 = vmax.xlane.f32.xlu0 %v1881_v51 }
 0x333   : > { %v6741_v52 = vpop.f32.mrb[36].mxu0 }
 0x334   : > { %v6743_v53 = vpop.f32.mrb[37].mxu0  ;;  %v1890_v54 = vsel %vm1808_vm3, %v6741_v52, -inf }
 0x335   : > { %1891 = vmax.xlane.f32.xlu1 %v1890_v54  ;;  %v1887_v55 = vsel %vm1808_vm3, %v6743_v53, -inf }
 0x336   : > { %1888 = vmax.xlane.f32.xlu0 %v1887_v55 }
 0x33b   : > { %v6749_v56 = vpop.f32.mrb[38].mxu0 }
 0x33c   : > { %v6751_v57 = vpop.f32.mrb[39].mxu0  ;;  %v1896_v58 = vsel %vm1808_vm3, %v6749_v56, -inf }
 0x33d   : > { %1897 = vmax.xlane.f32.xlu1 %v1896_v58  ;;  %v1893_v61 = vsel %vm1808_vm3, %v6751_v57, -inf }
 0x33e   : > { %1894 = vmax.xlane.f32.xlu0 %v1893_v61 }
 0x343   : > { %v6757_v62 = vpop.f32.mrb[40].mxu0 }
 0x344   : > { %v6759_v2 = vpop.f32.mrb[41].mxu0  ;;  %v1902_v3 = vsel %vm1808_vm3, %v6757_v62, -inf }
 0x345   : > { %1903 = vmax.xlane.f32.xlu1 %v1902_v3  ;;  %v1899_v6 = vsel %vm1808_vm3, %v6759_v2, -inf }
 0x346   : > { %1900 = vmax.xlane.f32.xlu0 %v1899_v6 }
 0x347   : > { %v6765_v7 = vpop.f32.mrb[42].mxu0 }
 0x348   : > { %v6767_v10 = vpop.f32.mrb[43].mxu0  ;;  %v2722_v11 = vsel %vm1808_vm3, %v6765_v7, -inf }
 0x349   : > { %2723 = vmax.xlane.f32.xlu1 %v2722_v11  ;;  %v2719_v16 = vsel %vm1808_vm3, %v6767_v10, -inf }
 0x34a   : > { %2720 = vmax.xlane.f32.xlu0 %v2719_v16 }
 0x34b   : > { %v6773_v17 = vpop.f32.mrb[44].mxu0 }
 0x34c   : > { %v6775_v20 = vpop.f32.mrb[45].mxu0  ;;  %v2728_v21 = vsel %vm1808_vm3, %v6773_v17, -inf }
 0x34d   : > { %2729 = vmax.xlane.f32.xlu1 %v2728_v21  ;;  %v2725_v24 = vsel %vm1808_vm3, %v6775_v20, -inf }
 0x34e   : > { %2726 = vmax.xlane.f32.xlu0 %v2725_v24 }
 0x34f   : > { %v6781_v25 = vpop.f32.mrb[46].mxu0 }
 0x350   : > { %8254 = vst [vmem:[#allocation22_spill] sm:$0xff] %v6781_v25  ;;  %v6783_v28 = vpop.f32.mrb[47].mxu0  ;;  %v2734_v29 = vsel %vm1808_vm3, %v6781_v25, -inf }
 0x351   : > { %8255 = vst [vmem:[#allocation23_spill] sm:$0xff] %v6783_v28  ;;  %2735 = vmax.xlane.f32.xlu1 %v2734_v29  ;;  %v2731_v32 = vsel %vm1808_vm3, %v6783_v28, -inf }
 0x352   : > { %2732 = vmax.xlane.f32.xlu0 %v2731_v32 }
 0x353   : > { %v6789_v33 = vpop.f32.mrb[48].mxu0 }
 0x354   : > { %8256 = vst [vmem:[#allocation24_spill] sm:$0xff] %v6789_v33  ;;  %v6791_v36 = vpop.f32.mrb[49].mxu0  ;;  %v2740_v37 = vsel %vm1808_vm3, %v6789_v33, -inf }
 0x355   : > { %8257 = vst [vmem:[#allocation25_spill] sm:$0xff] %v6791_v36  ;;  %2741 = vmax.xlane.f32.xlu1 %v2740_v37  ;;  %v2737_v40 = vsel %vm1808_vm3, %v6791_v36, -inf }
 0x356   : > { %2738 = vmax.xlane.f32.xlu0 %v2737_v40 }
 0x357   : > { %v6797_v41 = vpop.f32.mrb[50].mxu0 }
 0x358   : > { %8258 = vst [vmem:[#allocation26_spill] sm:$0xff] %v6797_v41  ;;  %v6799_v46 = vpop.f32.mrb[51].mxu0  ;;  %v2746_v47 = vsel %vm1808_vm3, %v6797_v41, -inf }
 0x359   : > { %8259 = vst [vmem:[#allocation27_spill] sm:$0xff] %v6799_v46  ;;  %2747 = vmax.xlane.f32.xlu1 %v2746_v47  ;;  %v2743_v50 = vsel %vm1808_vm3, %v6799_v46, -inf }
 0x35a   : > { %2744 = vmax.xlane.f32.xlu0 %v2743_v50  ;;  %v1814_v51 = vpop.xlane.xlu1 %1813 }
 0x35b   : > { %v6805_v54 = vpop.f32.mrb[52].mxu0  ;;  %v1906_v13 = vsub.f32 %v6637_v59, %v1814_v51 }
 0x35c   : > { %8260 = vst [vmem:[#allocation28_spill] sm:$0xff] %v6805_v54  ;;  %v6807_v55 = vpop.f32.mrb[53].mxu0  ;;  %v2752_v58 = vsel %vm1808_vm3, %v6805_v54, -inf }
 0x35d   : > { %8261 = vst [vmem:[#allocation29_spill] sm:$0xff] %v6807_v55  ;;  %2753 = vmax.xlane.f32.xlu1 %v2752_v58  ;;  %v2749_v61 = vsel %vm1808_vm3, %v6807_v55, -inf  ;;  %v1939_v55 = vmul.f32 1.442695, %v1906_v13 }
 0x35e   : > { %2750 = vmax.xlane.f32.xlu0 %v2749_v61  ;;  %v1811_v3 = vpop.xlane.xlu1 %1810 }
 0x35f   : > { %v6813_v6 = vpop.f32.mrb[54].mxu0  ;;  %v1905_v44 = vsub.f32 %v6639_v60, %v1811_v3  ;;  %5553 = vpow2.f32 %v1939_v55 }
 0x360   : > { %v6815_v11 = vpop.f32.mrb[55].mxu0 }
 0x361   : > { %v1937_v59 = vmul.f32 1.442695, %v1905_v44 }
 0x362   : > { %v1820_v16 = vpop.xlane.xlu1 %1819 }
 0x363   : > { %v6817_v21 = vpop.f32.mrb[56].mxu0  ;;  %5555 = vpow2.f32 %v1937_v59 }
 0x364   : > { %v6819_v24 = vpop.f32.mrb[57].mxu0 }
 0x366   : > { %v1817_v40 = vpop.xlane.xlu1 %1816 }
 0x367   : > { %v6821_v29 = vpop.f32.mrb[58].mxu0  ;;  %v1907_v51 = vsub.f32 %v6647_v1, %v1817_v40 }
 0x368   : > { %v6823_v32 = vpop.f32.mrb[59].mxu0  ;;  %v2770_v37 = vsel %vm1808_vm3, %v6821_v29, -inf }
 0x369   : > { %2771 = vmax.xlane.f32.xlu1 %v2770_v37  ;;  %v2767_v47 = vsel %vm1808_vm3, %v6823_v32, -inf  ;;  %v1941_v44 = vmul.f32 1.442695, %v1907_v51 }
 0x36a   : > { %2768 = vmax.xlane.f32.xlu0 %v2767_v47  ;;  %v1826_v14 = vpop.xlane.xlu1 %1825 }
 0x36b   : > { %v6829_v50 = vpop.f32.mrb[60].mxu0 }
 0x36c   : > { %v6831_v58 = vpop.f32.mrb[61].mxu0  ;;  %v2776_v61 = vsel %vm1808_vm3, %v6829_v50, -inf }
 0x36d   : > { %2777 = vmax.xlane.f32.xlu1 %v2776_v61  ;;  %v2773_v0 = vsel %vm1808_vm3, %v6831_v58, -inf }
 0x36e   : > { %2774 = vmax.xlane.f32.xlu0 %v2773_v0  ;;  %v1908_v0 = vsub.f32 %v6645_v63, %v1820_v16  ;;  %v1823_v3 = vpop.xlane.xlu1 %1822  ;;  %v1910_v63 = vsub.f32 %v6653_v4, %v1826_v14 }
 0x36f   : > { %v6838_v37 = vpop.f32.mrb[62].mxu0  ;;  %v1909_v1 = vsub.f32 %v6655_v5, %v1823_v3 }
 0x370   : > { %v6841_v47 = vpop.f32.mrb[63].mxu0  ;;  %v2782_v45 = vsel %vm1808_vm3, %v6838_v37, -inf  ;;  %v1943_v13 = vmul.f32 1.442695, %v1908_v0  ;;  %v1947_v55 = vmul.f32 1.442695, %v1910_v63 }
 0x371   : > { %2783 = vmax.xlane.f32.xlu1 %v2782_v45  ;;  %v2779_v61 = vsel %vm1808_vm3, %v6841_v47, -inf  ;;  %v1945_v14 = vmul.f32 1.442695, %v1909_v1 }
 0x372   : > { %2780 = vmax.xlane.f32.xlu0 %v2779_v61  ;;  %5557 = vpow2.f32 %v1943_v13  ;;  %v6881_v13 = vpop.eup %5553 }
 0x373   : > { %v6848_v54 = vpop.f32.mrb[64].mxu0  ;;  %5559 = vpow2.f32 %v1941_v44  ;;  %8270 = vst [vmem:[#allocation38_spill] sm:$0xff] %v6881_v13  ;;  %v6885_v44 = vpop.eup %5555 }
 0x374   : > { %8262 = vst [vmem:[#allocation30_spill] sm:$0xff] %v6848_v54  ;;  %v6851_v46 = vpop.f32.mrb[65].mxu0  ;;  %v2788_v60 = vsel %vm1808_vm3, %v6848_v54, -inf  ;;  %5561 = vpow2.f32 %v1947_v55  ;;  %8271 = vst [vmem:[#allocation39_spill] sm:$0xff] %v6885_v44 }
 0x375   : > { %8263 = vst [vmem:[#allocation31_spill] sm:$0xff] %v6851_v46  ;;  %2789 = vmax.xlane.f32.xlu1 %v2788_v60  ;;  %v2785_v45 = vsel %vm1808_vm3, %v6851_v46, -inf  ;;  %5563 = vpow2.f32 %v1945_v14  ;;  %v2001_v14 = vsel %vm1808_vm3, %v6885_v44, 0.0 }
 0x376   : > { %2786 = vmax.xlane.f32.xlu0 %v2785_v45 }
 0x377   : > { %v6858_v16 = vpop.f32.mrb[66].mxu0 }
 0x378   : > { %8264 = vst [vmem:[#allocation32_spill] sm:$0xff] %v6858_v16  ;;  %v6861_v40 = vpop.f32.mrb[67].mxu0  ;;  %v2794_v61 = vsel %vm1808_vm3, %v6858_v16, -inf }
 0x379   : > { %8265 = vst [vmem:[#allocation33_spill] sm:$0xff] %v6861_v40  ;;  %2795 = vmax.xlane.f32.xlu1 %v2794_v61  ;;  %v2791_v60 = vsel %vm1808_vm3, %v6861_v40, -inf  ;;  %v2004_v61 = vsel %vm1808_vm3, %v6881_v13, 0.0 }
 0x37a   : > { %2792 = vmax.xlane.f32.xlu0 %v2791_v60 }
 0x37b   : > { %v6867_v0 = vpop.f32.mrb[68].mxu0 }
 0x37c   : > { %8266 = vst [vmem:[#allocation34_spill] sm:$0xff] %v6867_v0  ;;  %v6869_v4 = vpop.f32.mrb[69].mxu0  ;;  %v2800_v5 = vsel %vm1808_vm3, %v6867_v0, -inf  ;;  %v6893_v55 = vpop.eup %5557 }
 0x37d   : > { %8267 = vst [vmem:[#allocation35_spill] sm:$0xff] %v6869_v4  ;;  %2801 = vmax.xlane.f32.xlu1 %v2800_v5  ;;  %v2797_v59 = vsel %vm1808_vm3, %v6869_v4, -inf  ;;  %8272 = vst [vmem:[#allocation40_spill] sm:$0xff] %v6893_v55  ;;  %v6897_v5 = vpop.eup %5559 }
 0x37e   : > { %2798 = vmax.xlane.f32.xlu0 %v2797_v59  ;;  %8273 = vst [vmem:[#allocation41_spill] sm:$0xff] %v6897_v5  ;;  %v1829_v59 = vpop.xlane.xlu0 %1828  ;;  %v2007_v13 = vsel %vm1808_vm3, %v6897_v5, 0.0 }
 0x37f   : > { %v6875_v51 = vpop.f32.mrb[70].mxu0 }
 0x380   : > { %8268 = vst [vmem:[#allocation36_spill] sm:$0xff] %v6875_v51  ;;  %v6877_v3 = vpop.f32.mrb[71].mxu0  ;;  %v2806_v45 = vsel %vm1808_vm3, %v6875_v51, -inf }
 0x381   : > { %8269 = vst [vmem:[#allocation37_spill] sm:$0xff] %v6877_v3  ;;  %2807 = vmax.xlane.f32.xlu1 %v2806_v45  ;;  %v2803_v63 = vsel %vm1808_vm3, %v6877_v3, -inf  ;;  %v1832_v45 = vpop.xlane.xlu1 %1831  ;;  %v6901_v3 = vpop.eup %5561 }
 0x382   : > { %2804 = vmax.xlane.f32.xlu0 %v2803_v63  ;;  %v2010_v63 = vsel %vm1808_vm3, %v6893_v55, 0.0  ;;  %8274 = vst [vmem:[#allocation42_spill] sm:$0xff] %v6901_v3  ;;  %v6905_v51 = vpop.eup %5563  ;;  %v2016_v4 = vsel %vm1808_vm3, %v6901_v3, 0.0  ;;  %v1912_v40 = vsub.f32 %v6661_v8, %v1832_v45 }
 0x383   : > { %v6887_v1 = vpop.f32.mrb[72].mxu0  ;;  %8275 = vst [vmem:[#allocation43_spill] sm:$0xff] %v6905_v51 }
 0x384   : > { %v6891_v60 = vpop.f32.mrb[73].mxu0  ;;  %v1951_v36 = vmul.f32 1.442695, %v1912_v40 }
 0x385   : > { %2005 = vadd.xlane.f32.xlu1 %v2004_v61  ;;  %v6907_v61 = vpop.xlane.xlu0 %1834  ;;  %v1838_v44 = vpop.xlane.xlu1 %1837 }
 0x386   : > { %2002 = vadd.xlane.f32.xlu0 %v2001_v14  ;;  %v2013_v14 = vsel %vm1808_vm3, %v6905_v51, 0.0 }
 0x389   : > { %2011 = vadd.xlane.f32.xlu1 %v2010_v63  ;;  %v6913_v55 = vpop.xlane.xlu0 %1840  ;;  %v6915_v63 = vpop.xlane.xlu1 %1843 }
 0x38a   : > { %2008 = vadd.xlane.f32.xlu0 %v2007_v13 }
 0x38d   : > { %2017 = vadd.xlane.f32.xlu1 %v2016_v4  ;;  %v6917_v0 = vpop.xlane.xlu0 %1846  ;;  %v6919_v5 = vpop.xlane.xlu1 %1849  ;;  %v1911_v4 = vsub.f32 %v6663_v9, %v1829_v59 }
 0x38e   : > { %2014 = vadd.xlane.f32.xlu0 %v2013_v14 }
 0x38f   : > { %v1949_v46 = vmul.f32 1.442695, %v1911_v4 }
 0x392   : > { %v6923_v13 = vpop.xlane.xlu1 %1855 }
 0x393   : > { %v6921_v41 = vpop.xlane.xlu0 %1852 }
 0x39a   : > { %v1862_v3 = vpop.xlane.xlu0 %1861 }
 0x39b   : > { %v1922_v51 = vsub.f32 %v6701_v30, %v1862_v3  ;;  %v1859_v16 = vpop.xlane.xlu1 %1858 }
 0x39c   : > { %v1921_v14 = vsub.f32 %v6703_v31, %v1859_v16 }
 0x39d   : > { %v1971_v33 = vmul.f32 1.442695, %v1922_v51 }
 0x39e   : > { %v1969_v54 = vmul.f32 1.442695, %v1921_v14 }
 0x39f   : > { %5565 = vpow2.f32 %v1971_v33 }
 0x3a0   : > { %5567 = vpow2.f32 %v1969_v54 }
 0x3a1   : > { %5569 = vpow2.f32 %v1951_v36 }
 0x3a2   : > { %5571 = vpow2.f32 %v1949_v46  ;;  %v1868_v28 = vpop.xlane.xlu1 %1867 }
 0x3a3   : > { %v1924_v25 = vsub.f32 %v6709_v34, %v1868_v28 }
 0x3a5   : > { %v1975_v8 = vmul.f32 1.442695, %v1924_v25 }
 0x3a6   : > { %v1865_v45 = vpop.xlane.xlu1 %1864 }
 0x3a7   : > { %5573 = vpow2.f32 %v1975_v8  ;;  %v1923_v9 = vsub.f32 %v6711_v35, %v1865_v45 }
 0x3a9   : > { %v6931_v30 = vpop.eup %5565  ;;  %v1973_v3 = vmul.f32 1.442695, %v1923_v9 }
 0x3aa   : > { %v6933_v31 = vpop.eup %5567  ;;  %v1874_v16 = vpop.xlane.xlu1 %1873  ;;  %v2052_v33 = vsel %vm1808_vm3, %v6931_v30, 0.0 }
 0x3ab   : > { %v6937_v54 = vpop.eup %5569  ;;  %5575 = vpow2.f32 %v1973_v3  ;;  %v1926_v36 = vsub.f32 %v6717_v38, %v1874_v16  ;;  %2053 = vadd.xlane.f32.xlu1 %v2052_v33  ;;  %v2049_v34 = vsel %vm1808_vm3, %v6933_v31, 0.0  ;;  %v1914_v38 = vsub.f32 %v6669_v12, %v1838_v44 }
 0x3ac   : > { %v6942_v25 = vpop.eup %5571  ;;  %2050 = vadd.xlane.f32.xlu0 %v2049_v34  ;;  %v2022_v46 = vsel %vm1808_vm3, %v6937_v54, 0.0  ;;  %v1913_v12 = vsub.f32 %v6671_v15, %v6907_v61  ;;  %v2755_v15 = vsel %vm1808_vm3, %v6815_v11, -inf }
 0x3ad   : > { %v1979_v35 = vmul.f32 1.442695, %v1926_v36  ;;  %v2019_v51 = vsel %vm1808_vm3, %v6942_v25, 0.0  ;;  %v2758_v36 = vsel %vm1808_vm3, %v6813_v6, -inf }
 0x3ae   : > { %v1871_v28 = vpop.xlane.xlu1 %1870 }
 0x3af   : > { %5577 = vpow2.f32 %v1979_v35  ;;  %v1925_v40 = vsub.f32 %v6719_v39, %v1871_v28  ;;  %2023 = vadd.xlane.f32.xlu1 %v2022_v46  ;;  %v1955_v39 = vmul.f32 1.442695, %v1914_v38 }
 0x3b0   : > { %2020 = vadd.xlane.f32.xlu0 %v2019_v51  ;;  %v2812_v51 = vsel %vm1808_vm3, %v6887_v1, -inf }
 0x3b1   : > { %v6950_v59 = vpop.eup %5573  ;;  %v1977_v4 = vmul.f32 1.442695, %v1925_v40 }
 0x3b2   : > { %v1880_v14 = vpop.xlane.xlu1 %1879  ;;  %v2058_v8 = vsel %vm1808_vm3, %v6950_v59, 0.0 }
 0x3b3   : > { %5579 = vpow2.f32 %v1977_v4  ;;  %v1928_v45 = vsub.f32 %v6725_v42, %v1880_v14  ;;  %v1877_v9 = vpop.xlane.xlu0 %1876  ;;  %2059 = vadd.xlane.f32.xlu1 %v2058_v8 }
 0x3b4   : > { %v1927_v3 = vsub.f32 %v6727_v43, %v1877_v9  ;;  %v1953_v43 = vmul.f32 1.442695, %v1913_v12 }
 0x3b5   : > { %v6956_v16 = vpop.eup %5575  ;;  %v1983_v44 = vmul.f32 1.442695, %v1928_v45 }
 0x3b6   : > { %v1981_v33 = vmul.f32 1.442695, %v1927_v3  ;;  %v2055_v34 = vsel %vm1808_vm3, %v6956_v16, 0.0 }
 0x3b7   : > { %5581 = vpow2.f32 %v1983_v44  ;;  %2759 = vmax.xlane.f32.xlu1 %v2758_v36  ;;  %2056 = vadd.xlane.f32.xlu0 %v2055_v34  ;;  %v1915_v36 = vsub.f32 %v6679_v19, %v6913_v55 }
 0x3b8   : > { %5583 = vpow2.f32 %v1955_v39 }
 0x3b9   : > { %v6964_v42 = vpop.eup %5577  ;;  %5585 = vpow2.f32 %v1981_v33  ;;  %v1957_v19 = vmul.f32 1.442695, %v1915_v36 }
 0x3ba   : > { %v1886_v35 = vpop.xlane.xlu1 %1885  ;;  %v2064_v61 = vsel %vm1808_vm3, %v6964_v42, 0.0  ;;  %5587 = vpow2.f32 %v1953_v43 }
 0x3bb   : > { %v1930_v28 = vsub.f32 %v6733_v48, %v1886_v35  ;;  %v1883_v46 = vpop.xlane.xlu0 %1882  ;;  %2756 = vmax.xlane.f32.xlu0 %v2755_v15  ;;  %2065 = vadd.xlane.f32.xlu1 %v2064_v61  ;;  %v1916_v48 = vsub.f32 %v6677_v18, %v6915_v63 }
 0x3bc   : > { %v1929_v40 = vsub.f32 %v6735_v49, %v1883_v46  ;;  %v2809_v49 = vsel %vm1808_vm3, %v6891_v60, -inf }
 0x3bd   : > { %v6974_v38 = vpop.eup %5579  ;;  %v1987_v4 = vmul.f32 1.442695, %v1930_v28  ;;  %v1959_v18 = vmul.f32 1.442695, %v1916_v48 }
 0x3be   : > { %v1985_v14 = vmul.f32 1.442695, %v1929_v40  ;;  %v2061_v8 = vsel %vm1808_vm3, %v6974_v38, 0.0 }
 0x3bf   : > { %5589 = vpow2.f32 %v1987_v4  ;;  %2813 = vmax.xlane.f32.xlu1 %v2812_v51  ;;  %2062 = vadd.xlane.f32.xlu0 %v2061_v8 }
 0x3c0   : > { %5591 = vpow2.f32 %v1985_v14 }
 0x3c1   : > { %v6982_v45 = vpop.eup %5581 }
 0x3c2   : > { %v6984_v9 = vpop.eup %5583  ;;  %v1892_v39 = vpop.xlane.xlu1 %1891  ;;  %v2070_v3 = vsel %vm1808_vm3, %v6982_v45, 0.0 }
 0x3c3   : > { %v6988_v12 = vpop.eup %5585  ;;  %v1932_v44 = vsub.f32 %v6741_v52, %v1892_v39  ;;  %v1889_v33 = vpop.xlane.xlu0 %1888  ;;  %2810 = vmax.xlane.f32.xlu0 %v2809_v49  ;;  %2071 = vadd.xlane.f32.xlu1 %v2070_v3  ;;  %v2028_v15 = vsel %vm1808_vm3, %v6984_v9, 0.0  ;;  %v1918_v52 = vsub.f32 %v6685_v22, %v6919_v5  ;;  %v1917_v5 = vsub.f32 %v6687_v23, %v6917_v0 }
 0x3c4   : > { %v1931_v63 = vsub.f32 %v6743_v53, %v1889_v33  ;;  %v2067_v35 = vsel %vm1808_vm3, %v6988_v12, 0.0  ;;  %v6998_v61 = vpop.eup %5587  ;;  %v2764_v39 = vsel %vm1808_vm3, %v6817_v21, -inf }
 0x3c5   : > { %v1991_v34 = vmul.f32 1.442695, %v1932_v44  ;;  %v2025_v28 = vsel %vm1808_vm3, %v6998_v61, 0.0  ;;  %v1963_v14 = vmul.f32 1.442695, %v1918_v52  ;;  %v2761_v44 = vsel %vm1808_vm3, %v6819_v24, -inf }
 0x3c6   : > { %v1989_v43 = vmul.f32 1.442695, %v1931_v63  ;;  %v1961_v3 = vmul.f32 1.442695, %v1917_v5 }
 0x3c7   : > { %5593 = vpow2.f32 %v1991_v34  ;;  %2068 = vadd.xlane.f32.xlu0 %v2067_v35  ;;  %2029 = vadd.xlane.f32.xlu1 %v2028_v15  ;;  %v1919_v34 = vsub.f32 %v6695_v27, %v6921_v41 }
 0x3c8   : > { %5595 = vpow2.f32 %v1959_v18 }
 0x3c9   : > { %v7002_v53 = vpop.eup %5589  ;;  %5597 = vpow2.f32 %v1989_v43 }
 0x3ca   : > { %v1898_v55 = vpop.xlane.xlu1 %1897  ;;  %v2076_v46 = vsel %vm1808_vm3, %v7002_v53, 0.0  ;;  %v7008_v40 = vpop.eup %5591  ;;  %5599 = vpow2.f32 %v1957_v19 }
 0x3cb   : > { %v1934_v51 = vsub.f32 %v6749_v56, %v1898_v55  ;;  %v1895_v4 = vpop.xlane.xlu0 %1894  ;;  %2026 = vadd.xlane.f32.xlu0 %v2025_v28  ;;  %2077 = vadd.xlane.f32.xlu1 %v2076_v46  ;;  %v2073_v49 = vsel %vm1808_vm3, %v7008_v40, 0.0  ;;  %v1920_v56 = vsub.f32 %v6693_v26, %v6923_v13  ;;  %v1965_v28 = vmul.f32 1.442695, %v1919_v34 }
 0x3cc   : > { %v1933_v22 = vsub.f32 %v6751_v57, %v1895_v4 }
 0x3cd   : > { %v1995_v8 = vmul.f32 1.442695, %v1934_v51  ;;  %v1967_v26 = vmul.f32 1.442695, %v1920_v56 }
 0x3ce   : > { %v1993_v48 = vmul.f32 1.442695, %v1933_v22 }
 0x3cf   : > { %5601 = vpow2.f32 %v1995_v8  ;;  %2074 = vadd.xlane.f32.xlu0 %v2073_v49  ;;  %2765 = vmax.xlane.f32.xlu1 %v2764_v39 }
 0x3d0   : > { %5603 = vpow2.f32 %v1963_v14 }
 0x3d1   : > { %v7020_v57 = vpop.eup %5593  ;;  %5605 = vpow2.f32 %v1993_v48 }
 0x3d2   : > { %v7022_v23 = vpop.eup %5595  ;;  %v1904_v0 = vpop.xlane.xlu1 %1903  ;;  %v2082_v33 = vsel %vm1808_vm3, %v7020_v57, 0.0  ;;  %5607 = vpow2.f32 %v1961_v3 }
 0x3d3   : > { %v7028_v18 = vpop.eup %5597  ;;  %v1936_v63 = vsub.f32 %v6757_v62, %v1904_v0  ;;  %v1901_v36 = vpop.xlane.xlu0 %1900  ;;  %2762 = vmax.xlane.f32.xlu0 %v2761_v44  ;;  %2083 = vadd.xlane.f32.xlu1 %v2082_v33  ;;  %v2034_v19 = vsel %vm1808_vm3, %v7022_v23, 0.0 }
 0x3d4   : > { %v1935_v13 = vsub.f32 %v6759_v2, %v1901_v36  ;;  %v2079_v52 = vsel %vm1808_vm3, %v7028_v18, 0.0  ;;  %v7038_v62 = vpop.eup %5599 }
 0x3d5   : > { %v1999_v43 = vmul.f32 1.442695, %v1936_v63  ;;  %v2031_v46 = vsel %vm1808_vm3, %v7038_v62, 0.0 }
 0x3d6   : > { %v1997_v35 = vmul.f32 1.442695, %v1935_v13  ;;  %v2724_v15 = vpop.xlane.xlu1 %2723 }
 0x3d7   : > { %5609 = vpow2.f32 %v1999_v43  ;;  %v2721_v55 = vpop.xlane.xlu0 %2720  ;;  %2080 = vadd.xlane.f32.xlu0 %v2079_v52  ;;  %2035 = vadd.xlane.f32.xlu1 %v2034_v19 }
 0x3d8   : > { %5611 = vpow2.f32 %v1967_v26 }
 0x3d9   : > { %v7040_v2 = vpop.eup %5601  ;;  %5613 = vpow2.f32 %v1997_v35 }
 0x3da   : > { %v7042_v27 = vpop.eup %5603  ;;  %v2730_v41 = vpop.xlane.xlu1 %2729  ;;  %v2088_v51 = vsel %vm1808_vm3, %v7040_v2, 0.0  ;;  %5615 = vpow2.f32 %v1965_v28  ;;  %v2816_v28 = vsub.f32 %v6765_v7, %v2724_v15 }
 0x3db   : > { %v7048_v4 = vpop.eup %5605  ;;  %v2727_v14 = vpop.xlane.xlu0 %2726  ;;  %2032 = vadd.xlane.f32.xlu0 %v2031_v46  ;;  %2089 = vadd.xlane.f32.xlu1 %v2088_v51  ;;  %v2040_v5 = vsel %vm1808_vm3, %v7042_v27, 0.0  ;;  %v2815_v46 = vsub.f32 %v6767_v10, %v2721_v55  ;;  %v2818_v10 = vsub.f32 %v6773_v17, %v2730_v41  ;;  %v8279_v17 = vld [vmem:[#allocation22_spill] sm:$0xff] }
 0x3dc   : > { %v2085_v22 = vsel %vm1808_vm3, %v7048_v4, 0.0  ;;  %v7054_v8 = vpop.eup %5607 }
 0x3dd   : > { %v2037_v3 = vsel %vm1808_vm3, %v7054_v8, 0.0 }
 0x3de   : > { %v7056_v48 = vpop.xlane.xlu1 %2735 }
 0x3df   : > { %2086 = vadd.xlane.f32.xlu0 %v2085_v22  ;;  %2041 = vadd.xlane.f32.xlu1 %v2040_v5  ;;  %v7060_v39 = vpop.xlane.xlu0 %2732 }
 0x3e1   : > { %v7058_v49 = vpop.eup %5609 }
 0x3e2   : > { %8276 = vst [vmem:[#allocation44_spill] sm:$0xff] %v7058_v49  ;;  %v7062_v56 = vpop.eup %5611  ;;  %v2094_v0 = vsel %vm1808_vm3, %v7058_v49, 0.0  ;;  %v7070_v33 = vpop.xlane.xlu1 %2741 }
 0x3e3   : > { %8277 = vst [vmem:[#allocation45_spill] sm:$0xff] %v7062_v56  ;;  %v7068_v44 = vpop.eup %5613  ;;  %2038 = vadd.xlane.f32.xlu0 %v2037_v3  ;;  %2095 = vadd.xlane.f32.xlu1 %v2094_v0  ;;  %v2046_v36 = vsel %vm1808_vm3, %v7062_v56, 0.0  ;;  %v7078_v13 = vpop.xlane.xlu0 %2738  ;;  %v2849_v0 = vmul.f32 1.442695, %v2816_v28 }
 0x3e4   : > { %v2091_v63 = vsel %vm1808_vm3, %v7068_v44, 0.0  ;;  %v7076_v26 = vpop.eup %5615 }
 0x3e5   : > { %8278 = vst [vmem:[#allocation46_spill] sm:$0xff] %v7076_v26  ;;  %v2043_v34 = vsel %vm1808_vm3, %v7076_v26, 0.0 }
 0x3e6   : > { %v7082_v43 = vpop.xlane.xlu1 %2747 }
 0x3e7   : > { %2092 = vadd.xlane.f32.xlu0 %v2091_v63  ;;  %2047 = vadd.xlane.f32.xlu1 %v2046_v36  ;;  %v7084_v35 = vpop.xlane.xlu0 %2744  ;;  %v2847_v36 = vmul.f32 1.442695, %v2815_v46  ;;  %v2853_v46 = vmul.f32 1.442695, %v2818_v10 }
 0x3ea   : > { %v7086_v52 = vpop.xlane.xlu1 %2753 }
 0x3eb   : > { %2044 = vadd.xlane.f32.xlu0 %v2043_v34  ;;  %v7088_v19 = vpop.xlane.xlu0 %2750 }
 0x3f6   : > { %v2772_v51 = vpop.xlane.xlu1 %2771 }
 0x3f7   : > { %v2832_v22 = vsub.f32 %v6821_v29, %v2772_v51  ;;  %v2769_v5 = vpop.xlane.xlu0 %2768  ;;  %v2817_v29 = vsub.f32 %v6775_v20, %v2727_v14  ;;  %v8280_v20 = vld [vmem:[#allocation23_spill] sm:$0xff] }
 0x3f8   : > { %v2831_v3 = vsub.f32 %v6823_v32, %v2769_v5  ;;  %v2819_v14 = vsub.f32 %v8280_v20, %v7060_v39 }
 0x3f9   : > { %v2881_v63 = vmul.f32 1.442695, %v2832_v22  ;;  %v2851_v22 = vmul.f32 1.442695, %v2817_v29 }
 0x3fa   : > { %v2879_v34 = vmul.f32 1.442695, %v2831_v3  ;;  %v2778_v26 = vpop.xlane.xlu1 %2777  ;;  %v2855_v39 = vmul.f32 1.442695, %v2819_v14 }
 0x3fb   : > { %5617 = vpow2.f32 %v2881_v63  ;;  %v2834_v56 = vsub.f32 %v6829_v50, %v2778_v26  ;;  %v2775_v49 = vpop.xlane.xlu0 %2774 }
 0x3fc   : > { %5619 = vpow2.f32 %v2879_v34  ;;  %v2833_v7 = vsub.f32 %v6831_v58, %v2775_v49  ;;  %v2820_v58 = vsub.f32 %v8279_v17, %v7056_v48 }
 0x3fd   : > { %5621 = vpow2.f32 %v2849_v0  ;;  %v2885_v15 = vmul.f32 1.442695, %v2834_v56 }
 0x3fe   : > { %5623 = vpow2.f32 %v2847_v36  ;;  %v2883_v32 = vmul.f32 1.442695, %v2833_v7  ;;  %v2784_v55 = vpop.xlane.xlu1 %2783  ;;  %v2857_v63 = vmul.f32 1.442695, %v2820_v58  ;;  %v8281_v36 = vld [vmem:[#allocation30_spill] sm:$0xff]  ;;  %v8282_v7 = vld [vmem:[#allocation31_spill] sm:$0xff] }
 0x3ff   : > { %v2781_v28 = vpop.xlane.xlu0 %2780  ;;  %5625 = vpow2.f32 %v2885_v15  ;;  %v2836_v51 = vsub.f32 %v6838_v37, %v2784_v55 }
 0x400   : > { %5627 = vpow2.f32 %v2883_v32  ;;  %v2835_v50 = vsub.f32 %v6841_v47, %v2781_v28  ;;  %v8283_v28 = vld [vmem:[#allocation24_spill] sm:$0xff] }
 0x401   : > { %5629 = vpow2.f32 %v2853_v46  ;;  %v2889_v41 = vmul.f32 1.442695, %v2836_v51  ;;  %v2822_v46 = vsub.f32 %v8283_v28, %v7070_v33  ;;  %v8288_v28 = vld [vmem:[#allocation27_spill] sm:$0xff] }
 0x402   : > { %5631 = vpow2.f32 %v2851_v22  ;;  %v2887_v56 = vmul.f32 1.442695, %v2835_v50  ;;  %v2790_v5 = vpop.xlane.xlu1 %2789  ;;  %v8284_v22 = vld [vmem:[#allocation25_spill] sm:$0xff] }
 0x403   : > { %v2787_v47 = vpop.xlane.xlu0 %2786  ;;  %5633 = vpow2.f32 %v2889_v41  ;;  %v2838_v34 = vsub.f32 %v8281_v36, %v2790_v5  ;;  %v2821_v50 = vsub.f32 %v8284_v22, %v7078_v13  ;;  %v2861_v33 = vmul.f32 1.442695, %v2822_v46 }
 0x404   : > { %5635 = vpow2.f32 %v2887_v56  ;;  %v2837_v10 = vsub.f32 %v8282_v7, %v2787_v47  ;;  %v2823_v46 = vsub.f32 %v8288_v28, %v7084_v35 }
 0x405   : > { %v7100_v26 = vpop.eup %5617  ;;  %5637 = vpow2.f32 %v2857_v63  ;;  %v2893_v51 = vmul.f32 1.442695, %v2838_v34  ;;  %v2859_v13 = vmul.f32 1.442695, %v2821_v50 }
 0x406   : > { %v7104_v49 = vpop.eup %5619  ;;  %v2962_v37 = vsel %vm1808_vm3, %v7100_v26, 0.0  ;;  %5639 = vpow2.f32 %v2855_v39  ;;  %v2891_v17 = vmul.f32 1.442695, %v2837_v10  ;;  %v2796_v58 = vpop.xlane.xlu1 %2795  ;;  %v8287_v10 = vld [vmem:[#allocation26_spill] sm:$0xff]  ;;  %v2863_v35 = vmul.f32 1.442695, %v2823_v46 }
 0x407   : > { %v7110_v3 = vpop.eup %5621  ;;  %2963 = vadd.xlane.f32.xlu1 %v2962_v37  ;;  %v2959_v0 = vsel %vm1808_vm3, %v7104_v49, 0.0  ;;  %v2793_v14 = vpop.xlane.xlu0 %2792  ;;  %5641 = vpow2.f32 %v2893_v51  ;;  %v8285_v37 = vld [vmem:[#allocation32_spill] sm:$0xff] }
 0x408   : > { %v7114_v48 = vpop.eup %5623  ;;  %2960 = vadd.xlane.f32.xlu0 %v2959_v0  ;;  %v2914_v15 = vsel %vm1808_vm3, %v7110_v3, 0.0  ;;  %v2840_v47 = vsub.f32 %v8285_v37, %v2796_v58  ;;  %5643 = vpow2.f32 %v2891_v17  ;;  %v8286_v0 = vld [vmem:[#allocation33_spill] sm:$0xff]  ;;  %v8290_v37 = vld [vmem:[#allocation35_spill] sm:$0xff] }
 0x409   : > { %v7120_v29 = vpop.eup %5625  ;;  %v2911_v32 = vsel %vm1808_vm3, %v7114_v48, 0.0  ;;  %v2839_v63 = vsub.f32 %v8286_v0, %v2793_v14  ;;  %5645 = vpow2.f32 %v2861_v33 }
 0x40a   : > { %v7124_v55 = vpop.eup %5627  ;;  %v2968_v41 = vsel %vm1808_vm3, %v7120_v29, 0.0  ;;  %5647 = vpow2.f32 %v2859_v13  ;;  %v2802_v22 = vpop.xlane.xlu1 %2801 }
 0x40b   : > { %2915 = vadd.xlane.f32.xlu1 %v2914_v15  ;;  %v7132_v20 = vpop.eup %5629  ;;  %v2965_v56 = vsel %vm1808_vm3, %v7124_v55, 0.0  ;;  %v2824_v15 = vsub.f32 %v8287_v10, %v7082_v43  ;;  %v2895_v51 = vmul.f32 1.442695, %v2839_v63  ;;  %v2799_v58 = vpop.xlane.xlu0 %2798 }
 0x40c   : > { %2912 = vadd.xlane.f32.xlu0 %v2911_v32  ;;  %v7136_v5 = vpop.eup %5631  ;;  %v2920_v36 = vsel %vm1808_vm3, %v7132_v20, 0.0  ;;  %v2897_v32 = vmul.f32 1.442695, %v2840_v47  ;;  %v2841_v47 = vsub.f32 %v8290_v37, %v2799_v58 }
 0x40d   : > { %v7142_v34 = vpop.eup %5633  ;;  %v2917_v39 = vsel %vm1808_vm3, %v7136_v5, 0.0  ;;  %v2865_v43 = vmul.f32 1.442695, %v2824_v15 }
 0x40e   : > { %v7146_v7 = vpop.eup %5635  ;;  %v2974_v50 = vsel %vm1808_vm3, %v7142_v34, 0.0  ;;  %5649 = vpow2.f32 %v2897_v32  ;;  %v8292_v32 = vld [vmem:[#allocation29_spill] sm:$0xff]  ;;  %v2899_v46 = vmul.f32 1.442695, %v2841_v47 }
 0x40f   : > { %2969 = vadd.xlane.f32.xlu1 %v2968_v41  ;;  %v7154_v17 = vpop.eup %5637  ;;  %v2971_v41 = vsel %vm1808_vm3, %v7146_v7, 0.0  ;;  %5651 = vpow2.f32 %v2895_v51  ;;  %v2825_v28 = vsub.f32 %v8292_v32, %v7088_v19  ;;  %v2808_v51 = vpop.xlane.xlu1 %2807 }
 0x410   : > { %2966 = vadd.xlane.f32.xlu0 %v2965_v56  ;;  %v7158_v14 = vpop.eup %5639  ;;  %v8289_v56 = vld [vmem:[#allocation34_spill] sm:$0xff]  ;;  %v2926_v13 = vsel %vm1808_vm3, %v7154_v17, 0.0  ;;  %5653 = vpow2.f32 %v2865_v43  ;;  %v2805_v58 = vpop.xlane.xlu0 %2804 }
 0x411   : > { %v2842_v33 = vsub.f32 %v8289_v56, %v2802_v22  ;;  %v7164_v0 = vpop.eup %5641  ;;  %v2923_v63 = vsel %vm1808_vm3, %v7158_v14, 0.0  ;;  %5655 = vpow2.f32 %v2863_v35  ;;  %v8294_v56 = vld [vmem:[#allocation36_spill] sm:$0xff]  ;;  %v2867_v19 = vmul.f32 1.442695, %v2825_v28  ;;  %v8295_v35 = vld [vmem:[#allocation37_spill] sm:$0xff] }
 0x412   : > { %v2980_v22 = vsel %vm1808_vm3, %v7164_v0, 0.0  ;;  %v2843_v37 = vsub.f32 %v8295_v35, %v2805_v58 }
 0x413   : > { %2921 = vadd.xlane.f32.xlu1 %v2920_v36  ;;  %v7168_v36 = vpop.eup %5643  ;;  %v2901_v15 = vmul.f32 1.442695, %v2842_v33  ;;  %v2844_v33 = vsub.f32 %v8294_v56, %v2808_v51 }
 0x414   : > { %2918 = vadd.xlane.f32.xlu0 %v2917_v39  ;;  %v8291_v39 = vld [vmem:[#allocation28_spill] sm:$0xff]  ;;  %v2003_v58 = vpop.xlane.xlu0 %2002 }
 0x415   : > { %v2826_v10 = vsub.f32 %v8291_v39, %v7086_v52  ;;  %5657 = vpow2.f32 %v2901_v15  ;;  %v2903_v15 = vmul.f32 1.442695, %v2843_v37 }
 0x416   : > { %5659 = vpow2.f32 %v2899_v46 }
 0x417   : > { %2975 = vadd.xlane.f32.xlu1 %v2974_v50  ;;  %v7176_v50 = vpop.eup %5645  ;;  %v2869_v52 = vmul.f32 1.442695, %v2826_v10  ;;  %v2905_v10 = vmul.f32 1.442695, %v2844_v33 }
 0x418   : > { %2972 = vadd.xlane.f32.xlu0 %v2971_v41  ;;  %v2977_v41 = vsel %vm1808_vm3, %v7168_v36, 0.0  ;;  %v7180_v43 = vpop.eup %5647  ;;  %v2932_v47 = vsel %vm1808_vm3, %v7176_v50, 0.0 }
 0x419   : > { %8293 = vst [vmem:[#allocation22_spill] sm:$0xff] %v7180_v43  ;;  %5661 = vpow2.f32 %v2869_v52 }
 0x41a   : > { %5663 = vpow2.f32 %v2867_v19 }
 0x41b   : > { %2927 = vadd.xlane.f32.xlu1 %v2926_v13  ;;  %v7186_v13 = vpop.eup %5649  ;;  %5665 = vpow2.f32 %v2905_v10 }
 0x41c   : > { %2924 = vadd.xlane.f32.xlu0 %v2923_v63  ;;  %8296 = vst [vmem:[#allocation23_spill] sm:$0xff] %v7186_v13  ;;  %v2929_v63 = vsel %vm1808_vm3, %v7180_v43, 0.0  ;;  %v7190_v39 = vpop.eup %5651  ;;  %v2986_v32 = vsel %vm1808_vm3, %v7186_v13, 0.0  ;;  %5667 = vpow2.f32 %v2903_v15 }
 0x41d   : > { %8297 = vst [vmem:[#allocation30_spill] sm:$0xff] %v7190_v39  ;;  %v7194_v28 = vpop.eup %5653  ;;  %v2983_v46 = vsel %vm1808_vm3, %v7190_v39, 0.0  ;;  %v8307_v39 = vld [vmem:[#allocation39_spill] sm:$0xff] }
 0x41e   : > { %8298 = vst [vmem:[#allocation31_spill] sm:$0xff] %v7194_v28  ;;  %v7198_v51 = vpop.eup %5655 }
 0x41f   : > { %2981 = vadd.xlane.f32.xlu1 %v2980_v22  ;;  %8299 = vst [vmem:[#allocation24_spill] sm:$0xff] %v7198_v51  ;;  %v2006_v22 = vpop.xlane.xlu1 %2005  ;;  %v7202_v52 = vpop.eup %5657  ;;  %v2935_v56 = vsel %vm1808_vm3, %v7198_v51, 0.0 }
 0x420   : > { %2978 = vadd.xlane.f32.xlu0 %v2977_v41  ;;  %v2938_v41 = vsel %vm1808_vm3, %v7194_v28, 0.0  ;;  %8300 = vst [vmem:[#allocation25_spill] sm:$0xff] %v7202_v52  ;;  %v7206_v33 = vpop.eup %5659  ;;  %v2992_v35 = vsel %vm1808_vm3, %v7202_v52, 0.0  ;;  %5669 = vrcp.f32 %v2006_v22 }
 0x421   : > { %8301 = vst [vmem:[#allocation32_spill] sm:$0xff] %v7206_v33  ;;  %5671 = vrcp.f32 %v2003_v58  ;;  %v8306_v58 = vld [vmem:[#allocation38_spill] sm:$0xff] }
 0x423   : > { %2933 = vadd.xlane.f32.xlu1 %v2932_v47  ;;  %v2012_v19 = vpop.xlane.xlu1 %2011  ;;  %v7210_v37 = vpop.eup %5661 }
 0x424   : > { %2930 = vadd.xlane.f32.xlu0 %v2929_v63  ;;  %8302 = vst [vmem:[#allocation33_spill] sm:$0xff] %v7210_v37  ;;  %v2009_v47 = vpop.xlane.xlu0 %2008  ;;  %v2989_v63 = vsel %vm1808_vm3, %v7206_v33, 0.0  ;;  %v7214_v10 = vpop.eup %5663  ;;  %v2944_v15 = vsel %vm1808_vm3, %v7210_v37, 0.0 }
 0x425   : > { %8303 = vst [vmem:[#allocation26_spill] sm:$0xff] %v7214_v10 }
 0x427   : > { %2987 = vadd.xlane.f32.xlu1 %v2986_v32  ;;  %v7218_v32 = vpop.eup %5665 }
 0x428   : > { %2984 = vadd.xlane.f32.xlu0 %v2983_v46  ;;  %8304 = vst [vmem:[#allocation27_spill] sm:$0xff] %v7218_v32  ;;  %v2941_v46 = vsel %vm1808_vm3, %v7214_v10, 0.0  ;;  %v2998_v33 = vsel %vm1808_vm3, %v7218_v32, 0.0 }
 0x42b   : > { %2939 = vadd.xlane.f32.xlu1 %v2938_v41  ;;  %v7222_v41 = vpop.eup %5667 }
 0x42c   : > { %2936 = vadd.xlane.f32.xlu0 %v2935_v56  ;;  %8305 = vst [vmem:[#allocation34_spill] sm:$0xff] %v7222_v41  ;;  %v2018_v56 = vpop.xlane.xlu1 %2017  ;;  %v5670_v52 = vpop.eup %5669 }
 0x42f   : > { %2993 = vadd.xlane.f32.xlu1 %v2992_v35  ;;  %v2015_v35 = vpop.xlane.xlu0 %2014 }
 0x430   : > { %2990 = vadd.xlane.f32.xlu0 %v2989_v63  ;;  %v2995_v63 = vsel %vm1808_vm3, %v7222_v41, 0.0 }
 0x433   : > { %2945 = vadd.xlane.f32.xlu1 %v2944_v15 }
 0x434   : > { %2942 = vadd.xlane.f32.xlu0 %v2941_v46  ;;  %v5672_v46 = vpop.eup %5671 }
 0x435   : > { %v2129_v13 = vmul.f32 %v5672_v46, %v8307_v39 }
 0x437   : > { %2999 = vadd.xlane.f32.xlu1 %v2998_v33  ;;  %v2130_v33 = vmul.f32 %v5670_v52, %v8306_v58 }
 0x438   : > { %2996 = vadd.xlane.f32.xlu0 %v2995_v63  ;;  %v2054_v37 = vpop.xlane.xlu1 %2053 }
 0x439   : > { %5673 = vrcp.f32 %v2054_v37  ;;  %v2051_v15 = vpop.xlane.xlu0 %2050  ;;  %v5331_v39 = vpack.c.bf16 %v2130_v33, %v2129_v13 }
 0x43a   : > { %5675 = vrcp.f32 %v2051_v15 }
 0x43b   : > { %5677 = vrcp.f32 %v2012_v19 }
 0x43c   : > { %v2024_v10 = vpop.xlane.xlu1 %2023  ;;  %5679 = vrcp.f32 %v2009_v47 }
 0x43d   : > { %v2021_v51 = vpop.xlane.xlu0 %2020 }
 0x440   : > { %v2060_v28 = vpop.xlane.xlu1 %2059 }
 0x441   : > { %5681 = vrcp.f32 %v2060_v28 }
 0x443   : > { %v5674_v22 = vpop.eup %5673 }
 0x444   : > { %v5676_v32 = vpop.eup %5675  ;;  %v2057_v41 = vpop.xlane.xlu0 %2056  ;;  %v2146_v37 = vmul.f32 %v5674_v22, %v6931_v30  ;;  %v8310_v22 = vld [vmem:[#allocation40_spill] sm:$0xff] }
 0x445   : > { %v2760_v63 = vpop.xlane.xlu1 %2759  ;;  %5683 = vrcp.f32 %v2057_v41  ;;  %v2145_v43 = vmul.f32 %v5676_v32, %v6933_v31 }
 0x446   : > { %v2828_v15 = vsub.f32 %v6813_v6, %v2760_v63  ;;  %v5678_v6 = vpop.eup %5677  ;;  %v8311_v63 = vld [vmem:[#allocation41_spill] sm:$0xff] }
 0x447   : > { %v5328_v47 = vpack.c.bf16 %v2146_v37, %v2145_v43  ;;  %v5680_v31 = vpop.eup %5679  ;;  %v2132_v33 = vmul.f32 %v5678_v6, %v8310_v22 }
 0x448   : > { %v2873_v28 = vmul.f32 1.442695, %v2828_v15  ;;  %v2757_v52 = vpop.xlane.xlu0 %2756 }
 0x449   : > { %v2066_v58 = vpop.xlane.xlu1 %2065  ;;  %v2827_v46 = vsub.f32 %v6815_v11, %v2757_v52  ;;  %5330 = vmatprep.subr.msk.bf16.mxu1 %vm7235_vm6, %v5328_v47 }
 0x44a   : > { %5685 = vpow2.f32 %v2873_v28  ;;  %5333 = vmatpush3.bf16.xpose.msk.msra.mxu1 %vm7235_vm6, %v5331_v39 }
 0x44b   : > { %5687 = vrcp.f32 %v2018_v56  ;;  %v2871_v30 = vmul.f32 1.442695, %v2827_v46  ;;  %v5682_v41 = vpop.eup %5681  ;;  %v2131_v56 = vmul.f32 %v5680_v31, %v8311_v63 }
 0x44c   : > { %5689 = vrcp.f32 %v2015_v35  ;;  %v2063_v32 = vpop.xlane.xlu0 %2062  ;;  %v2148_v47 = vmul.f32 %v5682_v41, %v6950_v59  ;;  %v8313_v41 = vld [vmem:[#allocation43_spill] sm:$0xff] }
 0x44d   : > { %5691 = vrcp.f32 %v2066_v58  ;;  %v2814_v43 = vpop.xlane.xlu1 %2813  ;;  %v5337_v46 = vpack.c.bf16 %v2132_v33, %v2131_v56 }
 0x44e   : > { %5693 = vpow2.f32 %v2871_v30  ;;  %v2846_v13 = vsub.f32 %v6887_v1, %v2814_v43 }
 0x44f   : > { %5695 = vrcp.f32 %v2063_v32  ;;  %v5684_v11 = vpop.eup %5683  ;;  %v8312_v32 = vld [vmem:[#allocation42_spill] sm:$0xff] }
 0x450   : > { %v2909_v37 = vmul.f32 1.442695, %v2846_v13  ;;  %v2811_v15 = vpop.xlane.xlu0 %2810  ;;  %v2147_v35 = vmul.f32 %v5684_v11, %v6956_v16 }
 0x451   : > { %v2072_v28 = vpop.xlane.xlu1 %2071  ;;  %v2845_v52 = vsub.f32 %v6891_v60, %v2811_v15 }
 0x452   : > { %5697 = vpow2.f32 %v2909_v37  ;;  %v5334_v58 = vpack.c.bf16 %v2148_v47, %v2147_v35 }
 0x453   : > { %5699 = vrcp.f32 %v2024_v10  ;;  %v2907_v1 = vmul.f32 1.442695, %v2845_v52 }
 0x454   : > { %v7250_v39 = vpop.eup %5685  ;;  %5701 = vrcp.f32 %v2021_v51  ;;  %v2069_v30 = vpop.xlane.xlu0 %2068  ;;  %5336 = vmatprep.subr.msk.bf16.mxu1 %vm7235_vm6, %v5334_v58 }
 0x455   : > { %v5688_v6 = vpop.eup %5687  ;;  %5703 = vrcp.f32 %v2072_v28  ;;  %v2030_v31 = vpop.xlane.xlu1 %2029  ;;  %v2950_v59 = vsel %vm1808_vm3, %v7250_v39, 0.0  ;;  %5339 = vmatpush3.bf16.xpose.msk.msra.mxu1 %vm7235_vm6, %v5337_v46 }
 0x456   : > { %v5690_v16 = vpop.eup %5689  ;;  %5705 = vpow2.f32 %v2907_v1  ;;  %2951 = vadd.xlane.f32.xlu1 %v2950_v59  ;;  %v2134_v43 = vmul.f32 %v5688_v6, %v8312_v32 }
 0x457   : > { %v5692_v60 = vpop.eup %5691  ;;  %5707 = vrcp.f32 %v2069_v30  ;;  %v2133_v13 = vmul.f32 %v5690_v16, %v8313_v41 }
 0x458   : > { %v7258_v51 = vpop.eup %5693  ;;  %v2027_v11 = vpop.xlane.xlu0 %2026  ;;  %v2150_v56 = vmul.f32 %v5692_v60, %v6964_v42 }
 0x459   : > { %v5696_v10 = vpop.eup %5695  ;;  %v2078_v22 = vpop.xlane.xlu1 %2077  ;;  %v2947_v33 = vsel %vm1808_vm3, %v7258_v51, 0.0  ;;  %5709 = vrcp.f32 %v2027_v11  ;;  %v5343_v52 = vpack.c.bf16 %v2134_v43, %v2133_v13 }
 0x45a   : > { %2948 = vadd.xlane.f32.xlu0 %v2947_v33  ;;  %v2149_v63 = vmul.f32 %v5696_v10, %v6974_v38  ;;  %5711 = vrcp.f32 %v2078_v22 }
 0x45b   : > { %5713 = vrcp.f32 %v2030_v31 }
 0x45c   : > { %v7266_v37 = vpop.eup %5697  ;;  %v5340_v15 = vpack.c.bf16 %v2150_v56, %v2149_v63  ;;  %v2075_v35 = vpop.xlane.xlu0 %2074 }
 0x45d   : > { %v5700_v28 = vpop.eup %5699  ;;  %v2766_v47 = vpop.xlane.xlu1 %2765  ;;  %v3004_v58 = vsel %vm1808_vm3, %v7266_v37, 0.0  ;;  %5715 = vrcp.f32 %v2075_v35 }
 0x45e   : > { %v5702_v1 = vpop.eup %5701  ;;  %5342 = vmatprep.subr.msk.bf16.mxu1 %vm7235_vm6, %v5340_v15  ;;  %v2830_v42 = vsub.f32 %v6817_v21, %v2766_v47  ;;  %3005 = vadd.xlane.f32.xlu1 %v3004_v58  ;;  %v2136_v31 = vmul.f32 %v5700_v28, %v6937_v54 }
 0x45f   : > { %v5704_v38 = vpop.eup %5703  ;;  %5345 = vmatpush3.bf16.xpose.msk.msra.mxu1 %vm7235_vm6, %v5343_v52  ;;  %v2135_v59 = vmul.f32 %v5702_v1, %v6942_v25 }
 0x460   : > { %v7275_v46 = vpop.eup %5705  ;;  %v2877_v6 = vmul.f32 1.442695, %v2830_v42  ;;  %v2763_v16 = vpop.xlane.xlu0 %2762  ;;  %v2152_v43 = vmul.f32 %v5704_v38, %v6982_v45 }
 0x461   : > { %v5708_v30 = vpop.eup %5707  ;;  %v2084_v60 = vpop.xlane.xlu1 %2083  ;;  %v3001_v10 = vsel %vm1808_vm3, %v7275_v46, 0.0  ;;  %v2829_v21 = vsub.f32 %v6819_v24, %v2763_v16  ;;  %v5349_v25 = vpack.c.bf16 %v2136_v31, %v2135_v59 }
 0x462   : > { %5717 = vpow2.f32 %v2877_v6  ;;  %3002 = vadd.xlane.f32.xlu0 %v3001_v10  ;;  %v2151_v32 = vmul.f32 %v5708_v30, %v6988_v12 }
 0x463   : > { %v2875_v41 = vmul.f32 1.442695, %v2829_v21  ;;  %v5710_v11 = vpop.eup %5709  ;;  %5719 = vrcp.f32 %v2084_v60 }
 0x464   : > { %v5346_v13 = vpack.c.bf16 %v2152_v43, %v2151_v32  ;;  %v2081_v54 = vpop.xlane.xlu0 %2080  ;;  %v5712_v33 = vpop.eup %5711  ;;  %v2137_v45 = vmul.f32 %v5710_v11, %v6998_v61 }
 0x465   : > { %v2036_v22 = vpop.xlane.xlu1 %2035  ;;  %5721 = vpow2.f32 %v2875_v41  ;;  %v5714_v63 = vpop.eup %5713  ;;  %v2154_v28 = vmul.f32 %v5712_v33, %v7002_v53 }
 0x466   : > { %5348 = vmatprep.subr.msk.bf16.mxu1 %vm7235_vm6, %v5346_v13  ;;  %5723 = vrcp.f32 %v2081_v54  ;;  %v2138_v35 = vmul.f32 %v5714_v63, %v6984_v9 }
 0x467   : > { %5351 = vmatpush3.bf16.xpose.msk.msra.mxu1 %vm7235_vm6, %v5349_v25  ;;  %v5716_v24 = vpop.eup %5715  ;;  %5725 = vrcp.f32 %v2036_v22 }
 0x468   : > { %v2033_v12 = vpop.xlane.xlu0 %2032  ;;  %v2153_v15 = vmul.f32 %v5716_v24, %v7008_v40  ;;  %v5355_v42 = vpack.c.bf16 %v2138_v35, %v2137_v45 }
 0x469   : > { %v2090_v56 = vpop.xlane.xlu1 %2089  ;;  %5727 = vrcp.f32 %v2033_v12 }
 0x46a   : > { %v5352_v47 = vpack.c.bf16 %v2154_v28, %v2153_v15  ;;  %5729 = vrcp.f32 %v2090_v56 }
 0x46c   : > { %v7292_v52 = vpop.eup %5717  ;;  %v2087_v58 = vpop.xlane.xlu0 %2086  ;;  %5354 = vmatprep.subr.msk.bf16.mxu1 %vm7235_vm6, %v5352_v47  ;;  %v8315_v47 = vld [vmem:[#allocation45_spill] sm:$0xff] }
 0x46d   : > { %v2042_v1 = vpop.xlane.xlu1 %2041  ;;  %v2956_v61 = vsel %vm1808_vm3, %v7292_v52, 0.0  ;;  %5731 = vrcp.f32 %v2087_v58  ;;  %v5720_v40 = vpop.eup %5719  ;;  %v8316_v58 = vld [vmem:[#allocation46_spill] sm:$0xff] }
 0x46e   : > { %2957 = vadd.xlane.f32.xlu1 %v2956_v61  ;;  %5733 = vrcp.f32 %v2042_v1  ;;  %v2156_v16 = vmul.f32 %v5720_v40, %v7020_v57  ;;  %v3241_v1 = vld [vmem:[%s8127_s9] sm:$0xf] }
 0x46f   : > { %5357 = vmatpush3.bf16.xpose.msk.msra.mxu1 %vm7235_vm6, %v5355_v42  ;;  %v7300_v9 = vpop.eup %5721  ;;  %v8318_v61 = vld [vmem:[#allocation20_spill] sm:$0xff] }
 0x470   : > { %v5724_v53 = vpop.eup %5723  ;;  %v2039_v38 = vpop.xlane.xlu0 %2038  ;;  %v2953_v30 = vsel %vm1808_vm3, %v7300_v9, 0.0 }
 0x471   : > { %v2096_v6 = vpop.xlane.xlu1 %2095  ;;  %v5726_v31 = vpop.eup %5725  ;;  %5735 = vrcp.f32 %v2039_v38  ;;  %2954 = vadd.xlane.f32.xlu0 %v2953_v30  ;;  %v2155_v59 = vmul.f32 %v5724_v53, %v7028_v18 }
 0x472   : > { %5737 = vrcp.f32 %v2096_v6  ;;  %v2140_v21 = vmul.f32 %v5726_v31, %v7022_v23 }
 0x473   : > { %v5728_v60 = vpop.eup %5727  ;;  %v5358_v10 = vpack.c.bf16 %v2156_v16, %v2155_v59 }
 0x474   : > { %v2139_v32 = vmul.f32 %v5728_v60, %v7038_v62  ;;  %v2093_v43 = vpop.xlane.xlu0 %2092  ;;  %v5730_v13 = vpop.eup %5729 }
 0x475   : > { %v2048_v41 = vpop.xlane.xlu1 %2047  ;;  %5739 = vrcp.f32 %v2093_v43  ;;  %5360 = vmatprep.subr.msk.bf16.mxu1 %vm7235_vm6, %v5358_v10  ;;  %v2158_v23 = vmul.f32 %v5730_v13, %v7040_v2  ;;  %v8314_v2 = vld [vmem:[#allocation44_spill] sm:$0xff] }
 0x476   : > { %v5361_v11 = vpack.c.bf16 %v2140_v21, %v2139_v32  ;;  %5741 = vrcp.f32 %v2048_v41 }
 0x477   : > { %v5732_v54 = vpop.eup %5731 }
 0x478   : > { %v2045_v18 = vpop.xlane.xlu0 %2044  ;;  %5363 = vmatpush3.bf16.xpose.msk.msra.mxu1 %vm7235_vm6, %v5361_v11  ;;  %v2157_v57 = vmul.f32 %v5732_v54, %v7048_v4  ;;  %v5734_v22 = vpop.eup %5733 }
 0x479   : > { %5743 = vrcp.f32 %v2045_v18  ;;  %v2142_v33 = vmul.f32 %v5734_v22, %v7042_v27 }
 0x47a   : > { %v5364_v62 = vpack.c.bf16 %v2158_v23, %v2157_v57 }
 0x47b   : > { %v5736_v25 = vpop.eup %5735 }
 0x47c   : > { %v2141_v63 = vmul.f32 %v5736_v25, %v7054_v8  ;;  %5366 = vmatprep.subr.msk.bf16.mxu1 %vm7235_vm6, %v5364_v62  ;;  %v5738_v24 = vpop.eup %5737 }
 0x47d   : > { %v2160_v56 = vmul.f32 %v5738_v24, %v8314_v2 }
 0x47e   : > { %v5367_v45 = vpack.c.bf16 %v2142_v33, %v2141_v63 }
 0x47f   : > { %v5740_v12 = vpop.eup %5739 }
 0x480   : > { %5369 = vmatpush3.bf16.xpose.msk.msra.mxu1 %vm7235_vm6, %v5367_v45  ;;  %v2159_v4 = vmul.f32 %v5740_v12, %v7068_v44  ;;  %v5742_v15 = vpop.eup %5741  ;;  %v8317_v44 = vld [vmem:[#allocation21_spill] sm:$0xff] }
 0x481   : > { %v2144_v27 = vmul.f32 %v5742_v15, %v8315_v47 }
 0x482   : > { %v5370_v28 = vpack.c.bf16 %v2160_v56, %v2159_v4 }
 0x483   : > { %v5744_v35 = vpop.eup %5743 }
 0x484   : > { %v2143_v8 = vmul.f32 %v5744_v35, %v8316_v58  ;;  %5372 = vmatprep.subr.msk.bf16.mxu1 %vm7235_vm6, %v5370_v28 }
 0x486   : > { %v5373_v42 = vpack.c.bf16 %v2144_v27, %v2143_v8 }
 0x487   : > { %3244 = vperm.xlu0 %5549, %v3241_v1  }
 0x488   : > { %5375 = vmatpush3.bf16.xpose.msk.msra.mxu1 %vm7235_vm6, %v5373_v42 }
 0x48f   : > { %5120 = vmatmul.mubr.msk.f32.vlgmr.msra.gmra.mrb[10].mxu1 %vm1808_vm3, %v8317_v44 }
 0x490   : > { %5186 = vmatprep.mubr.msk.f32.mxu1 %vm1808_vm3, %v8318_v61 }
 0x494   : > { %v2964_v40 = vpop.xlane.xlu1 %2963 }
 0x495   : > { %5745 = vrcp.f32 %v2964_v40  ;;  %v2961_v53 = vpop.xlane.xlu0 %2960 }
 0x496   : > { %5747 = vrcp.f32 %v2961_v53 }
 0x498   : > { %v2916_v38 = vpop.xlane.xlu1 %2915 }
 0x499   : > { %5749 = vrcp.f32 %v2916_v38  ;;  %v2913_v6 = vpop.xlane.xlu0 %2912 }
 0x49a   : > { %5751 = vrcp.f32 %v2913_v6 }
 0x49c   : > { %v2970_v30 = vpop.xlane.xlu1 %2969 }
 0x49d   : > { %5753 = vrcp.f32 %v2970_v30  ;;  %v2967_v31 = vpop.xlane.xlu0 %2966 }
 0x49e   : > { %5755 = vrcp.f32 %v2967_v31 }
 0x49f   : > { %v5746_v59 = vpop.eup %5745 }
 0x4a0   : > { %v5748_v16 = vpop.eup %5747  ;;  %v2922_v60 = vpop.xlane.xlu1 %2921  ;;  %v3056_v10 = vmul.f32 %v5746_v59, %v7100_v26  ;;  %v8319_v59 = vld [vmem:[#allocation22_spill] sm:$0xff] }
 0x4a1   : > { %5757 = vrcp.f32 %v2922_v60  ;;  %v2919_v21 = vpop.xlane.xlu0 %2918  ;;  %v3055_v32 = vmul.f32 %v5748_v16, %v7104_v49 }
 0x4a2   : > { %5759 = vrcp.f32 %v2919_v21 }
 0x4a3   : > { %v5750_v43 = vpop.eup %5749  ;;  %v5376_v41 = vpack.c.bf16 %v3056_v10, %v3055_v32 }
 0x4a4   : > { %v5752_v13 = vpop.eup %5751  ;;  %v3040_v11 = vmul.f32 %v5750_v43, %v7110_v3  ;;  %v2976_v54 = vpop.xlane.xlu1 %2975 }
 0x4a5   : > { %v3039_v18 = vmul.f32 %v5752_v13, %v7114_v48  ;;  %5761 = vrcp.f32 %v2976_v54  ;;  %v2973_v57 = vpop.xlane.xlu0 %2972  ;;  %5378 = vmatprep.subr.msk.bf16.mxu1 %vm7235_vm6, %v5376_v41 }
 0x4a6   : > { %5763 = vrcp.f32 %v2973_v57  ;;  %v8322_v57 = vld [vmem:[#allocation31_spill] sm:$0xff] }
 0x4a7   : > { %v5754_v26 = vpop.eup %5753  ;;  %v5379_v23 = vpack.c.bf16 %v3040_v11, %v3039_v18 }
 0x4a8   : > { %v5756_v22 = vpop.eup %5755  ;;  %v2928_v62 = vpop.xlane.xlu1 %2927  ;;  %v3058_v49 = vmul.f32 %v5754_v26, %v7120_v29 }
 0x4a9   : > { %5765 = vrcp.f32 %v2928_v62  ;;  %v2925_v25 = vpop.xlane.xlu0 %2924  ;;  %5381 = vmatpush3.bf16.xpose.msk.msra.mxu1 %vm7235_vm6, %v5379_v23  ;;  %v3057_v3 = vmul.f32 %v5756_v22, %v7124_v55  ;;  %v8323_v22 = vld [vmem:[#allocation24_spill] sm:$0xff] }
 0x4aa   : > { %5767 = vrcp.f32 %v2925_v25 }
 0x4ab   : > { %v5758_v48 = vpop.eup %5757  ;;  %v5382_v33 = vpack.c.bf16 %v3058_v49, %v3057_v3 }
 0x4ac   : > { %v5760_v63 = vpop.eup %5759  ;;  %v3042_v24 = vmul.f32 %v5758_v48, %v7132_v20  ;;  %v2982_v45 = vpop.xlane.xlu1 %2981 }
 0x4ad   : > { %v3041_v12 = vmul.f32 %v5760_v63, %v7136_v5  ;;  %5769 = vrcp.f32 %v2982_v45  ;;  %v2979_v4 = vpop.xlane.xlu0 %2978  ;;  %5384 = vmatprep.subr.msk.bf16.mxu1 %vm7235_vm6, %v5382_v33  ;;  %v8324_v33 = vld [vmem:[#allocation25_spill] sm:$0xff] }
 0x4ae   : > { %5771 = vrcp.f32 %v2979_v4 }
 0x4af   : > { %v5762_v29 = vpop.eup %5761  ;;  %v5385_v2 = vpack.c.bf16 %v3042_v24, %v3041_v12  ;;  %v8325_v24 = vld [vmem:[#allocation32_spill] sm:$0xff] }
 0x4b0   : > { %v5764_v56 = vpop.eup %5763  ;;  %v2934_v15 = vpop.xlane.xlu1 %2933  ;;  %v3060_v55 = vmul.f32 %v5762_v29, %v7142_v34 }
 0x4b1   : > { %5773 = vrcp.f32 %v2934_v15  ;;  %v2931_v28 = vpop.xlane.xlu0 %2930  ;;  %5387 = vmatpush3.bf16.xpose.msk.msra.mxu1 %vm7235_vm6, %v5385_v2  ;;  %v3059_v20 = vmul.f32 %v5764_v56, %v7146_v7  ;;  %v8326_v2 = vld [vmem:[#allocation33_spill] sm:$0xff]  ;;  %v8327_v15 = vld [vmem:[#allocation26_spill] sm:$0xff] }
 0x4b2   : > { %5775 = vrcp.f32 %v2931_v28 }
 0x4b3   : > { %v5766_v5 = vpop.eup %5765  ;;  %v5388_v35 = vpack.c.bf16 %v3060_v55, %v3059_v20 }
 0x4b4   : > { %v5768_v47 = vpop.eup %5767  ;;  %v3044_v27 = vmul.f32 %v5766_v5, %v7154_v17  ;;  %v2988_v58 = vpop.xlane.xlu1 %2987 }
 0x4b5   : > { %v3043_v8 = vmul.f32 %v5768_v47, %v7158_v14  ;;  %5777 = vrcp.f32 %v2988_v58  ;;  %v2985_v1 = vpop.xlane.xlu0 %2984  ;;  %5390 = vmatprep.subr.msk.bf16.mxu1 %vm7235_vm6, %v5388_v35  ;;  %v8328_v35 = vld [vmem:[#allocation27_spill] sm:$0xff] }
 0x4b6   : > { %5779 = vrcp.f32 %v2985_v1 }
 0x4b7   : > { %v5770_v34 = vpop.eup %5769  ;;  %v5391_v42 = vpack.c.bf16 %v3044_v27, %v3043_v8  ;;  %v8329_v27 = vld [vmem:[#allocation34_spill] sm:$0xff] }
 0x4b8   : > { %v5772_v44 = vpop.eup %5771  ;;  %v2940_v40 = vpop.xlane.xlu1 %2939  ;;  %v3062_v7 = vmul.f32 %v5770_v34, %v7164_v0 }
 0x4b9   : > { %5781 = vrcp.f32 %v2940_v40  ;;  %v2937_v53 = vpop.xlane.xlu0 %2936  ;;  %5393 = vmatpush3.bf16.xpose.msk.msra.mxu1 %vm7235_vm6, %v5391_v42  ;;  %v3061_v17 = vmul.f32 %v5772_v44, %v7168_v36  ;;  %v8320_v36 = vld [vmem:[#allocation23_spill] sm:$0xff] }
 0x4ba   : > { %5783 = vrcp.f32 %v2937_v53 }
 0x4bb   : > { %v5774_v14 = vpop.eup %5773  ;;  %v5394_v38 = vpack.c.bf16 %v3062_v7, %v3061_v17 }
 0x4bc   : > { %v5776_v6 = vpop.eup %5775  ;;  %v3046_v30 = vmul.f32 %v5774_v14, %v7176_v50  ;;  %v2994_v31 = vpop.xlane.xlu1 %2993  ;;  %v8321_v50 = vld [vmem:[#allocation30_spill] sm:$0xff] }
 0x4bd   : > { %v3045_v16 = vmul.f32 %v5776_v6, %v8319_v59  ;;  %5785 = vrcp.f32 %v2994_v31  ;;  %v2991_v60 = vpop.xlane.xlu0 %2990  ;;  %5396 = vmatprep.subr.msk.bf16.mxu1 %vm7235_vm6, %v5394_v38 }
 0x4be   : > { %5787 = vrcp.f32 %v2991_v60 }
 0x4bf   : > { %v5778_v0 = vpop.eup %5777  ;;  %v5397_v10 = vpack.c.bf16 %v3046_v30, %v3045_v16 }
 0x4c0   : > { %v5780_v21 = vpop.eup %5779  ;;  %v2946_v32 = vpop.xlane.xlu1 %2945  ;;  %v3064_v43 = vmul.f32 %v5778_v0, %v8320_v36  ;;  %v3240_v36 = vld [vmem:[%s8126_s8] sm:$0xf] }
 0x4c1   : > { %5789 = vrcp.f32 %v2946_v32  ;;  %v2943_v41 = vpop.xlane.xlu0 %2942  ;;  %5399 = vmatpush3.bf16.xpose.msk.msra.mxu1 %vm7235_vm6, %v5397_v10  ;;  %v3063_v13 = vmul.f32 %v5780_v21, %v8321_v50 }
 0x4c2   : > { %5791 = vrcp.f32 %v2943_v41 }
 0x4c3   : > { %v5782_v11 = vpop.eup %5781  ;;  %v5400_v54 = vpack.c.bf16 %v3064_v43, %v3063_v13  ;;  %v8331_v13 = vld [vmem:[#allocation19_spill] sm:$0xff] }
 0x4c4   : > { %v5784_v18 = vpop.eup %5783  ;;  %v3048_v26 = vmul.f32 %v5782_v11, %v8322_v57  ;;  %v3000_v23 = vpop.xlane.xlu1 %2999  ;;  %v3497_v57 = vld [vmem:[%s8334_s18] sm:$0x3]  ;;  %s5037_s18 = sshll.u32 %s6280_s25, 7  ;;  %s6173_s25 = smov [#allocation8]  }
 0x4c5   : > { %v3047_v62 = vmul.f32 %v5784_v18, %v8323_v22  ;;  %5793 = vrcp.f32 %v3000_v23  ;;  %v2997_v49 = vpop.xlane.xlu0 %2996  ;;  %5402 = vmatprep.subr.msk.bf16.mxu1 %vm7235_vm6, %v5400_v54  ;;  %v6001_v54 = vld [vmem:[%s555_s28] sm:$0xff]  ;;  %v3498_v23 = vld [vmem:[%s8336_s16] sm:$0x3]  ;;  %s8074_s16 = scalar_lea.hbm %s8412_s13, %s5037_s18  ;;  %s6097_s26 = sshll.u32 %s6173_s25, 4  ;;  %s6098_s26 = int_to_ptr.vmem [resolvable:$false] %s6097_s26 }
 0x4c6   : > { %5795 = vrcp.f32 %v2997_v49  ;;  %p6100_p3 = scmp.lt.s32.totalorder %s8076_s19, %s6098_s26 }
 0x4c7   : > { %v5786_v25 = vpop.eup %5785  ;;  %v5403_v3 = vpack.c.bf16 %v3048_v26, %v3047_v62  ;;  %v3411_v26 = vld [vmem:[%s8335_s12] sm:$0xf] }
 0x4c8   : > { %v5788_v48 = vpop.eup %5787  ;;  %v3066_v63 = vmul.f32 %v5786_v25, %v8324_v33  ;;  %3414 = vperm.xlu1 %5550, %v3411_v26   ;;  %v6002_v33 = vld [vmem:[%s546_s10] sm:$0xff] }
 0x4c9   : > { %5405 = vmatpush3.bf16.xpose.msk.msra.mxu1 %vm7235_vm6, %v5403_v3  ;;  %v3065_v45 = vmul.f32 %v5788_v48, %v8325_v24  ;;  %v8337_v3 = vld [vmem:[#allocation18_spill] sm:$0xff]  ;;  %v3410_v24 = vld [vmem:[%s8340_s29] sm:$0xf]  ;;  %s6099_s29 = scalar_lea.vmem %s6098_s26, 256 }
 0x4ca   : > { %p6101_p8 = scmp.lt.s32.totalorder %s6099_s29, %s6093_s17 }
 0x4cb   : > { %v5790_v12 = vpop.eup %5789  ;;  %v5406_v4 = vpack.c.bf16 %v3066_v63, %v3065_v45 }
 0x4cc   : > { %v5792_v29 = vpop.eup %5791  ;;  %v3050_v56 = vmul.f32 %v5790_v12, %v8326_v2  ;;  %3501 = vperm.xlu1 %5550, %v3498_v23   ;;  %p6102_p10 = por %p6101_p8, %p6100_p3 }
 0x4cd   : > { %v3049_v55 = vmul.f32 %v5792_v29, %v8327_v15  ;;  %5408 = vmatprep.subr.msk.bf16.mxu1 %vm7235_vm6, %v5406_v4 }
 0x4ce   : > { %p6103_p11 = pnand %p6102_p10, %p6096_p12 }
 0x4cf   : > { %v5794_v28 = vpop.eup %5793  ;;  %v5409_v20 = vpack.c.bf16 %v3050_v56, %v3049_v55 }
 0x4d0   : > { %v5796_v5 = vpop.eup %5795  ;;  %v3068_v47 = vmul.f32 %v5794_v28, %v8328_v35 }
 0x4d1   : > { %5411 = vmatpush3.bf16.xpose.msk.msra.mxu1 %vm7235_vm6, %v5409_v20  ;;  %v3067_v58 = vmul.f32 %v5796_v5, %v8329_v27 }
 0x4d3   : > { %v5412_v8 = vpack.c.bf16 %v3068_v47, %v3067_v58 }
 0x4d5   : > { %5414 = vmatprep.subr.msk.bf16.mxu1 %vm7235_vm6, %v5412_v8 }
 0x4e3   : > { %v2952_v1 = vpop.xlane.xlu1 %2951 }
 0x4e4   : > { %5797 = vrcp.f32 %v2952_v1 }
 0x4e7   : > { %v2949_v34 = vpop.xlane.xlu0 %2948 }
 0x4e8   : > { %5799 = vrcp.f32 %v2949_v34 }
 0x4eb   : > { %v3006_v42 = vpop.xlane.xlu1 %3005 }
 0x4ec   : > { %5801 = vrcp.f32 %v3006_v42 }
 0x4ee   : > { %v5798_v40 = vpop.eup %5797 }
 0x4ef   : > { %v3003_v44 = vpop.xlane.xlu0 %3002  ;;  %v3052_v53 = vmul.f32 %v5798_v40, %v7250_v39 }
 0x4f0   : > { %5803 = vrcp.f32 %v3003_v44 }
 0x4f2   : > { %v5800_v7 = vpop.eup %5799 }
 0x4f3   : > { %v3051_v17 = vmul.f32 %v5800_v7, %v7258_v51 }
 0x4f5   : > { %v5415_v14 = vpack.c.bf16 %v3052_v53, %v3051_v17 }
 0x4f6   : > { %v5802_v38 = vpop.eup %5801 }
 0x4f7   : > { %5417 = vmatpush3.bf16.xpose.msk.msra.mxu1 %vm7235_vm6, %v5415_v14  ;;  %v3070_v59 = vmul.f32 %v5802_v38, %v7266_v37  ;;  %v8330_v37 = vmov 0.0  }
 0x4fa   : > { %v5804_v6 = vpop.eup %5803 }
 0x4fb   : > { %v2958_v30 = vpop.xlane.xlu1 %2957  ;;  %v3069_v31 = vmul.f32 %v5804_v6, %v7275_v46 }
 0x4fc   : > { %5805 = vrcp.f32 %v2958_v30 }
 0x4fd   : > { %v5418_v16 = vpack.c.bf16 %v3070_v59, %v3069_v31 }
 0x4fe   : > { %v2955_v60 = vpop.xlane.xlu0 %2954 }
 0x4ff   : > { %5420 = vmatprep.subr.msk.bf16.mxu1 %vm7235_vm6, %v5418_v16  ;;  %5807 = vrcp.f32 %v2955_v60 }
 0x506   : > { %v5806_v39 = vpop.eup %5805 }
 0x507   : > { %v3054_v0 = vmul.f32 %v5806_v39, %v7292_v52 }
 0x509   : > { %v5808_v51 = vpop.eup %5807 }
 0x50a   : > { %v3053_v10 = vmul.f32 %v5808_v51, %v7300_v9  ;;  %v3245_v9 = vpop.permute.xlu0 %3244 }
 0x50c   : > { %v5421_v21 = vpack.c.bf16 %v3054_v0, %v3053_v10 }
 0x50e   : > { %5423 = vmatpush3.bf16.xpose.msk.msra.mxu1 %vm7235_vm6, %v5421_v21 }
 0x515   : > { %5187 = vmatmul.mubr.msk.f32.vlgmr.msra.gmra.mrb[12].mxu1 %vm1808_vm3, %v8318_v61 }
 0x516   : > { %3400 = vmatprep.mubr.f32.mxu1 %v8330_v37 }
 0x547   : > { %v3415_v45 = vpop.permute.xlu1 %3414 }
 0x54b   : > { %v3502_v12 = vpop.permute.xlu1 %3501 }
 0x562   : > { %v2325_v46 = vpop.f32.mrb[10].mxu1 }
 0x563   : > { %v2327_v32 = vpop.f32.mrb[11].mxu1 }
 0x564   : > { %4982 = vmatprep.subr.msk.mxu1 %vm1580_vm4, %v2327_v32 }
 0x565   : > { %4983 = vmatpush1.msk.msra.mxu1 %vm1580_vm4, %v2325_v46 }
 0x566   : > { %4984 = vmatmul.mubr.msk.f32.vlgmr.msra.gmra.mrb[14].mxu1 %vm1483_vm5, %v3240_v36 }
 0x567   : > { %3577 = vmatprep.mubr.f32.mxu1 %v8330_v37 }
 0x5e8   : > { %v3235_v19 = vpop.f32.mrb[12].mxu1 }
 0x5e9   : > { %v3237_v52 = vpop.f32.mrb[13].mxu1 }
 0x5ea   : > { %4979 = vmatprep.subr.msk.mxu0 %vm1580_vm4, %v3237_v52 }
 0x5eb   : > { %4980 = vmatpush1.msk.msra.mxu0 %vm1580_vm4, %v3235_v19 }
 0x5ec   : > { %4981 = vmatmul.mubr.msk.f32.vlgmr.msra.gmra.mrb[74].mxu0 %vm1483_vm5, %v3240_v36 }
 0x5ed   : > { %3490 = vmatprep.mubr.f32.mxu0 %v8330_v37 }
 0x639   : > { %v3402_v61 = vpop.f32.mrb[14].mxu1 }
 0x63a   : > { %v3403_v43 = vadd.f32 %v3402_v61, %v3245_v9  ;;  %v3404_v41 = vpop.f32.mrb[15].mxu1 }
 0x63b   : > { %v3405_v50 = vadd.f32 %v3404_v41, %v3245_v9 }
 0x63c   : > { %v7418_v18 = vadd.f32 %v6001_v54, %v3403_v43 }
 0x63d   : > { %v7414_v11 = vadd.f32 %v3405_v50, %v8331_v13 }
 0x63e   : > { %8333 = vst [vmem:[#allocation28_spill] sm:$0xff] %v7418_v18 }
 0x63f   : > { %8332 = vst [vmem:[#allocation35_spill] sm:$0xff] %v7414_v11  ;;  %4988 = vmatprep.subr.msk.mxu1 %vm642_vm1, %v7414_v11 }
 0x640   : > { %4989 = vmatpush1.msk.msra.mxu1 %vm642_vm1, %v7418_v18 }
 0x641   : > { %4990 = vmatmul.mubr.msk.f32.vlgmr.msra.gmra.mrb[16].mxu1 %vm638_vm2, %v3497_v57 }
 0x6bf   : > { %v3322_v22 = vpop.f32.mrb[74].mxu0 }
 0x6c0   : > { %v3323_v62 = vadd.f32 %v3322_v22, %v3245_v9  ;;  %v3324_v49 = vpop.f32.mrb[75].mxu0 }
 0x6c1   : > { %v3325_v25 = vadd.f32 %v3324_v49, %v3245_v9 }
 0x6c2   : > { %v7439_v63 = vadd.f32 %v6002_v33, %v3323_v62 }
 0x6c3   : > { %v7435_v48 = vadd.f32 %v3325_v25, %v8337_v3 }
 0x6c4   : > { %8339 = vst [vmem:[#allocation36_spill] sm:$0xff] %v7439_v63 }
 0x6c5   : > { %8338 = vst [vmem:[#allocation29_spill] sm:$0xff] %v7435_v48  ;;  %4985 = vmatprep.subr.msk.mxu0 %vm642_vm1, %v7435_v48 }
 0x6c6   : > { %4986 = vmatpush1.msk.msra.mxu0 %vm642_vm1, %v7439_v63 }
 0x6c7   : > { %4987 = vmatmul.mubr.msk.f32.vlgmr.msra.gmra.mrb[76].mxu0 %vm638_vm2, %v3410_v24 }
 0x6c8   : > { %3820 = vmatprep.mubr.f32.mxu0 %v8330_v37 }
 0x714   : > { %v3579_v4 = vpop.f32.mrb[16].mxu1 }
 0x715   : > { %v3581_v29 = vpop.f32.mrb[17].mxu1  ;;  %v3580_v2 = vadd.f32 %v3579_v4, %v3502_v12 }
 0x716   : > { %v3582_v56 = vadd.f32 %v3581_v29, %v3502_v12 }
 0x718   : > { %4991 = vmatprep.subr.msk.mxu0 %vm1580_vm4, %v3582_v56 }
 0x719   : > { %4992 = vmatpush1.msk.msra.mxu0 %vm1580_vm4, %v3580_v2 }
 0x79a   : > { %v3492_v15 = vpop.f32.mrb[76].mxu0 }
 0x79b   : > { %v7452_v55 = vadd.f32 %v3492_v15, %v3415_v45  ;;  %v3494_v28 = vpop.f32.mrb[77].mxu0 }
 0x79c   : > { %v3495_v20 = vadd.f32 %v3494_v28, %v3415_v45 }
 0x79d   : > { %8341 = vst [vmem:[#allocation37_spill] sm:$0xff] %v7452_v55  ;;  %v3586_v5 = vrot.slane %v7452_v55, 2 }
 0x79e   : > { %v3587_v35 = vrot.slane %v3495_v20, 2  ;;  %4557 = vmatprep.mubr.f32.mxu1 %v3495_v20 }
 0x79f   : > { %3590 = vxpose.xlu1.b32.start.end [1/1] (short) %v3586_v5, 128 }
 0x7a0   : > { %3622 = vxpose.xlu0.b32.start.end [1/1] (short) %v3587_v35, 128 }
 0x81f   : > { %v3606_v47 = vpop.trf.xlu1 }
 0x820   : > { %4993 = vmatmul.mubr.msk.f32.vlgmr.msra.gmra.mrb[78].mxu0 %vm1483_vm5, %v3606_v47  ;;  %v3638_v7 = vpop.trf.xlu0 }
 0x821   : > { %3826 = vmatprep.mubr.f32.mxu0 %v8330_v37 }
 0x823   : > { %v3607_v27 = vpop.trf.xlu1 }
 0x824   : > { %4994 = vmatmul.mubr.msk.f32.gmra.mrb[80].mxu0 %vm1483_vm5, %v3607_v27  ;;  %v3639_v14 = vpop.trf.xlu0 }
 0x825   : > { %3832 = vmatprep.mubr.f32.mxu0 %v8330_v37 }
 0x827   : > { %v3608_v58 = vpop.trf.xlu1 }
 0x828   : > { %4995 = vmatmul.mubr.msk.f32.gmra.mrb[82].mxu0 %vm1483_vm5, %v3608_v58  ;;  %v3640_v6 = vpop.trf.xlu0 }
 0x829   : > { %3838 = vmatprep.mubr.f32.mxu0 %v8330_v37 }
 0x82b   : > { %v3609_v8 = vpop.trf.xlu1 }
 0x82c   : > { %4996 = vmatmul.mubr.msk.f32.gmra.mrb[84].mxu0 %vm1483_vm5, %v3609_v8  ;;  %v3641_v59 = vpop.trf.xlu0 }
 0x82d   : > { %3844 = vmatprep.mubr.f32.mxu0 %v8330_v37 }
 0x82f   : > { %v3610_v1 = vpop.trf.xlu1 }
 0x830   : > { %4997 = vmatmul.mubr.msk.f32.gmra.mrb[86].mxu0 %vm1483_vm5, %v3610_v1  ;;  %v3642_v60 = vpop.trf.xlu0 }
 0x831   : > { %3850 = vmatprep.mubr.f32.mxu0 %v8330_v37 }
 0x833   : > { %v3611_v34 = vpop.trf.xlu1 }
 0x834   : > { %4998 = vmatmul.mubr.msk.f32.gmra.mrb[88].mxu0 %vm1483_vm5, %v3611_v34  ;;  %v3643_v51 = vpop.trf.xlu0 }
 0x835   : > { %3856 = vmatprep.mubr.f32.mxu0 %v8330_v37 }
 0x837   : > { %v3612_v42 = vpop.trf.xlu1 }
 0x838   : > { %4999 = vmatmul.mubr.msk.f32.gmra.mrb[90].mxu0 %vm1483_vm5, %v3612_v42  ;;  %v3644_v0 = vpop.trf.xlu0 }
 0x839   : > { %3862 = vmatprep.mubr.f32.mxu0 %v8330_v37 }
 0x83b   : > { %v3613_v44 = vpop.trf.xlu1 }
 0x83c   : > { %5000 = vmatmul.mubr.msk.f32.gmra.mrb[92].mxu0 %vm1483_vm5, %v3613_v44  ;;  %v3645_v10 = vpop.trf.xlu0 }
 0x83d   : > { %3868 = vmatprep.mubr.f32.mxu0 %v8330_v37 }
 0x83f   : > { %v3614_v40 = vpop.trf.xlu1 }
 0x840   : > { %5001 = vmatmul.mubr.msk.f32.gmra.mrb[94].mxu0 %vm1483_vm5, %v3614_v40  ;;  %v3646_v21 = vpop.trf.xlu0 }
 0x841   : > { %3874 = vmatprep.mubr.f32.mxu0 %v8330_v37 }
 0x843   : > { %v3615_v53 = vpop.trf.xlu1 }
 0x844   : > { %5002 = vmatmul.mubr.msk.f32.gmra.mrb[96].mxu0 %vm1483_vm5, %v3615_v53  ;;  %v3647_v46 = vpop.trf.xlu0 }
 0x845   : > { %3880 = vmatprep.mubr.f32.mxu0 %v8330_v37 }
 0x847   : > { %v3616_v17 = vpop.trf.xlu1 }
 0x848   : > { %5003 = vmatmul.mubr.msk.f32.gmra.mrb[98].mxu0 %vm1483_vm5, %v3616_v17  ;;  %v3648_v32 = vpop.trf.xlu0 }
 0x849   : > { %3886 = vmatprep.mubr.f32.mxu0 %v8330_v37 }
 0x84b   : > { %v3617_v38 = vpop.trf.xlu1 }
 0x84c   : > { %5004 = vmatmul.mubr.msk.f32.gmra.mrb[100].mxu0 %vm1483_vm5, %v3617_v38  ;;  %v3649_v36 = vpop.trf.xlu0 }
 0x84d   : > { %3892 = vmatprep.mubr.f32.mxu0 %v8330_v37 }
 0x84f   : > { %v3618_v30 = vpop.trf.xlu1 }
 0x850   : > { %5005 = vmatmul.mubr.msk.f32.gmra.mrb[102].mxu0 %vm1483_vm5, %v3618_v30  ;;  %v3650_v19 = vpop.trf.xlu0 }
 0x851   : > { %3898 = vmatprep.mubr.f32.mxu0 %v8330_v37 }
 0x853   : > { %v3619_v31 = vpop.trf.xlu1 }
 0x854   : > { %5006 = vmatmul.mubr.msk.f32.gmra.mrb[104].mxu0 %vm1483_vm5, %v3619_v31  ;;  %v3651_v52 = vpop.trf.xlu0 }
 0x855   : > { %3904 = vmatprep.mubr.f32.mxu0 %v8330_v37 }
 0x857   : > { %v3620_v16 = vpop.trf.xlu1 }
 0x858   : > { %5007 = vmatmul.mubr.msk.f32.gmra.mrb[106].mxu0 %vm1483_vm5, %v3620_v16  ;;  %v3652_v9 = vpop.trf.xlu0 }
 0x859   : > { %3910 = vmatprep.mubr.f32.mxu0 %v8330_v37 }
 0x85b   : > { %v3621_v39 = vpop.trf.xlu1 }
 0x85c   : > { %5008 = vmatmul.mubr.msk.f32.gmra.mrb[108].mxu0 %vm1483_vm5, %v3621_v39  ;;  %v3653_v61 = vpop.trf.xlu0 }
 0x85d   : > { %3916 = vmatprep.mubr.f32.mxu0 %v8330_v37 }
 0x860   : > { %5009 = vmatmul.mubr.msk.f32.gmra.mrb[110].mxu0 %vm1483_vm5, %v3638_v7 }
 0x861   : > { %3922 = vmatprep.mubr.f32.mxu0 %v8330_v37 }
 0x864   : > { %5010 = vmatmul.mubr.msk.f32.gmra.mrb[112].mxu0 %vm1483_vm5, %v3639_v14 }
 0x865   : > { %3928 = vmatprep.mubr.f32.mxu0 %v8330_v37 }
 0x868   : > { %5011 = vmatmul.mubr.msk.f32.gmra.mrb[114].mxu0 %vm1483_vm5, %v3640_v6 }
 0x869   : > { %3934 = vmatprep.mubr.f32.mxu0 %v8330_v37 }
 0x86c   : > { %5012 = vmatmul.mubr.msk.f32.gmra.mrb[116].mxu0 %vm1483_vm5, %v3641_v59 }
 0x86d   : > { %3940 = vmatprep.mubr.f32.mxu0 %v8330_v37 }
 0x870   : > { %5013 = vmatmul.mubr.msk.f32.gmra.mrb[118].mxu0 %vm1483_vm5, %v3642_v60 }
 0x871   : > { %3946 = vmatprep.mubr.f32.mxu0 %v8330_v37 }
 0x874   : > { %5014 = vmatmul.mubr.msk.f32.gmra.mrb[120].mxu0 %vm1483_vm5, %v3643_v51 }
 0x875   : > { %3952 = vmatprep.mubr.f32.mxu0 %v8330_v37 }
 0x878   : > { %5015 = vmatmul.mubr.msk.f32.gmra.mrb[122].mxu0 %vm1483_vm5, %v3644_v0 }
 0x879   : > { %3958 = vmatprep.mubr.f32.mxu0 %v8330_v37 }
 0x87c   : > { %5016 = vmatmul.mubr.msk.f32.gmra.mrb[124].mxu0 %vm1483_vm5, %v3645_v10 }
 0x87d   : > { %3964 = vmatprep.mubr.f32.mxu0 %v8330_v37 }
 0x880   : > { %5017 = vmatmul.mubr.msk.f32.gmra.mrb[126].mxu0 %vm1483_vm5, %v3646_v21 }
 0x881   : > { %3970 = vmatprep.mubr.f32.mxu0 %v8330_v37 }
 0x884   : > { %5018 = vmatmul.mubr.msk.f32.gmra.mrb[128].mxu0 %vm1483_vm5, %v3647_v46 }
 0x885   : > { %3976 = vmatprep.mubr.f32.mxu0 %v8330_v37 }
 0x888   : > { %5019 = vmatmul.mubr.msk.f32.gmra.mrb[130].mxu0 %vm1483_vm5, %v3648_v32 }
 0x889   : > { %3982 = vmatprep.mubr.f32.mxu0 %v8330_v37 }
 0x88c   : > { %5020 = vmatmul.mubr.msk.f32.gmra.mrb[132].mxu0 %vm1483_vm5, %v3649_v36 }
 0x88d   : > { %3988 = vmatprep.mubr.f32.mxu0 %v8330_v37 }
 0x890   : > { %5021 = vmatmul.mubr.msk.f32.gmra.mrb[134].mxu0 %vm1483_vm5, %v3650_v19 }
 0x891   : > { %3994 = vmatprep.mubr.f32.mxu0 %v8330_v37 }
 0x894   : > { %5022 = vmatmul.mubr.msk.f32.gmra.mrb[136].mxu0 %vm1483_vm5, %v3651_v52 }
 0x895   : > { %4000 = vmatprep.mubr.f32.mxu0 %v8330_v37 }
 0x898   : > { %5023 = vmatmul.mubr.msk.f32.gmra.mrb[138].mxu0 %vm1483_vm5, %v3652_v9 }
 0x899   : > { %4006 = vmatprep.mubr.f32.mxu0 %v8330_v37 }
 0x89c   : > { %5024 = vmatmul.mubr.msk.f32.gmra.mrb[140].mxu0 %vm1483_vm5, %v3653_v61 }
 0x89d   : > { %4644 = vmatprep.mubr.f32.mxu0 %v8330_v37 }
 0x8f3   : > { %v7519_v43 = vpop.f32.mrb[78].mxu0 }
 0x8f4   : > { %v7521_v41 = vpop.f32.mrb[79].mxu0 }
 0x8f5   : > { %v4013_v50 = vmax.f32 %v7519_v43, %v7521_v41 }
 0x8f7   : > { %4014 = vmax.xlane.f32.xlu0 %v4013_v50  ;;  %v7525_v13 = vpop.f32.mrb[80].mxu0 }
 0x8f8   : > { %v7527_v54 = vpop.f32.mrb[81].mxu0 }
 0x8f9   : > { %v4016_v57 = vmax.f32 %v7525_v13, %v7527_v54 }
 0x8fb   : > { %4017 = vmax.xlane.f32.xlu1 %v4016_v57  ;;  %v7531_v26 = vpop.f32.mrb[82].mxu0 }
 0x8fc   : > { %v7533_v23 = vpop.f32.mrb[83].mxu0 }
 0x8fd   : > { %v4019_v37 = vmax.f32 %v7531_v26, %v7533_v23 }
 0x8ff   : > { %4020 = vmax.xlane.f32.xlu0 %v4019_v37  ;;  %v7537_v22 = vpop.f32.mrb[84].mxu0 }
 0x900   : > { %v7539_v62 = vpop.f32.mrb[85].mxu0 }
 0x901   : > { %v4022_v49 = vmax.f32 %v7537_v22, %v7539_v62 }
 0x903   : > { %4023 = vmax.xlane.f32.xlu0 %v4022_v49  ;;  %v7543_v25 = vpop.f32.mrb[86].mxu0 }
 0x904   : > { %v7545_v3 = vpop.f32.mrb[87].mxu0 }
 0x905   : > { %v4025_v33 = vmax.f32 %v7543_v25, %v7545_v3 }
 0x907   : > { %4026 = vmax.xlane.f32.xlu1 %v4025_v33  ;;  %v7549_v24 = vpop.f32.mrb[88].mxu0 }
 0x908   : > { %v7551_v45 = vpop.f32.mrb[89].mxu0 }
 0x909   : > { %v4028_v12 = vmax.f32 %v7549_v24, %v7551_v45 }
 0x90b   : > { %4029 = vmax.xlane.f32.xlu0 %v4028_v12  ;;  %v7555_v4 = vpop.f32.mrb[90].mxu0 }
 0x90c   : > { %v7557_v29 = vpop.f32.mrb[91].mxu0 }
 0x90d   : > { %v4031_v2 = vmax.f32 %v7555_v4, %v7557_v29 }
 0x90f   : > { %4032 = vmax.xlane.f32.xlu1 %v4031_v2  ;;  %v7561_v56 = vpop.f32.mrb[92].mxu0 }
 0x910   : > { %v7563_v15 = vpop.f32.mrb[93].mxu0 }
 0x911   : > { %v4034_v28 = vmax.f32 %v7561_v56, %v7563_v15 }
 0x913   : > { %4035 = vmax.xlane.f32.xlu0 %v4034_v28  ;;  %v7567_v20 = vpop.f32.mrb[94].mxu0 }
 0x914   : > { %v7569_v5 = vpop.f32.mrb[95].mxu0 }
 0x915   : > { %v4037_v35 = vmax.f32 %v7567_v20, %v7569_v5 }
 0x917   : > { %4038 = vmax.xlane.f32.xlu1 %v4037_v35  ;;  %v7573_v47 = vpop.f32.mrb[96].mxu0 }
 0x918   : > { %v7575_v27 = vpop.f32.mrb[97].mxu0 }
 0x919   : > { %v4040_v58 = vmax.f32 %v7573_v47, %v7575_v27 }
 0x91b   : > { %4041 = vmax.xlane.f32.xlu0 %v4040_v58  ;;  %v7579_v8 = vpop.f32.mrb[98].mxu0 }
 0x91c   : > { %v7581_v1 = vpop.f32.mrb[99].mxu0 }
 0x91d   : > { %v4043_v34 = vmax.f32 %v7579_v8, %v7581_v1 }
 0x91f   : > { %4044 = vmax.xlane.f32.xlu1 %v4043_v34  ;;  %v7585_v42 = vpop.f32.mrb[100].mxu0 }
 0x920   : > { %v7587_v44 = vpop.f32.mrb[101].mxu0 }
 0x921   : > { %v4046_v40 = vmax.f32 %v7585_v42, %v7587_v44 }
 0x923   : > { %4047 = vmax.xlane.f32.xlu0 %v4046_v40  ;;  %v7591_v7 = vpop.f32.mrb[102].mxu0 }
 0x924   : > { %v7593_v53 = vpop.f32.mrb[103].mxu0 }
 0x925   : > { %v4049_v17 = vmax.f32 %v7591_v7, %v7593_v53 }
 0x927   : > { %4050 = vmax.xlane.f32.xlu1 %v4049_v17  ;;  %v7597_v14 = vpop.f32.mrb[104].mxu0 }
 0x928   : > { %v7599_v38 = vpop.f32.mrb[105].mxu0 }
 0x929   : > { %v4052_v6 = vmax.f32 %v7597_v14, %v7599_v38 }
 0x92b   : > { %4053 = vmax.xlane.f32.xlu0 %v4052_v6  ;;  %v7603_v30 = vpop.f32.mrb[106].mxu0 }
 0x92c   : > { %v7605_v31 = vpop.f32.mrb[107].mxu0 }
 0x92d   : > { %v4055_v59 = vmax.f32 %v7603_v30, %v7605_v31 }
 0x92f   : > { %4056 = vmax.xlane.f32.xlu1 %v4055_v59  ;;  %v7609_v16 = vpop.f32.mrb[108].mxu0 }
 0x930   : > { %v7611_v60 = vpop.f32.mrb[109].mxu0 }
 0x931   : > { %v4058_v39 = vmax.f32 %v7609_v16, %v7611_v60 }
 0x933   : > { %4059 = vmax.xlane.f32.xlu0 %v4058_v39  ;;  %v7615_v51 = vpop.f32.mrb[110].mxu0 }
 0x934   : > { %v7617_v0 = vpop.f32.mrb[111].mxu0 }
 0x935   : > { %v4061_v10 = vmax.f32 %v7615_v51, %v7617_v0 }
 0x937   : > { %4062 = vmax.xlane.f32.xlu1 %v4061_v10  ;;  %v7621_v21 = vpop.f32.mrb[112].mxu0 }
 0x938   : > { %v7623_v46 = vpop.f32.mrb[113].mxu0 }
 0x939   : > { %8342 = vst [vmem:[#allocation38_spill] sm:$0xff] %v7623_v46  ;;  %v4064_v32 = vmax.f32 %v7621_v21, %v7623_v46 }
 0x93b   : > { %4065 = vmax.xlane.f32.xlu0 %v4064_v32  ;;  %v7627_v36 = vpop.f32.mrb[114].mxu0 }
 0x93c   : > { %8343 = vst [vmem:[#allocation39_spill] sm:$0xff] %v7627_v36  ;;  %v7629_v19 = vpop.f32.mrb[115].mxu0 }
 0x93d   : > { %8344 = vst [vmem:[#allocation40_spill] sm:$0xff] %v7629_v19  ;;  %v4067_v52 = vmax.f32 %v7627_v36, %v7629_v19 }
 0x93f   : > { %4068 = vmax.xlane.f32.xlu1 %v4067_v52  ;;  %v7633_v9 = vpop.f32.mrb[116].mxu0 }
 0x940   : > { %8345 = vst [vmem:[#allocation41_spill] sm:$0xff] %v7633_v9  ;;  %v7635_v61 = vpop.f32.mrb[117].mxu0 }
 0x941   : > { %8346 = vst [vmem:[#allocation42_spill] sm:$0xff] %v7635_v61  ;;  %v4070_v50 = vmax.f32 %v7633_v9, %v7635_v61 }
 0x943   : > { %4071 = vmax.xlane.f32.xlu0 %v4070_v50  ;;  %v7639_v57 = vpop.f32.mrb[118].mxu0 }
 0x944   : > { %8347 = vst [vmem:[#allocation43_spill] sm:$0xff] %v7639_v57  ;;  %v7641_v37 = vpop.f32.mrb[119].mxu0 }
 0x945   : > { %8348 = vst [vmem:[#allocation44_spill] sm:$0xff] %v7641_v37  ;;  %v4073_v49 = vmax.f32 %v7639_v57, %v7641_v37 }
 0x947   : > { %4074 = vmax.xlane.f32.xlu1 %v4073_v49  ;;  %v7645_v33 = vpop.f32.mrb[120].mxu0 }
 0x948   : > { %8349 = vst [vmem:[#allocation45_spill] sm:$0xff] %v7645_v33  ;;  %v7647_v12 = vpop.f32.mrb[121].mxu0 }
 0x949   : > { %8350 = vst [vmem:[#allocation46_spill] sm:$0xff] %v7647_v12  ;;  %v4076_v2 = vmax.f32 %v7645_v33, %v7647_v12 }
 0x94b   : > { %4077 = vmax.xlane.f32.xlu0 %v4076_v2  ;;  %v7651_v28 = vpop.f32.mrb[122].mxu0 }
 0x94c   : > { %8351 = vst [vmem:[#allocation21_spill] sm:$0xff] %v7651_v28  ;;  %v7653_v35 = vpop.f32.mrb[123].mxu0 }
 0x94d   : > { %8352 = vst [vmem:[#allocation20_spill] sm:$0xff] %v7653_v35  ;;  %v4079_v58 = vmax.f32 %v7651_v28, %v7653_v35 }
 0x94f   : > { %4080 = vmax.xlane.f32.xlu1 %v4079_v58  ;;  %v7657_v34 = vpop.f32.mrb[124].mxu0 }
 0x950   : > { %8353 = vst [vmem:[#allocation22_spill] sm:$0xff] %v7657_v34  ;;  %v7659_v40 = vpop.f32.mrb[125].mxu0 }
 0x951   : > { %8354 = vst [vmem:[#allocation23_spill] sm:$0xff] %v7659_v40  ;;  %v4082_v17 = vmax.f32 %v7657_v34, %v7659_v40 }
 0x953   : > { %4083 = vmax.xlane.f32.xlu0 %v4082_v17  ;;  %v7663_v6 = vpop.f32.mrb[126].mxu0 }
 0x954   : > { %v7665_v59 = vpop.f32.mrb[127].mxu0 }
 0x957   : > { %v7669_v10 = vpop.f32.mrb[128].mxu0 }
 0x958   : > { %v7671_v32 = vpop.f32.mrb[129].mxu0 }
 0x95b   : > { %v7675_v50 = vpop.f32.mrb[130].mxu0 }
 0x95c   : > { %v7677_v49 = vpop.f32.mrb[131].mxu0 }
 0x95f   : > { %v7681_v58 = vpop.f32.mrb[132].mxu0 }
 0x960   : > { %v7683_v17 = vpop.f32.mrb[133].mxu0 }
 0x963   : > { %v7687_v48 = vpop.f32.mrb[134].mxu0 }
 0x964   : > { %v7689_v63 = vpop.f32.mrb[135].mxu0 }
 0x967   : > { %v7693_v11 = vpop.f32.mrb[136].mxu0 }
 0x968   : > { %v7695_v18 = vpop.f32.mrb[137].mxu0 }
 0x96b   : > { %v7699_v55 = vpop.f32.mrb[138].mxu0 }
 0x96c   : > { %v7701_v40 = vpop.f32.mrb[139].mxu0 }
 0x96f   : > { %v7705_v34 = vpop.f32.mrb[140].mxu0 }
 0x970   : > { %v7707_v35 = vpop.f32.mrb[141].mxu0 }
 0x984   : > { %v4015_v28 = vpop.xlane.xlu0 %4014 }
 0x985   : > { %v4109_v12 = vsub.f32 %v7519_v43, %v4015_v28  ;;  %v4110_v33 = vsub.f32 %v7521_v41, %v4015_v28 }
 0x987   : > { %v4173_v2 = vmul.f32 1.442695, %v4109_v12  ;;  %v4175_v37 = vmul.f32 1.442695, %v4110_v33 }
 0x988   : > { %v4018_v57 = vpop.xlane.xlu1 %4017 }
 0x989   : > { %5809 = vpow2.f32 %v4173_v2  ;;  %v4111_v61 = vsub.f32 %v7525_v13, %v4018_v57  ;;  %v4112_v39 = vsub.f32 %v7527_v54, %v4018_v57 }
 0x98a   : > { %5811 = vpow2.f32 %v4175_v37 }
 0x98b   : > { %v4177_v9 = vmul.f32 1.442695, %v4111_v61  ;;  %v4179_v19 = vmul.f32 1.442695, %v4112_v39 }
 0x98c   : > { %v4021_v36 = vpop.xlane.xlu0 %4020 }
 0x98d   : > { %5813 = vpow2.f32 %v4177_v9  ;;  %v4113_v52 = vsub.f32 %v7531_v26, %v4021_v36  ;;  %v4114_v46 = vsub.f32 %v7533_v23, %v4021_v36 }
 0x98e   : > { %5815 = vpow2.f32 %v4179_v19 }
 0x98f   : > { %v4181_v43 = vmul.f32 1.442695, %v4113_v52  ;;  %v4183_v41 = vmul.f32 1.442695, %v4114_v46 }
 0x990   : > { %v4024_v12 = vpop.xlane.xlu0 %4023 }
 0x991   : > { %5817 = vpow2.f32 %v4181_v43  ;;  %v4115_v33 = vsub.f32 %v7537_v22, %v4024_v12  ;;  %v4116_v13 = vsub.f32 %v7539_v62, %v4024_v12 }
 0x992   : > { %5819 = vpow2.f32 %v4183_v41  ;;  %v8355_v41 = vmax.f32 %v7663_v6, %v7665_v59 }
 0x993   : > { %v7719_v54 = vpop.eup %5809  ;;  %v4185_v61 = vmul.f32 1.442695, %v4115_v33  ;;  %v4187_v57 = vmul.f32 1.442695, %v4116_v13 }
 0x994   : > { %v7721_v37 = vpop.eup %5811  ;;  %v4027_v9 = vpop.xlane.xlu1 %4026 }
 0x995   : > { %5821 = vpow2.f32 %v4185_v61  ;;  %v4117_v26 = vsub.f32 %v7543_v25, %v4027_v9  ;;  %v4118_v23 = vsub.f32 %v7545_v3, %v4027_v9  ;;  %v4301_v46 = vadd.f32 %v7721_v37, %v7719_v54 }
 0x996   : > { %5823 = vpow2.f32 %v4187_v57 }
 0x997   : > { %v7727_v22 = vpop.eup %5813  ;;  %v4189_v62 = vmul.f32 1.442695, %v4117_v26  ;;  %v4191_v36 = vmul.f32 1.442695, %v4118_v23  ;;  %4302 = vadd.xlane.f32.xlu1 %v4301_v46  ;;  %v8356_v26 = vmax.f32 %v7669_v10, %v7671_v32 }
 0x998   : > { %v7729_v19 = vpop.eup %5815  ;;  %v4030_v28 = vpop.xlane.xlu0 %4029 }
 0x999   : > { %5825 = vpow2.f32 %v4189_v62  ;;  %v4119_v39 = vsub.f32 %v7549_v24, %v4030_v28  ;;  %v4120_v52 = vsub.f32 %v7551_v45, %v4030_v28  ;;  %v4304_v25 = vadd.f32 %v7729_v19, %v7727_v22 }
 0x99a   : > { %5827 = vpow2.f32 %v4191_v36 }
 0x99b   : > { %v7735_v3 = vpop.eup %5817  ;;  %v4193_v2 = vmul.f32 1.442695, %v4119_v39  ;;  %v4195_v43 = vmul.f32 1.442695, %v4120_v52  ;;  %4086 = vmax.xlane.f32.xlu1 %v8355_v41  ;;  %4305 = vadd.xlane.f32.xlu0 %v4304_v25  ;;  %v8357_v52 = vmax.f32 %v7675_v50, %v7677_v49 }
 0x99c   : > { %v7740_v12 = vpop.eup %5819  ;;  %v4033_v33 = vpop.xlane.xlu1 %4032 }
 0x99d   : > { %5829 = vpow2.f32 %v4193_v2  ;;  %v4121_v24 = vsub.f32 %v7555_v4, %v4033_v33  ;;  %v4122_v45 = vsub.f32 %v7557_v29, %v4033_v33  ;;  %v4307_v13 = vadd.f32 %v7740_v12, %v7735_v3 }
 0x99e   : > { %5831 = vpow2.f32 %v4195_v43 }
 0x99f   : > { %v7746_v61 = vpop.eup %5821  ;;  %v4197_v57 = vmul.f32 1.442695, %v4121_v24  ;;  %v4199_v9 = vmul.f32 1.442695, %v4122_v45  ;;  %4308 = vadd.xlane.f32.xlu1 %v4307_v13  ;;  %4089 = vmax.xlane.f32.xlu0 %v8356_v26  ;;  %v8358_v45 = vmax.f32 %v7681_v58, %v7683_v17 }
 0x9a0   : > { %v7751_v23 = vpop.eup %5823  ;;  %v4036_v46 = vpop.xlane.xlu0 %4035 }
 0x9a1   : > { %5833 = vpow2.f32 %v4197_v57  ;;  %v4123_v4 = vsub.f32 %v7561_v56, %v4036_v46  ;;  %v4124_v29 = vsub.f32 %v7563_v15, %v4036_v46  ;;  %v4310_v62 = vadd.f32 %v7751_v23, %v7746_v61 }
 0x9a2   : > { %5835 = vpow2.f32 %v4199_v9 }
 0x9a3   : > { %v7757_v36 = vpop.eup %5825  ;;  %v4201_v28 = vmul.f32 1.442695, %v4123_v4  ;;  %v4203_v39 = vmul.f32 1.442695, %v4124_v29  ;;  %4092 = vmax.xlane.f32.xlu1 %v8357_v52  ;;  %4311 = vadd.xlane.f32.xlu0 %v4310_v62  ;;  %v8359_v29 = vmax.f32 %v7687_v48, %v7689_v63 }
 0x9a4   : > { %v7762_v25 = vpop.eup %5827  ;;  %v4039_v2 = vpop.xlane.xlu1 %4038 }
 0x9a5   : > { %5837 = vpow2.f32 %v4201_v28  ;;  %v4125_v56 = vsub.f32 %v7567_v20, %v4039_v2  ;;  %v4126_v15 = vsub.f32 %v7569_v5, %v4039_v2  ;;  %v4313_v43 = vadd.f32 %v7762_v25, %v7757_v36 }
 0x9a6   : > { %5839 = vpow2.f32 %v4203_v39 }
 0x9a7   : > { %v7768_v41 = vpop.eup %5829  ;;  %v4205_v33 = vmul.f32 1.442695, %v4125_v56  ;;  %v4207_v24 = vmul.f32 1.442695, %v4126_v15  ;;  %4095 = vmax.xlane.f32.xlu0 %v8358_v45  ;;  %4314 = vadd.xlane.f32.xlu1 %v4313_v43  ;;  %v8360_v15 = vmax.f32 %v7693_v11, %v7695_v18 }
 0x9a8   : > { %v7773_v13 = vpop.eup %5831  ;;  %v4042_v57 = vpop.xlane.xlu0 %4041 }
 0x9a9   : > { %5841 = vpow2.f32 %v4205_v33  ;;  %v4127_v20 = vsub.f32 %v7573_v47, %v4042_v57  ;;  %v4128_v5 = vsub.f32 %v7575_v27, %v4042_v57  ;;  %v4316_v9 = vadd.f32 %v7773_v13, %v7768_v41 }
 0x9aa   : > { %5843 = vpow2.f32 %v4207_v24 }
 0x9ab   : > { %v7779_v26 = vpop.eup %5833  ;;  %v4209_v46 = vmul.f32 1.442695, %v4127_v20  ;;  %v4211_v4 = vmul.f32 1.442695, %v4128_v5  ;;  %4317 = vadd.xlane.f32.xlu0 %v4316_v9  ;;  %4098 = vmax.xlane.f32.xlu1 %v8359_v29  ;;  %v8361_v5 = vmax.f32 %v7699_v55, %v7701_v40 }
 0x9ac   : > { %v7784_v62 = vpop.eup %5835  ;;  %v4045_v28 = vpop.xlane.xlu1 %4044 }
 0x9ad   : > { %5845 = vpow2.f32 %v4209_v46  ;;  %v4129_v47 = vsub.f32 %v7579_v8, %v4045_v28  ;;  %v4130_v27 = vsub.f32 %v7581_v1, %v4045_v28  ;;  %v4319_v39 = vadd.f32 %v7784_v62, %v7779_v26 }
 0x9ae   : > { %5847 = vpow2.f32 %v4211_v4 }
 0x9af   : > { %v7790_v52 = vpop.eup %5837  ;;  %v4213_v2 = vmul.f32 1.442695, %v4129_v47  ;;  %v4215_v56 = vmul.f32 1.442695, %v4130_v27  ;;  %4101 = vmax.xlane.f32.xlu0 %v8360_v15  ;;  %4320 = vadd.xlane.f32.xlu1 %v4319_v39  ;;  %v8362_v27 = vmax.f32 %v7705_v34, %v7707_v35 }
 0x9b0   : > { %v7795_v43 = vpop.eup %5839  ;;  %v4048_v33 = vpop.xlane.xlu0 %4047 }
 0x9b1   : > { %5849 = vpow2.f32 %v4213_v2  ;;  %v4131_v8 = vsub.f32 %v7585_v42, %v4048_v33  ;;  %v4132_v1 = vsub.f32 %v7587_v44, %v4048_v33  ;;  %v4322_v24 = vadd.f32 %v7795_v43, %v7790_v52 }
 0x9b2   : > { %5851 = vpow2.f32 %v4215_v56 }
 0x9b3   : > { %v7801_v45 = vpop.eup %5841  ;;  %v4217_v57 = vmul.f32 1.442695, %v4131_v8  ;;  %v4219_v20 = vmul.f32 1.442695, %v4132_v1  ;;  %4323 = vadd.xlane.f32.xlu0 %v4322_v24  ;;  %4104 = vmax.xlane.f32.xlu1 %v8361_v5 }
 0x9b4   : > { %v7806_v9 = vpop.eup %5843  ;;  %v4051_v46 = vpop.xlane.xlu1 %4050 }
 0x9b5   : > { %5853 = vpow2.f32 %v4217_v57  ;;  %v4133_v42 = vsub.f32 %v7591_v7, %v4051_v46  ;;  %v4134_v44 = vsub.f32 %v7593_v53, %v4051_v46  ;;  %v4325_v4 = vadd.f32 %v7806_v9, %v7801_v45 }
 0x9b6   : > { %5855 = vpow2.f32 %v4219_v20 }
 0x9b7   : > { %v7812_v29 = vpop.eup %5845  ;;  %v4221_v28 = vmul.f32 1.442695, %v4133_v42  ;;  %v4223_v47 = vmul.f32 1.442695, %v4134_v44  ;;  %4107 = vmax.xlane.f32.xlu0 %v8362_v27  ;;  %4326 = vadd.xlane.f32.xlu1 %v4325_v4 }
 0x9b8   : > { %v7817_v39 = vpop.eup %5847  ;;  %v4054_v2 = vpop.xlane.xlu0 %4053 }
 0x9b9   : > { %5857 = vpow2.f32 %v4221_v28  ;;  %v4135_v7 = vsub.f32 %v7597_v14, %v4054_v2  ;;  %v4136_v53 = vsub.f32 %v7599_v38, %v4054_v2  ;;  %v4328_v56 = vadd.f32 %v7817_v39, %v7812_v29 }
 0x9ba   : > { %5859 = vpow2.f32 %v4223_v47 }
 0x9bb   : > { %v7823_v15 = vpop.eup %5849  ;;  %v4225_v33 = vmul.f32 1.442695, %v4135_v7  ;;  %v4227_v8 = vmul.f32 1.442695, %v4136_v53  ;;  %4329 = vadd.xlane.f32.xlu0 %v4328_v56 }
 0x9bc   : > { %v7825_v1 = vpop.eup %5851  ;;  %v4057_v24 = vpop.xlane.xlu1 %4056 }
 0x9bd   : > { %5861 = vpow2.f32 %v4225_v33  ;;  %v4137_v57 = vsub.f32 %v7603_v30, %v4057_v24  ;;  %v4138_v20 = vsub.f32 %v7605_v31, %v4057_v24  ;;  %v4331_v14 = vadd.f32 %v7825_v1, %v7823_v15 }
 0x9be   : > { %5863 = vpow2.f32 %v4227_v8 }
 0x9bf   : > { %v7831_v38 = vpop.eup %5853  ;;  %v4229_v5 = vmul.f32 1.442695, %v4137_v57  ;;  %v4231_v46 = vmul.f32 1.442695, %v4138_v20  ;;  %4332 = vadd.xlane.f32.xlu1 %v4331_v14  ;;  %v8363_v14 = vld [vmem:[#allocation38_spill] sm:$0xff] }
 0x9c0   : > { %v7833_v42 = vpop.eup %5855  ;;  %v4060_v44 = vpop.xlane.xlu0 %4059 }
 0x9c1   : > { %5865 = vpow2.f32 %v4229_v5  ;;  %v4139_v4 = vsub.f32 %v7609_v16, %v4060_v44  ;;  %v4140_v28 = vsub.f32 %v7611_v60, %v4060_v44  ;;  %v4334_v30 = vadd.f32 %v7833_v42, %v7831_v38 }
 0x9c2   : > { %5867 = vpow2.f32 %v4231_v46 }
 0x9c3   : > { %v7839_v31 = vpop.eup %5857  ;;  %v4233_v47 = vmul.f32 1.442695, %v4139_v4  ;;  %v4235_v27 = vmul.f32 1.442695, %v4140_v28  ;;  %4335 = vadd.xlane.f32.xlu0 %v4334_v30  ;;  %v8365_v30 = vld [vmem:[#allocation39_spill] sm:$0xff] }
 0x9c4   : > { %v7841_v2 = vpop.eup %5859  ;;  %v4063_v7 = vpop.xlane.xlu1 %4062 }
 0x9c5   : > { %5869 = vpow2.f32 %v4233_v47  ;;  %v4141_v53 = vsub.f32 %v7615_v51, %v4063_v7  ;;  %v4142_v56 = vsub.f32 %v7617_v0, %v4063_v7  ;;  %v4337_v16 = vadd.f32 %v7841_v2, %v7839_v31 }
 0x9c6   : > { %5871 = vpow2.f32 %v4235_v27  ;;  %v8366_v27 = vld [vmem:[#allocation40_spill] sm:$0xff] }
 0x9c7   : > { %v7847_v60 = vpop.eup %5861  ;;  %v4237_v33 = vmul.f32 1.442695, %v4141_v53  ;;  %v4239_v8 = vmul.f32 1.442695, %v4142_v56  ;;  %4338 = vadd.xlane.f32.xlu1 %v4337_v16 }
 0x9c8   : > { %v7849_v24 = vpop.eup %5863  ;;  %v4066_v57 = vpop.xlane.xlu0 %4065 }
 0x9c9   : > { %5873 = vpow2.f32 %v4237_v33  ;;  %v4143_v20 = vsub.f32 %v7621_v21, %v4066_v57  ;;  %v4144_v5 = vsub.f32 %v8363_v14, %v4066_v57  ;;  %v4340_v51 = vadd.f32 %v7849_v24, %v7847_v60  ;;  %v8368_v57 = vld [vmem:[#allocation41_spill] sm:$0xff]  ;;  %v8369_v14 = vld [vmem:[#allocation42_spill] sm:$0xff] }
 0x9ca   : > { %5875 = vpow2.f32 %v4239_v8 }
 0x9cb   : > { %v7855_v0 = vpop.eup %5865  ;;  %v4241_v46 = vmul.f32 1.442695, %v4143_v20  ;;  %v4243_v44 = vmul.f32 1.442695, %v4144_v5  ;;  %4341 = vadd.xlane.f32.xlu0 %v4340_v51 }
 0x9cc   : > { %8364 = vst [vmem:[#allocation30_spill] sm:$0xff] %v7855_v0  ;;  %v7857_v4 = vpop.eup %5867  ;;  %v4069_v28 = vpop.xlane.xlu1 %4068 }
 0x9cd   : > { %5877 = vpow2.f32 %v4241_v46  ;;  %v4145_v47 = vsub.f32 %v8365_v30, %v4069_v28  ;;  %v4146_v7 = vsub.f32 %v8366_v27, %v4069_v28  ;;  %v4343_v21 = vadd.f32 %v7857_v4, %v7855_v0  ;;  %v8372_v27 = vld [vmem:[#allocation43_spill] sm:$0xff] }
 0x9ce   : > { %5879 = vpow2.f32 %v4243_v44 }
 0x9cf   : > { %v7863_v53 = vpop.eup %5869  ;;  %v4245_v56 = vmul.f32 1.442695, %v4145_v47  ;;  %v4247_v16 = vmul.f32 1.442695, %v4146_v7  ;;  %4344 = vadd.xlane.f32.xlu1 %v4343_v21  ;;  %v8373_v21 = vld [vmem:[#allocation44_spill] sm:$0xff] }
 0x9d0   : > { %8367 = vst [vmem:[#allocation31_spill] sm:$0xff] %v7863_v53  ;;  %v7865_v33 = vpop.eup %5871  ;;  %v4072_v8 = vpop.xlane.xlu0 %4071 }
 0x9d1   : > { %5881 = vpow2.f32 %v4245_v56  ;;  %v4147_v20 = vsub.f32 %v8368_v57, %v4072_v8  ;;  %v4148_v5 = vsub.f32 %v8369_v14, %v4072_v8  ;;  %v4346_v51 = vadd.f32 %v7865_v33, %v7863_v53 }
 0x9d2   : > { %5883 = vpow2.f32 %v4247_v16 }
 0x9d3   : > { %v7871_v46 = vpop.eup %5873  ;;  %v4249_v44 = vmul.f32 1.442695, %v4147_v20  ;;  %v4251_v28 = vmul.f32 1.442695, %v4148_v5  ;;  %4347 = vadd.xlane.f32.xlu0 %v4346_v51  ;;  %v8376_v51 = vld [vmem:[#allocation45_spill] sm:$0xff] }
 0x9d4   : > { %8370 = vst [vmem:[#allocation24_spill] sm:$0xff] %v7871_v46  ;;  %v7873_v30 = vpop.eup %5875  ;;  %v4075_v47 = vpop.xlane.xlu1 %4074 }
 0x9d5   : > { %8371 = vst [vmem:[#allocation25_spill] sm:$0xff] %v7873_v30  ;;  %5885 = vpow2.f32 %v4249_v44  ;;  %v4149_v7 = vsub.f32 %v8372_v27, %v4075_v47  ;;  %v4150_v56 = vsub.f32 %v8373_v21, %v4075_v47  ;;  %v4349_v8 = vadd.f32 %v7873_v30, %v7871_v46  ;;  %v8377_v44 = vld [vmem:[#allocation46_spill] sm:$0xff] }
 0x9d6   : > { %5887 = vpow2.f32 %v4251_v28 }
 0x9d7   : > { %v7879_v57 = vpop.eup %5877  ;;  %v4253_v16 = vmul.f32 1.442695, %v4149_v7  ;;  %v4255_v14 = vmul.f32 1.442695, %v4150_v56  ;;  %4350 = vadd.xlane.f32.xlu1 %v4349_v8  ;;  %v8378_v8 = vld [vmem:[#allocation21_spill] sm:$0xff] }
 0x9d8   : > { %8374 = vst [vmem:[#allocation32_spill] sm:$0xff] %v7879_v57  ;;  %v7881_v20 = vpop.eup %5879  ;;  %v4078_v5 = vpop.xlane.xlu0 %4077 }
 0x9d9   : > { %8375 = vst [vmem:[#allocation33_spill] sm:$0xff] %v7881_v20  ;;  %5889 = vpow2.f32 %v4253_v16  ;;  %v4151_v0 = vsub.f32 %v8376_v51, %v4078_v5  ;;  %v4152_v53 = vsub.f32 %v8377_v44, %v4078_v5  ;;  %v4352_v47 = vadd.f32 %v7881_v20, %v7879_v57  ;;  %v8379_v16 = vld [vmem:[#allocation20_spill] sm:$0xff] }
 0x9da   : > { %5891 = vpow2.f32 %v4255_v14 }
 0x9db   : > { %v7887_v27 = vpop.eup %5881  ;;  %v4257_v28 = vmul.f32 1.442695, %v4151_v0  ;;  %v4259_v21 = vmul.f32 1.442695, %v4152_v53  ;;  %4353 = vadd.xlane.f32.xlu0 %v4352_v47  ;;  %v8380_v47 = vld [vmem:[#allocation22_spill] sm:$0xff] }
 0x9dc   : > { %v7889_v7 = vpop.eup %5883  ;;  %v4081_v56 = vpop.xlane.xlu1 %4080 }
 0x9dd   : > { %5893 = vpow2.f32 %v4257_v28  ;;  %v4153_v46 = vsub.f32 %v8378_v8, %v4081_v56  ;;  %v4154_v30 = vsub.f32 %v8379_v16, %v4081_v56  ;;  %v4355_v5 = vadd.f32 %v7889_v7, %v7887_v27  ;;  %v8381_v28 = vld [vmem:[#allocation23_spill] sm:$0xff] }
 0x9de   : > { %5895 = vpow2.f32 %v4259_v21 }
 0x9df   : > { %v7895_v51 = vpop.eup %5885  ;;  %v4261_v14 = vmul.f32 1.442695, %v4153_v46  ;;  %v4263_v44 = vmul.f32 1.442695, %v4154_v30  ;;  %4356 = vadd.xlane.f32.xlu1 %v4355_v5 }
 0x9e0   : > { %v7897_v0 = vpop.eup %5887  ;;  %v4084_v53 = vpop.xlane.xlu0 %4083 }
 0x9e1   : > { %5897 = vpow2.f32 %v4261_v14  ;;  %v4155_v57 = vsub.f32 %v8380_v47, %v4084_v53  ;;  %v4156_v20 = vsub.f32 %v8381_v28, %v4084_v53  ;;  %v4358_v56 = vadd.f32 %v7897_v0, %v7895_v51 }
 0x9e2   : > { %5899 = vpow2.f32 %v4263_v44 }
 0x9e3   : > { %v7903_v8 = vpop.eup %5889  ;;  %v4265_v21 = vmul.f32 1.442695, %v4155_v57  ;;  %v4267_v16 = vmul.f32 1.442695, %v4156_v20  ;;  %4359 = vadd.xlane.f32.xlu0 %v4358_v56 }
 0x9e4   : > { %8382 = vst [vmem:[#allocation26_spill] sm:$0xff] %v7903_v8  ;;  %v7905_v46 = vpop.eup %5891 }
 0x9e5   : > { %8383 = vst [vmem:[#allocation27_spill] sm:$0xff] %v7905_v46  ;;  %5901 = vpow2.f32 %v4265_v21  ;;  %v4361_v30 = vadd.f32 %v7905_v46, %v7903_v8 }
 0x9e6   : > { %5903 = vpow2.f32 %v4267_v16 }
 0x9e7   : > { %v7909_v5 = vpop.eup %5893  ;;  %4362 = vadd.xlane.f32.xlu1 %v4361_v30 }
 0x9e8   : > { %8384 = vst [vmem:[#allocation34_spill] sm:$0xff] %v7909_v5  ;;  %v7911_v14 = vpop.eup %5895 }
 0x9e9   : > { %8385 = vst [vmem:[#allocation19_spill] sm:$0xff] %v7911_v14  ;;  %v4364_v44 = vadd.f32 %v7911_v14, %v7909_v5 }
 0x9eb   : > { %v7915_v53 = vpop.eup %5897  ;;  %4365 = vadd.xlane.f32.xlu0 %v4364_v44 }
 0x9ec   : > { %8386 = vst [vmem:[#allocation18_spill] sm:$0xff] %v7915_v53  ;;  %v7917_v57 = vpop.eup %5899 }
 0x9ed   : > { %8387 = vst [vmem:[#allocation38_spill] sm:$0xff] %v7917_v57  ;;  %v4367_v20 = vadd.f32 %v7917_v57, %v7915_v53 }
 0x9ef   : > { %v7921_v47 = vpop.eup %5901  ;;  %4368 = vadd.xlane.f32.xlu1 %v4367_v20 }
 0x9f0   : > { %8388 = vst [vmem:[#allocation39_spill] sm:$0xff] %v7921_v47  ;;  %v7923_v28 = vpop.eup %5903 }
 0x9f1   : > { %8389 = vst [vmem:[#allocation40_spill] sm:$0xff] %v7923_v28  ;;  %v4370_v56 = vadd.f32 %v7923_v28, %v7921_v47 }
 0x9f3   : > { %4371 = vadd.xlane.f32.xlu0 %v4370_v56 }
 0xa24   : > { %v4303_v21 = vpop.xlane.xlu1 %4302 }
 0xa25   : > { %5905 = vrcp.f32 %v4303_v21 }
 0xa28   : > { %v4306_v16 = vpop.xlane.xlu0 %4305  ;;  %v4087_v30 = vpop.xlane.xlu1 %4086 }
 0xa29   : > { %5907 = vrcp.f32 %v4306_v16  ;;  %v4157_v44 = vsub.f32 %v7663_v6, %v4087_v30  ;;  %v4158_v8 = vsub.f32 %v7665_v59, %v4087_v30 }
 0xa2b   : > { %v4269_v5 = vmul.f32 1.442695, %v4157_v44  ;;  %v4271_v53 = vmul.f32 1.442695, %v4158_v8 }
 0xa2c   : > { %v4090_v57 = vpop.xlane.xlu0 %4089  ;;  %v4309_v14 = vpop.xlane.xlu1 %4308 }
 0xa2d   : > { %5909 = vpow2.f32 %v4269_v5  ;;  %v4159_v20 = vsub.f32 %v7669_v10, %v4090_v57  ;;  %v4160_v46 = vsub.f32 %v7671_v32, %v4090_v57 }
 0xa2e   : > { %5911 = vpow2.f32 %v4271_v53 }
 0xa2f   : > { %v4273_v56 = vmul.f32 1.442695, %v4159_v20  ;;  %v4275_v47 = vmul.f32 1.442695, %v4160_v46  ;;  %5913 = vrcp.f32 %v4309_v14  ;;  %v5906_v16 = vpop.eup %5905 }
 0xa30   : > { %v4312_v21 = vpop.xlane.xlu0 %4311  ;;  %v4093_v28 = vpop.xlane.xlu1 %4092  ;;  %v4430_v32 = vmul.f32 %v5906_v16, %v7721_v37  ;;  %v4429_v14 = vmul.f32 %v5906_v16, %v7719_v54 }
 0xa31   : > { %5915 = vpow2.f32 %v4273_v56  ;;  %v4161_v6 = vsub.f32 %v7675_v50, %v4093_v28  ;;  %v4162_v59 = vsub.f32 %v7677_v49, %v4093_v28 }
 0xa32   : > { %5917 = vpow2.f32 %v4275_v47 }
 0xa33   : > { %v5908_v8 = vpop.eup %5907  ;;  %5919 = vrcp.f32 %v4312_v21  ;;  %v4277_v5 = vmul.f32 1.442695, %v4161_v6  ;;  %v4279_v30 = vmul.f32 1.442695, %v4162_v59 }
 0xa34   : > { %v4096_v10 = vpop.xlane.xlu0 %4095  ;;  %v4315_v44 = vpop.xlane.xlu1 %4314  ;;  %v4432_v46 = vmul.f32 %v5908_v8, %v7729_v19  ;;  %v4431_v53 = vmul.f32 %v5908_v8, %v7727_v22 }
 0xa35   : > { %5921 = vpow2.f32 %v4277_v5  ;;  %v4163_v50 = vsub.f32 %v7681_v58, %v4096_v10  ;;  %v4164_v49 = vsub.f32 %v7683_v17, %v4096_v10 }
 0xa36   : > { %5923 = vpow2.f32 %v4279_v30  ;;  %v5424_v57 = vpack.c.bf16 %v4432_v46, %v4430_v32  ;;  %v5426_v47 = vpack.c.bf16 %v4431_v53, %v4429_v14 }
 0xa37   : > { %v7939_v28 = vpop.eup %5909  ;;  %v4281_v20 = vmul.f32 1.442695, %v4163_v50  ;;  %v4283_v56 = vmul.f32 1.442695, %v4164_v49  ;;  %5925 = vrcp.f32 %v4315_v44 }
 0xa38   : > { %v7941_v37 = vpop.eup %5911  ;;  %v4318_v19 = vpop.xlane.xlu0 %4317  ;;  %5425 = vmatprep.subr.bf16.mxu1 %v5424_v57 }
 0xa39   : > { %v4099_v54 = vpop.xlane.xlu1 %4098  ;;  %v5914_v21 = vpop.eup %5913  ;;  %5927 = vpow2.f32 %v4281_v20  ;;  %5427 = vmatpush1.bf16.xpose.msra.mxu1 %v5426_v47  ;;  %v4373_v17 = vadd.f32 %v7941_v37, %v7939_v28 }
 0xa3a   : > { %v4165_v22 = vsub.f32 %v7687_v48, %v4099_v54  ;;  %v4166_v58 = vsub.f32 %v7689_v63, %v4099_v54  ;;  %5929 = vpow2.f32 %v4283_v56  ;;  %v4434_v10 = vmul.f32 %v5914_v21, %v7740_v12 }
 0xa3b   : > { %v7947_v16 = vpop.eup %5915  ;;  %5931 = vrcp.f32 %v4318_v19  ;;  %4374 = vadd.xlane.f32.xlu1 %v4373_v17  ;;  %v4433_v14 = vmul.f32 %v5914_v21, %v7735_v3 }
 0xa3c   : > { %v4285_v6 = vmul.f32 1.442695, %v4165_v22  ;;  %v4287_v59 = vmul.f32 1.442695, %v4166_v58  ;;  %v7949_v8 = vpop.eup %5917  ;;  %v4102_v5 = vpop.xlane.xlu0 %4101 }
 0xa3d   : > { %v4321_v30 = vpop.xlane.xlu1 %4320  ;;  %v5920_v48 = vpop.eup %5919  ;;  %v4167_v63 = vsub.f32 %v7693_v11, %v4102_v5  ;;  %v4168_v44 = vsub.f32 %v7695_v18, %v4102_v5  ;;  %v4376_v32 = vadd.f32 %v7949_v8, %v7947_v16 }
 0xa3e   : > { %5933 = vpow2.f32 %v4285_v6  ;;  %v4436_v46 = vmul.f32 %v5920_v48, %v7751_v23  ;;  %v4435_v53 = vmul.f32 %v5920_v48, %v7746_v61 }
 0xa3f   : > { %5935 = vpow2.f32 %v4287_v59  ;;  %v7959_v50 = vpop.eup %5921  ;;  %v4289_v49 = vmul.f32 1.442695, %v4167_v63  ;;  %v4291_v12 = vmul.f32 1.442695, %v4168_v44  ;;  %4377 = vadd.xlane.f32.xlu0 %v4376_v32 }
 0xa40   : > { %v7961_v57 = vpop.eup %5923  ;;  %5937 = vrcp.f32 %v4321_v30  ;;  %v4324_v11 = vpop.xlane.xlu0 %4323  ;;  %v5428_v18 = vpack.c.bf16 %v4436_v46, %v4434_v10  ;;  %v5430_v20 = vpack.c.bf16 %v4435_v53, %v4433_v14 }
 0xa41   : > { %v4105_v47 = vpop.xlane.xlu1 %4104  ;;  %v5926_v56 = vpop.eup %5925  ;;  %5939 = vpow2.f32 %v4289_v49  ;;  %v4379_v61 = vadd.f32 %v7961_v57, %v7959_v50 }
 0xa42   : > { %v4169_v23 = vsub.f32 %v7699_v55, %v4105_v47  ;;  %v4170_v3 = vsub.f32 %v7701_v40, %v4105_v47  ;;  %5941 = vpow2.f32 %v4291_v12  ;;  %5429 = vmatprep.subr.bf16.mxu1 %v5428_v18  ;;  %v4438_v17 = vmul.f32 %v5926_v56, %v7762_v25 }
 0xa43   : > { %v7967_v19 = vpop.eup %5927  ;;  %5943 = vrcp.f32 %v4324_v11  ;;  %5431 = vmatpush1.bf16.xpose.msra.mxu1 %v5430_v20  ;;  %4380 = vadd.xlane.f32.xlu1 %v4379_v61  ;;  %v4437_v10 = vmul.f32 %v5926_v56, %v7757_v36 }
 0xa44   : > { %v4293_v54 = vmul.f32 1.442695, %v4169_v23  ;;  %v4295_v21 = vmul.f32 1.442695, %v4170_v3  ;;  %v7969_v22 = vpop.eup %5929  ;;  %v4108_v58 = vpop.xlane.xlu0 %4107 }
 0xa45   : > { %v5932_v55 = vpop.eup %5931  ;;  %v4171_v40 = vsub.f32 %v7705_v34, %v4108_v58  ;;  %v4172_v6 = vsub.f32 %v7707_v35, %v4108_v58  ;;  %v4327_v59 = vpop.xlane.xlu1 %4326  ;;  %v4382_v5 = vadd.f32 %v7969_v22, %v7967_v19 }
 0xa46   : > { %5945 = vpow2.f32 %v4293_v54  ;;  %v4440_v30 = vmul.f32 %v5932_v55, %v7773_v13  ;;  %v4439_v48 = vmul.f32 %v5932_v55, %v7768_v41 }
 0xa47   : > { %5947 = vpow2.f32 %v4295_v21  ;;  %v4297_v25 = vmul.f32 1.442695, %v4171_v40  ;;  %v4299_v44 = vmul.f32 1.442695, %v4172_v6  ;;  %4383 = vadd.xlane.f32.xlu0 %v4382_v5 }
 0xa48   : > { %v7979_v63 = vpop.eup %5933  ;;  %5949 = vrcp.f32 %v4327_v59  ;;  %v4330_v35 = vpop.xlane.xlu0 %4329  ;;  %v5432_v34 = vpack.c.bf16 %v4440_v30, %v4438_v17  ;;  %v5434_v46 = vpack.c.bf16 %v4439_v48, %v4437_v10 }
 0xa49   : > { %v7981_v32 = vpop.eup %5935  ;;  %5951 = vpow2.f32 %v4297_v25 }
 0xa4a   : > { %v4385_v14 = vadd.f32 %v7981_v32, %v7979_v63  ;;  %v5938_v13 = vpop.eup %5937  ;;  %5953 = vpow2.f32 %v4299_v44  ;;  %5433 = vmatprep.subr.bf16.mxu1 %v5432_v34 }
 0xa4b   : > { %v7985_v36 = vpop.eup %5939  ;;  %5955 = vrcp.f32 %v4330_v35  ;;  %5435 = vmatpush1.bf16.xpose.msra.mxu1 %v5434_v46  ;;  %v4442_v11 = vmul.f32 %v5938_v13, %v7784_v62  ;;  %v4441_v47 = vmul.f32 %v5938_v13, %v7779_v26  ;;  %v4565_v13 = vld [vmem:[%s8390_s0] sm:$0xf] }
 0xa4c   : > { %4386 = vadd.xlane.f32.xlu1 %v4385_v14  ;;  %v7987_v41 = vpop.eup %5941  ;;  %v4333_v53 = vpop.xlane.xlu1 %4332 }
 0xa4d   : > { %v5944_v49 = vpop.eup %5943  ;;  %v4388_v12 = vadd.f32 %v7987_v41, %v7985_v36  ;;  %5957 = vrcp.f32 %v4333_v53 }
 0xa4e   : > { %v4444_v18 = vmul.f32 %v5944_v49, %v7795_v43  ;;  %v4443_v20 = vmul.f32 %v5944_v49, %v7790_v52 }
 0xa4f   : > { %4389 = vadd.xlane.f32.xlu0 %v4388_v12 }
 0xa50   : > { %v7995_v56 = vpop.eup %5945  ;;  %v4336_v3 = vpop.xlane.xlu0 %4335  ;;  %v5436_v61 = vpack.c.bf16 %v4444_v18, %v4442_v11  ;;  %v5438_v54 = vpack.c.bf16 %v4443_v20, %v4441_v47 }
 0xa51   : > { %v7997_v23 = vpop.eup %5947  ;;  %5959 = vrcp.f32 %v4336_v3 }
 0xa52   : > { %v4391_v21 = vadd.f32 %v7997_v23, %v7995_v56  ;;  %v5950_v62 = vpop.eup %5949  ;;  %5437 = vmatprep.subr.bf16.mxu1 %v5436_v61 }
 0xa53   : > { %v8001_v43 = vpop.eup %5951  ;;  %5439 = vmatpush1.bf16.xpose.msra.mxu1 %v5438_v54  ;;  %v4446_v55 = vmul.f32 %v5950_v62, %v7806_v9  ;;  %v4445_v6 = vmul.f32 %v5950_v62, %v7801_v45  ;;  %v8391_v54 = vld [vmem:[#allocation31_spill] sm:$0xff] }
 0xa54   : > { %4392 = vadd.xlane.f32.xlu1 %v4391_v21  ;;  %v8003_v26 = vpop.eup %5953  ;;  %v4339_v52 = vpop.xlane.xlu1 %4338  ;;  %v8392_v21 = vld [vmem:[#allocation30_spill] sm:$0xff] }
 0xa55   : > { %v5956_v58 = vpop.eup %5955  ;;  %v4394_v17 = vadd.f32 %v8003_v26, %v8001_v43  ;;  %5961 = vrcp.f32 %v4339_v52 }
 0xa56   : > { %v4448_v40 = vmul.f32 %v5956_v58, %v7817_v39  ;;  %v4447_v59 = vmul.f32 %v5956_v58, %v7812_v29 }
 0xa57   : > { %4395 = vadd.xlane.f32.xlu0 %v4394_v17  ;;  %v5958_v48 = vpop.eup %5957 }
 0xa58   : > { %v4342_v5 = vpop.xlane.xlu0 %4341  ;;  %v5440_v30 = vpack.c.bf16 %v4448_v40, %v4446_v55  ;;  %v5442_v10 = vpack.c.bf16 %v4447_v59, %v4445_v6  ;;  %v4450_v35 = vmul.f32 %v5958_v48, %v7825_v1  ;;  %v4449_v45 = vmul.f32 %v5958_v48, %v7823_v15  ;;  %v8393_v40 = vld [vmem:[#allocation25_spill] sm:$0xff] }
 0xa59   : > { %5963 = vrcp.f32 %v4342_v5  ;;  %v8394_v59 = vld [vmem:[#allocation33_spill] sm:$0xff]  ;;  %v8395_v5 = vld [vmem:[#allocation32_spill] sm:$0xff] }
 0xa5a   : > { %5441 = vmatprep.subr.bf16.mxu1 %v5440_v30  ;;  %v8396_v30 = vld [vmem:[#allocation24_spill] sm:$0xff] }
 0xa5b   : > { %v5960_v25 = vpop.eup %5959  ;;  %5443 = vmatpush1.bf16.xpose.msra.mxu1 %v5442_v10 }
 0xa5c   : > { %v4345_v44 = vpop.xlane.xlu1 %4344  ;;  %v4452_v9 = vmul.f32 %v5960_v25, %v7833_v42  ;;  %v4451_v39 = vmul.f32 %v5960_v25, %v7831_v38 }
 0xa5d   : > { %5965 = vrcp.f32 %v4345_v44 }
 0xa5e   : > { %v5444_v29 = vpack.c.bf16 %v4452_v9, %v4450_v35  ;;  %v5446_v34 = vpack.c.bf16 %v4451_v39, %v4449_v45 }
 0xa5f   : > { %v5962_v14 = vpop.eup %5961 }
 0xa60   : > { %v4348_v46 = vpop.xlane.xlu0 %4347  ;;  %5445 = vmatprep.subr.bf16.mxu1 %v5444_v29  ;;  %v4454_v42 = vmul.f32 %v5962_v14, %v7841_v2  ;;  %v4453_v49 = vmul.f32 %v5962_v14, %v7839_v31 }
 0xa61   : > { %5967 = vrcp.f32 %v4348_v46 }
 0xa63   : > { %v5964_v53 = vpop.eup %5963  ;;  %5447 = vmatpush1.bf16.xpose.msra.mxu1 %v5446_v34 }
 0xa64   : > { %v4351_v1 = vpop.xlane.xlu1 %4350  ;;  %v4456_v38 = vmul.f32 %v5964_v53, %v7849_v24  ;;  %v4455_v15 = vmul.f32 %v5964_v53, %v7847_v60 }
 0xa65   : > { %4568 = vperm.xlu1 %5550, %v4565_v13   ;;  %5969 = vrcp.f32 %v4351_v1 }
 0xa66   : > { %v5448_v12 = vpack.c.bf16 %v4456_v38, %v4454_v42  ;;  %v5450_v11 = vpack.c.bf16 %v4455_v15, %v4453_v49  ;;  %v8397_v38 = vld [vmem:[#allocation27_spill] sm:$0xff] }
 0xa67   : > { %v5966_v47 = vpop.eup %5965  ;;  %v8398_v49 = vld [vmem:[#allocation19_spill] sm:$0xff] }
 0xa68   : > { %v4354_v18 = vpop.xlane.xlu0 %4353  ;;  %5449 = vmatprep.subr.bf16.mxu1 %v5448_v12  ;;  %v4458_v61 = vmul.f32 %v5966_v47, %v7857_v4  ;;  %v4457_v60 = vmul.f32 %v5966_v47, %v8392_v21 }
 0xa69   : > { %5971 = vrcp.f32 %v4354_v18 }
 0xa6b   : > { %v5968_v20 = vpop.eup %5967  ;;  %5451 = vmatpush1.bf16.xpose.msra.mxu1 %v5450_v11 }
 0xa6c   : > { %v4357_v3 = vpop.xlane.xlu1 %4356  ;;  %v4460_v2 = vmul.f32 %v5968_v20, %v7865_v33  ;;  %v4459_v24 = vmul.f32 %v5968_v20, %v8391_v54 }
 0xa6d   : > { %5973 = vrcp.f32 %v4357_v3  ;;  %v8401_v3 = vld [vmem:[#allocation38_spill] sm:$0xff] }
 0xa6e   : > { %v5452_v62 = vpack.c.bf16 %v4460_v2, %v4458_v61  ;;  %v5454_v31 = vpack.c.bf16 %v4459_v24, %v4457_v60  ;;  %v8402_v2 = vld [vmem:[#allocation40_spill] sm:$0xff]  ;;  %v8403_v24 = vld [vmem:[#allocation39_spill] sm:$0xff]  ;;  %v8404_v60 = vld [vmem:[#allocation18_spill] sm:$0xff] }
 0xa6f   : > { %v5970_v58 = vpop.eup %5969 }
 0xa70   : > { %v4360_v52 = vpop.xlane.xlu0 %4359  ;;  %5453 = vmatprep.subr.bf16.mxu1 %v5452_v62  ;;  %v4462_v6 = vmul.f32 %v5970_v58, %v8393_v40  ;;  %v4461_v10 = vmul.f32 %v5970_v58, %v8396_v30 }
 0xa71   : > { %5975 = vrcp.f32 %v4360_v52 }
 0xa73   : > { %v5972_v17 = vpop.eup %5971  ;;  %5455 = vmatpush1.bf16.xpose.msra.mxu1 %v5454_v31 }
 0xa74   : > { %v4363_v55 = vpop.xlane.xlu1 %4362  ;;  %v4464_v4 = vmul.f32 %v5972_v17, %v8394_v59  ;;  %v4463_v33 = vmul.f32 %v5972_v17, %v8395_v5 }
 0xa75   : > { %5977 = vrcp.f32 %v4363_v55 }
 0xa76   : > { %v5456_v48 = vpack.c.bf16 %v4464_v4, %v4462_v6  ;;  %v5458_v25 = vpack.c.bf16 %v4463_v33, %v4461_v10 }
 0xa77   : > { %v5974_v35 = vpop.eup %5973 }
 0xa78   : > { %v4366_v44 = vpop.xlane.xlu0 %4365  ;;  %5457 = vmatprep.subr.bf16.mxu1 %v5456_v48  ;;  %v4466_v45 = vmul.f32 %v5974_v35, %v7889_v7  ;;  %v4465_v46 = vmul.f32 %v5974_v35, %v7887_v27  ;;  %v8399_v7 = vld [vmem:[#allocation34_spill] sm:$0xff] }
 0xa79   : > { %5979 = vrcp.f32 %v4366_v44 }
 0xa7b   : > { %v5976_v9 = vpop.eup %5975  ;;  %5459 = vmatpush1.bf16.xpose.msra.mxu1 %v5458_v25 }
 0xa7c   : > { %v4369_v39 = vpop.xlane.xlu1 %4368  ;;  %v4468_v29 = vmul.f32 %v5976_v9, %v7897_v0  ;;  %v4467_v34 = vmul.f32 %v5976_v9, %v7895_v51  ;;  %v8400_v0 = vld [vmem:[#allocation26_spill] sm:$0xff] }
 0xa7d   : > { %5981 = vrcp.f32 %v4369_v39 }
 0xa7e   : > { %v5460_v14 = vpack.c.bf16 %v4468_v29, %v4466_v45  ;;  %v5462_v13 = vpack.c.bf16 %v4467_v34, %v4465_v46 }
 0xa7f   : > { %v5978_v1 = vpop.eup %5977 }
 0xa80   : > { %v4372_v53 = vpop.xlane.xlu0 %4371  ;;  %5461 = vmatprep.subr.bf16.mxu1 %v5460_v14  ;;  %v4470_v15 = vmul.f32 %v5978_v1, %v8397_v38  ;;  %v4469_v18 = vmul.f32 %v5978_v1, %v8400_v0 }
 0xa81   : > { %5983 = vrcp.f32 %v4372_v53 }
 0xa83   : > { %v5980_v42 = vpop.eup %5979  ;;  %5463 = vmatpush1.bf16.xpose.msra.mxu1 %v5462_v13 }
 0xa84   : > { %v4472_v12 = vmul.f32 %v5980_v42, %v8398_v49  ;;  %v4471_v11 = vmul.f32 %v5980_v42, %v8399_v7 }
 0xa86   : > { %v5464_v51 = vpack.c.bf16 %v4472_v12, %v4470_v15  ;;  %v5466_v47 = vpack.c.bf16 %v4471_v11, %v4469_v18  ;;  %v8408_v18 = vld [vmem:[#allocation28_spill] sm:$0xff] }
 0xa87   : > { %v5982_v27 = vpop.eup %5981 }
 0xa88   : > { %5465 = vmatprep.subr.bf16.mxu1 %v5464_v51  ;;  %v4474_v61 = vmul.f32 %v5982_v27, %v8401_v3  ;;  %v4473_v62 = vmul.f32 %v5982_v27, %v8404_v60 }
 0xa8b   : > { %v5984_v20 = vpop.eup %5983  ;;  %5467 = vmatpush1.bf16.xpose.msra.mxu1 %v5466_v47  ;;  %v8409_v47 = vld [vmem:[#allocation35_spill] sm:$0xff] }
 0xa8c   : > { %v4476_v54 = vmul.f32 %v5984_v20, %v8402_v2  ;;  %v4475_v21 = vmul.f32 %v5984_v20, %v8403_v24  ;;  %v8410_v20 = vld [vmem:[#allocation36_spill] sm:$0xff] }
 0xa8e   : > { %v5468_v31 = vpack.c.bf16 %v4476_v54, %v4474_v61  ;;  %v5470_v52 = vpack.c.bf16 %v4475_v21, %v4473_v62  ;;  %v8411_v61 = vld [vmem:[#allocation29_spill] sm:$0xff] }
 0xa90   : > { %5469 = vmatprep.subr.bf16.mxu1 %v5468_v31 }
 0xa93   : > { %5471 = vmatpush1.bf16.xpose.msra.mxu1 %v5470_v52 }
 0xac8   : > { %v4375_v58 = vpop.xlane.xlu1 %4374 }
 0xac9   : > { %5985 = vrcp.f32 %v4375_v58 }
 0xacc   : > { %v4378_v17 = vpop.xlane.xlu0 %4377 }
 0xacd   : > { %5987 = vrcp.f32 %v4378_v17 }
 0xad0   : > { %v4381_v55 = vpop.xlane.xlu1 %4380 }
 0xad1   : > { %5989 = vrcp.f32 %v4381_v55 }
 0xad3   : > { %v5986_v6 = vpop.eup %5985 }
 0xad4   : > { %v4384_v40 = vpop.xlane.xlu0 %4383  ;;  %v4478_v5 = vmul.f32 %v5986_v6, %v7941_v37  ;;  %v4477_v30 = vmul.f32 %v5986_v6, %v7939_v28 }
 0xad5   : > { %5991 = vrcp.f32 %v4384_v40 }
 0xad7   : > { %v5988_v59 = vpop.eup %5987 }
 0xad8   : > { %v4480_v33 = vmul.f32 %v5988_v59, %v7949_v8  ;;  %v4479_v10 = vmul.f32 %v5988_v59, %v7947_v16 }
 0xad9   : > { %v4387_v4 = vpop.xlane.xlu1 %4386 }
 0xada   : > { %v5472_v48 = vpack.c.bf16 %v4480_v33, %v4478_v5  ;;  %v5474_v25 = vpack.c.bf16 %v4479_v10, %v4477_v30  ;;  %5993 = vrcp.f32 %v4387_v4 }
 0xadb   : > { %v5990_v35 = vpop.eup %5989 }
 0xadc   : > { %v4390_v44 = vpop.xlane.xlu0 %4389  ;;  %5473 = vmatprep.subr.bf16.mxu1 %v5472_v48  ;;  %v4482_v45 = vmul.f32 %v5990_v35, %v7961_v57  ;;  %v4481_v8 = vmul.f32 %v5990_v35, %v7959_v50 }
 0xadd   : > { %5995 = vrcp.f32 %v4390_v44  ;;  %5475 = vmatpush1.bf16.xpose.msra.mxu1 %v5474_v25 }
 0xadf   : > { %v5992_v9 = vpop.eup %5991 }
 0xae0   : > { %v4484_v37 = vmul.f32 %v5992_v9, %v7969_v22  ;;  %v4483_v28 = vmul.f32 %v5992_v9, %v7967_v19 }
 0xae1   : > { %v4393_v39 = vpop.xlane.xlu1 %4392 }
 0xae2   : > { %v5476_v29 = vpack.c.bf16 %v4484_v37, %v4482_v45  ;;  %v5478_v16 = vpack.c.bf16 %v4483_v28, %v4481_v8  ;;  %5997 = vrcp.f32 %v4393_v39 }
 0xae4   : > { %v4396_v34 = vpop.xlane.xlu0 %4395  ;;  %5477 = vmatprep.subr.bf16.mxu1 %v5476_v29  ;;  %v5994_v46 = vpop.eup %5993 }
 0xae5   : > { %5999 = vrcp.f32 %v4396_v34  ;;  %5479 = vmatpush1.bf16.xpose.msra.mxu1 %v5478_v16  ;;  %v4486_v13 = vmul.f32 %v5994_v46, %v7981_v32  ;;  %v4485_v57 = vmul.f32 %v5994_v46, %v7979_v63  ;;  %v8405_v63 = vld [vmem:[#allocation37_spill] sm:$0xff] }
 0xae7   : > { %v5996_v14 = vpop.eup %5995 }
 0xae8   : > { %v4488_v53 = vmul.f32 %v5996_v14, %v7987_v41  ;;  %v4487_v22 = vmul.f32 %v5996_v14, %v7985_v36 }
 0xaea   : > { %v5480_v50 = vpack.c.bf16 %v4488_v53, %v4486_v13  ;;  %v5482_v1 = vpack.c.bf16 %v4487_v22, %v4485_v57 }
 0xaec   : > { %5481 = vmatprep.subr.bf16.mxu1 %v5480_v50  ;;  %v5998_v19 = vpop.eup %5997 }
 0xaed   : > { %5483 = vmatpush1.bf16.xpose.msra.mxu1 %v5482_v1  ;;  %v4490_v38 = vmul.f32 %v5998_v19, %v7997_v23  ;;  %v4489_v49 = vmul.f32 %v5998_v19, %v7995_v56  ;;  %v4564_v23 = vld [vmem:[%s8406_s1] sm:$0xf]  ;;  %v4569_v56 = vpop.permute.xlu1 %4568 }
 0xaef   : > { %v6000_v42 = vpop.eup %5999 }
 0xaf0   : > { %v4492_v15 = vmul.f32 %v6000_v42, %v8003_v26  ;;  %v4491_v32 = vmul.f32 %v6000_v42, %v8001_v43 }
 0xaf2   : > { %v5484_v12 = vpack.c.bf16 %v4492_v15, %v4490_v38  ;;  %v5486_v41 = vpack.c.bf16 %v4491_v32, %v4489_v49 }
 0xaf4   : > { %5485 = vmatprep.subr.bf16.mxu1 %v5484_v12 }
 0xaf5   : > { %5487 = vmatpush1.bf16.xpose.msra.mxu1 %v5486_v41 }
 0xafc   : > { %4558 = vmatmul.mubr.f32.vlgmr.msra.gmra.mrb[18].mxu1 %v8405_v63 }
 0xbcf   : > { %v4559_v36 = vpop.f32.mrb[18].mxu1 }
 0xbd0   : > { %v4561_v7 = vpop.f32.mrb[19].mxu1 }
 0xbd1   : > { %5025 = vmatprep.subr.msk.mxu0 %vm1580_vm4, %v4561_v7 }
 0xbd2   : > { %5026 = vmatpush1.msk.msra.mxu0 %vm1580_vm4, %v4559_v36 }
 0xbd3   : > { %5027 = vmatmul.mubr.msk.f32.vlgmr.msra.gmra.mrb[142].mxu0 %vm1483_vm5, %v4564_v23 }
 0xca6   : > { %v4646_v43 = vpop.f32.mrb[142].mxu0 }
 0xca7   : > { %v4647_v26 = vadd.f32 %v4646_v43, %v4569_v56  ;;  %v4648_v11 = vpop.f32.mrb[143].mxu0 }
 0xca8   : > { %v4649_v0 = vadd.f32 %v4648_v11, %v4569_v56 }
 0xca9   : > { %v4651_v51 = vadd.f32 %v4647_v26, %v8408_v18 }
 0xcaa   : > { %v4652_v27 = vadd.f32 %v4649_v0, %v8409_v47 }
 0xcab   : > { %v4653_v3 = vadd.f32 %v4651_v51, %v8410_v20 }
 0xcac   : > { %v4654_v2 = vadd.f32 %v4652_v27, %v8411_v61 }
 0xcae   : > { %v4657_v54 = vcombine.low %v4653_v3, %v4654_v2 }
 0xcb0   : > { %4659 = vst [vmem:[%s627_s14] sm:$0xff] %v4657_v54 }
 0xcb1   : > { %6106 = shalt.err (!%p6103_p11)
}
 0xcb2   : > { %s6107_s15 = scalar_lea.hbm %s8074_s16, 128  ;;  %s6111_s0 = scalar_lea.hbm %s8412_s13, 256 }
 0xcb3   : > { %p6108_p7 = scmp.ne.s32.totalorder %s8074_s16, %s6107_s15  ;;  %p6112_p1 = scmp.lt.u32.totalorder %s8074_s16, %s8412_s13 }
 0xcb4   : > { %p6113_p0 = scmp.lt.u32.totalorder %s6111_s0, %s6107_s15  ;;  %p6115_p5 = scmp.lt.u32.totalorder %s6107_s15, %s8074_s16 }
 0xcb5   : > { %p6109_p2 = pnand %p6108_p7, %p8413_p9 }
 0xcb6   : > { %p6114_p13 = por %p6113_p0, %p6112_p1 }
 0xcb7   : > { %p6110_p4 = pneg %p6109_p2 }
 0xcb8   : > { %p6116_p6 = por %p6115_p5, %p6114_p13 }
 0xcba   : > { %p6117_p12 = pnand %p6116_p6, %p6110_p4 }
 0xcbc   : > { %6120 = shalt.err (!%p6117_p12)
}
 0xcbd   : > { %5494 = dma.vmem_to_hbm [thread:$0]  (%p8413_p9), %s8076_s19, 128, %s8074_s16, %s4661_s30  }
 0xcbe PF: > { %s8414_s1 = sld [smem:[#allocation12_spill]]  ;;  %s8415_s18 = sld [smem:[#allocation17_spill]] }
 0xcbf   : > { %p8417_p8 = scmp.ge.s32.totalorder %s6163_s24, 2 }
 0xcc4   : > { %s4687_s14 = sand.u32 1, %s8414_s1   ;;  %p8416_p3 = scmp.ne.s32.totalorder %s8415_s18, 0 }
 0xcc5   : > { %s4688_s12 = scalar_lea.sflag [#allocation4], %s4687_s14 }
 0xcc6   : > { %p5507_p10 = pnand %p8417_p8, %p8416_p3 }
 0xcc8   : > { %6146 = dma.done.wait (!%p5507_p10), %s4688_s12, 128  }
 0xcc9   : > { %6148 = vsyncadd (!%p5507_p10), %s4688_s12, 4294967168  ;;  %s8418_s24 = sld [smem:[#allocation14_spill]]  ;;  %s8419_s28 = sld [smem:[#allocation13_spill]] }
 0xcca   : > { %s8420_s23 = sld [smem:[#allocation15_spill]]  ;;  %s8421_s21 = smov %s6155_s22 }
 0xccf   : > { %p32_p11 = scmp.ge.s32.totalorder %s8418_s24, 4   ;;  %s8422_s22 = smov %s8419_s28 }
 0xcd1   :  { %34 = sbr.rel (!%p32_p11) target bundleno = 17 (0x11), region = 162 }
 0xcd8   :  { %4693 = vsyncpa [#allocation3], 1 }
 0xcd9   :  { %4695 = vsyncpa [#allocation3 + $0x1], 1 }
 0xcda   :  { %4696 = vsyncpa [#allocation6], 1 }
 0xcdb   :  { %4698 = vsyncpa [#allocation6 + $0x1], 1 }
 0xcdc   :  { %4699 = vsyncpa [#allocation4], 1 }
 0xcdd   :  { %4701 = vsyncpa [#allocation4 + $0x1], 1 }

</bundles_post_ra>
